<compile_context>
chip_gen: v7x
topology: tpu7x:2x2x1
jax: 0.10.0
libtpu: 0.0.40
codegen_flags: <defaults>
</compile_context>

<pallas_src>
import functools
import math

import jax
import jax.numpy as jnp
from jax.experimental import pallas as pl
from jax.experimental.pallas import tpu as pltpu


# --------------------------- chip-dependent sizing ---------------------------

@functools.lru_cache(maxsize=None)
def _vmem_capacity():
    try:
        info = pltpu.get_tpu_info()
        return int(getattr(info, "vmem_capacity_bytes", 64 * 1024 * 1024))
    except Exception:
        return 64 * 1024 * 1024          # conservative (v7x physical VMEM)


@functools.lru_cache(maxsize=None)
def _vmem_limit():
    # Leave headroom for double-buffering / internal scratch:
    # ~48 MiB on v7x (64 MiB physical), ~100 MiB on v5e/v6e (128 MiB physical).
    return int(max(32 * 1024 * 1024,
                   min(_vmem_capacity() - 16 * 1024 * 1024, 100 * 1024 * 1024)))


@functools.lru_cache(maxsize=None)
def _tile_budget():
    # Bigger tiles amortize the ~0.35us/step cost on 128-MiB parts; stay smaller
    # on v7x's 64 MiB VMEM.
    return 4 * 1024 * 1024 if _vmem_capacity() >= 100 * 1024 * 1024 else 2 * 1024 * 1024


def _cp(sem):
    return pltpu.CompilerParams(dimension_semantics=sem,
                                vmem_limit_bytes=_vmem_limit())


def _largest_divisor_tile(H, per_row_bytes, budget):
    best = 1
    for th in range(1, H + 1):
        if H % th == 0 and th * per_row_bytes <= budget:
            best = th
    return best


# --------------------------- in-kernel activations ---------------------------

def _erf(x):
    # Abramowitz & Stegun 7.1.26 (max abs err ~1.5e-7); only needs exp (EUP slot).
    a1, a2, a3, a4, a5 = 0.254829592, -0.284496736, 1.421413741, -1.453152027, 1.061405429
    p = 0.3275911
    sgn = jnp.where(x >= 0, 1.0, -1.0)
    ax = jnp.abs(x)
    t = 1.0 / (1.0 + p * ax)
    poly = ((((a5 * t + a4) * t + a3) * t + a2) * t + a1) * t
    return sgn * (1.0 - poly * jnp.exp(-ax * ax))


def _gelu(x):
    return 0.5 * x * (1.0 + _erf(x * 0.7071067811865476))


# ------------------- 3x3 conv with fused GroupNorm statistics -------------------

def conv3x3_gn_stats(x, w):
    """3x3 'same' conv (no bias), NHWC x HWIO -> NHWC float32, plus fused
    per-sample per-channel sum / sum-of-squares of the conv output (GroupNorm)."""
    B, H, W, C = x.shape
    Cout = w.shape[-1]
    if C < 8:                             # tiny-Cin first layers: zero-pad channels
        x = jnp.pad(x, ((0, 0), (0, 0), (0, 0), (0, 8 - C)))
        w = jnp.pad(w, ((0, 0), (0, 0), (0, 8 - C), (0, 0)))
        C = 8
    Wp = W + 2
    xp = jnp.pad(x, ((0, 0), (1, 1), (1, 1), (0, 0)))   # zero "same" padding
    w_im = w.reshape(3, 3 * C, Cout)      # (dy, dx*Cin + c, Cout) im2col weight

    # Row-tile so the per-step working set (input + im2col slab + acc + output)
    # stays a few MB.
    per_row = 4 * W * (4 * C + 2 * Cout + 8)
    TH = _largest_divisor_tile(H, per_row, _tile_budget())
    NT = H // TH

    def kernel(xm_ref, h1_ref, h2_ref, w_ref, o_ref, s_ref, q_ref):
        t = pl.program_id(1)
        # (TH+2, Wp, Cin) window: the TH body rows + the two halo rows below.
        win = jnp.concatenate([xm_ref[0], h1_ref[0], h2_ref[0]], axis=0)

        acc = jnp.zeros((TH * W, Cout), jnp.float32)
        for dy in range(3):               # 3 matmuls with K = 3*Cin (im2col per dy)
            rows = win[dy:dy + TH]        # (TH, Wp, Cin)
            slab = jnp.concatenate([rows[:, dx:dx + W, :] for dx in range(3)],
                                   axis=-1)             # (TH, W, 3*Cin)
            acc = acc + jnp.dot(slab.reshape(TH * W, 3 * C), w_ref[dy],
                                preferred_element_type=jnp.float32)

        o_ref[0] = acc.reshape(TH, W, Cout).astype(o_ref.dtype)

        # Fused GroupNorm statistics: per-lane (per-channel) partials, accumulated
        # across row tiles in the resident output blocks; the final cross-lane
        # reduce (length Cout) happens outside the kernel.
        @pl.when(t == 0)
        def _():
            s_ref[...] = jnp.zeros(s_ref.shape, s_ref.dtype)
            q_ref[...] = jnp.zeros(q_ref.shape, q_ref.dtype)

        ps = jnp.sum(acc, axis=0, keepdims=True)        # (1, Cout)
        pq = jnp.sum(acc * acc, axis=0, keepdims=True)  # (1, Cout)
        s_ref[...] += ps[None]
        q_ref[...] += pq[None]

    y, ssum, ssq = pl.pallas_call(
        kernel,
        out_shape=(jax.ShapeDtypeStruct((B, H, W, Cout), jnp.float32),
                   jax.ShapeDtypeStruct((B, 1, Cout), jnp.float32),
                   jax.ShapeDtypeStruct((B, 1, Cout), jnp.float32)),
        grid=(B, NT),
        in_specs=[
            # TH body rows of the padded input (read once per tile).
            pl.BlockSpec((1, TH, Wp, C), lambda b, t: (b, t, 0, 0)),
            # Two single-row halo blocks below the tile (the only re-read rows).
            pl.BlockSpec((1, 1, Wp, C), lambda b, t: (b, t * TH + TH, 0, 0)),
            pl.BlockSpec((1, 1, Wp, C), lambda b, t: (b, t * TH + TH + 1, 0, 0)),
            pl.BlockSpec((3, 3 * C, Cout), lambda b, t: (0, 0, 0)),
        ],
        out_specs=(
            pl.BlockSpec((1, TH, W, Cout), lambda b, t: (b, t, 0, 0)),
            pl.BlockSpec((1, 1, Cout), lambda b, t: (b, 0, 0)),   # accumulators:
            pl.BlockSpec((1, 1, Cout), lambda b, t: (b, 0, 0)),   # constant over t
        ),
        compiler_params=_cp(("arbitrary", "arbitrary")),
    )(xp, xp, xp, w_im)
    return y, ssum[:, 0, :], ssq[:, 0, :]


# ---------------- GroupNorm(1, C) affine (+GELU / +residual+GELU) ----------------

def _group_norm_apply(h, ssum, ssq, gamma, beta, act="none", residual=None):
    """out = act(h * scale + shift [+ residual]) where scale/shift implement
    GroupNorm(num_groups=1, eps=1e-5) from the fused conv statistics."""
    B, H, W, C = h.shape
    n = float(H * W * C)
    mean = jnp.sum(ssum, axis=-1) / n                    # (B,)
    # NOTE: E[x^2] - mean^2 can lose precision for very large, offset feature maps;
    # fine at these scales (and for conv outputs, which are near zero-mean).
    var = jnp.maximum(jnp.sum(ssq, axis=-1) / n - mean * mean, 0.0)
    rstd = jax.lax.rsqrt(var + 1e-5)
    scale = gamma[None, :] * rstd[:, None]               # (B, C)
    shift = beta[None, :] - mean[:, None] * scale
    scale = scale.reshape(B, 1, 1, C)
    shift = shift.reshape(B, 1, 1, C)

    n_streams = 3 if residual is not None else 2
    TH = _largest_divisor_tile(H, 4 * W * C * n_streams, _tile_budget())
    row_spec = pl.BlockSpec((1, TH, W, C), lambda b, t: (b, t, 0, 0))
    vec_spec = pl.BlockSpec((1, 1, 1, C), lambda b, t: (b, 0, 0, 0))
    out_shape = jax.ShapeDtypeStruct((B, H, W, C), jnp.float32)
    grid = (B, H // TH)

    if residual is not None:              # gelu(x_res + GN(h)) fused in one pass
        def kernel(x_ref, r_ref, s_ref, b_ref, o_ref):
            o_ref[...] = _gelu(x_ref[...] * s_ref[...] + b_ref[...] + r_ref[...])

        return pl.pallas_call(
            kernel, out_shape=out_shape, grid=grid,
            in_specs=[row_spec, row_spec, vec_spec, vec_spec],
            out_specs=row_spec,
            compiler_params=_cp(("parallel", "parallel")),
        )(h, residual, scale, shift)

    def kernel(x_ref, s_ref, b_ref, o_ref):
        y = x_ref[...] * s_ref[...] + b_ref[...]
        o_ref[...] = _gelu(y) if act == "gelu" else y

    return pl.pallas_call(
        kernel, out_shape=out_shape, grid=grid,
        in_specs=[row_spec, vec_spec, vec_spec],
        out_specs=row_spec,
        compiler_params=_cp(("parallel", "parallel")),
    )(h, scale, shift)


# --------------------------------- DoubleConv ------------------------------------

@functools.partial(jax.jit, static_argnames=("residual",))
def double_conv(x, params, residual=False):
    """NHWC forward of the PyTorch DoubleConv module."""
    h, s1, q1 = conv3x3_gn_stats(x, params["w1"])
    h = _group_norm_apply(h, s1, q1, params["g1"], params["b1"], act="gelu")
    h, s2, q2 = conv3x3_gn_stats(h, params["w2"])
    if residual:
        return _group_norm_apply(h, s2, q2, params["g2"], params["b2"], residual=x)
    return _group_norm_apply(h, s2, q2, params["g2"], params["b2"], act="none")


# ----------------------------- reference & init ----------------------------------

def _ref_double_conv(x, p, residual=False):
    """Plain-JAX reference (exact-erf GELU, high-precision conv) for checking."""
    def conv(v, w):
        return jax.lax.conv_general_dilated(
            v, w, (1, 1), ((1, 1), (1, 1)),
            dimension_numbers=("NHWC", "HWIO", "NHWC"),
            precision=jax.lax.Precision.HIGHEST)

    def gn(v, g, b):
        mu = jnp.mean(v, axis=(1, 2, 3), keepdims=True)
        var = jnp.mean((v - mu) ** 2, axis=(1, 2, 3), keepdims=True)
        return (v - mu) * jax.lax.rsqrt(var + 1e-5) * g + b

    h = jax.nn.gelu(gn(conv(x, p["w1"]), p["g1"], p["b1"]), approximate=False)
    h = gn(conv(h, p["w2"]), p["g2"], p["b2"])
    return jax.nn.gelu(x + h, approximate=False) if residual else h


def init_double_conv(key, cin, cout, mid=None):
    mid = mid or cout
    k1, k2, k3, k4, k5, k6 = jax.random.split(key, 6)

    def conv_w(k, ci, co):
        bound = 1.0 / math.sqrt(ci * 9)
        return jax.random.uniform(k, (3, 3, ci, co), jnp.float32, -bound, bound)

    return dict(
        w1=conv_w(k1, cin, mid),
        g1=1.0 + 0.1 * jax.random.normal(k3, (mid,), jnp.float32),
        b1=0.1 * jax.random.normal(k4, (mid,), jnp.float32),
        w2=conv_w(k2, mid, cout),
        g2=1.0 + 0.1 * jax.random.normal(k5, (cout,), jnp.float32),
        b2=0.1 * jax.random.normal(k6, (cout,), jnp.float32),
    )


# ------------------------------------ main ----------------------------------------

if __name__ == "__main__":
    key = jax.random.PRNGKey(0)
    kx, kp1, kp2 = jax.random.split(key, 3)

    B, Cin, H, W, Cout = 2, 4, 16, 16, 16
    x_nchw = jax.random.normal(kx, (B, Cin, H, W), jnp.float32)
    p1 = init_double_conv(kp1, Cin, Cout)          # DoubleConv(4, 16)
    p2 = init_double_conv(kp2, Cout, Cout)         # DoubleConv(16, 16, residual=True)

    x = jnp.transpose(x_nchw, (0, 2, 3, 1))        # NCHW -> NHWC
    y1 = double_conv(x, p1, residual=False)
    y2 = double_conv(y1, p2, residual=True)
    y2 = jax.block_until_ready(y2)

    r1 = _ref_double_conv(x, p1, residual=False)
    r2 = _ref_double_conv(r1, p2, residual=True)

    assert y2.shape == (B, H, W, Cout), y2.shape
    assert bool(jnp.all(jnp.isfinite(y2)))
    err = float(jnp.max(jnp.abs(y2 - r2)))
    assert err < 2e-2, f"max abs err {err}"
    print("KERNEL_OK")
</pallas_src>

<mosaic_0001>
module attributes {stable_mosaic.version = 11 : i64} {
  func.func @kernel(%arg0: i32, %arg1: i32, %arg2: memref<1x16x18x8xf32, #tpu.memory_space<vmem>>, %arg3: memref<1x1x18x8xf32, #tpu.memory_space<vmem>>, %arg4: memref<1x1x18x8xf32, #tpu.memory_space<vmem>>, %arg5: memref<3x24x16xf32, #tpu.memory_space<vmem>>, %arg6: memref<1x16x16x16xf32, #tpu.memory_space<vmem>>, %arg7: memref<1x1x16xf32, #tpu.memory_space<vmem>>, %arg8: memref<1x1x16xf32, #tpu.memory_space<vmem>>) attributes {dimension_semantics = [#tpu.dimension_semantics<arbitrary>, #tpu.dimension_semantics<arbitrary>], iteration_bounds = array<i64: 2, 1>, scalar_prefetch = 0 : i64, scratch_operands = 0 : i64, tpu.core_type = #tpu.core_type<tc>, window_params = [{transform_indices = @transform_0, window_bounds = array<i64: 1, 16, 18, 8>}, {transform_indices = @transform_1, window_bounds = array<i64: 1, 1, 18, 8>}, {transform_indices = @transform_2, window_bounds = array<i64: 1, 1, 18, 8>}, {pipeline_mode = #tpu.pipeline_mode<synchronous>, transform_indices = @transform_3, window_bounds = array<i64: 3, 24, 16>}, {transform_indices = @transform_4, window_bounds = array<i64: 1, 16, 16, 16>}, {transform_indices = @transform_5, window_bounds = array<i64: 1, 1, 16>}, {transform_indices = @transform_6, window_bounds = array<i64: 1, 1, 16>}]} {
    %c0 = arith.constant 0 : index
    %c0_0 = arith.constant 0 : index
    %c0_1 = arith.constant 0 : index
    %c0_2 = arith.constant 0 : index
    %0 = vector.load %arg2[%c0, %c0_0, %c0_1, %c0_2] : memref<1x16x18x8xf32, #tpu.memory_space<vmem>>, vector<1x16x18x8xf32>
    %1 = vector.shape_cast %0 : vector<1x16x18x8xf32> to vector<16x18x8xf32>
    %c0_3 = arith.constant 0 : index
    %c0_4 = arith.constant 0 : index
    %c0_5 = arith.constant 0 : index
    %c0_6 = arith.constant 0 : index
    %2 = vector.load %arg3[%c0_3, %c0_4, %c0_5, %c0_6] : memref<1x1x18x8xf32, #tpu.memory_space<vmem>>, vector<1x1x18x8xf32>
    %3 = vector.shape_cast %2 : vector<1x1x18x8xf32> to vector<1x18x8xf32>
    %c0_7 = arith.constant 0 : index
    %c0_8 = arith.constant 0 : index
    %c0_9 = arith.constant 0 : index
    %c0_10 = arith.constant 0 : index
    %4 = vector.load %arg4[%c0_7, %c0_8, %c0_9, %c0_10] : memref<1x1x18x8xf32, #tpu.memory_space<vmem>>, vector<1x1x18x8xf32>
    %5 = vector.shape_cast %4 : vector<1x1x18x8xf32> to vector<1x18x8xf32>
    %6 = tpu.concatenate %1, %3, %5 in 0 : vector<16x18x8xf32>, vector<1x18x8xf32>, vector<1x18x8xf32> -> vector<18x18x8xf32>
    %cst = arith.constant 0.000000e+00 : f32
    %7 = vector.broadcast %cst : f32 to vector<256x16xf32>
    %8 = vector.extract_strided_slice %6 {offsets = [0, 0, 0], sizes = [16, 18, 8], strides = [1, 1, 1]} : vector<18x18x8xf32> to vector<16x18x8xf32>
    %9 = vector.extract_strided_slice %8 {offsets = [0, 0, 0], sizes = [16, 16, 8], strides = [1, 1, 1]} : vector<16x18x8xf32> to vector<16x16x8xf32>
    %10 = vector.extract_strided_slice %8 {offsets = [0, 1, 0], sizes = [16, 16, 8], strides = [1, 1, 1]} : vector<16x18x8xf32> to vector<16x16x8xf32>
    %11 = vector.extract_strided_slice %8 {offsets = [0, 2, 0], sizes = [16, 16, 8], strides = [1, 1, 1]} : vector<16x18x8xf32> to vector<16x16x8xf32>
    %12 = tpu.concatenate %9, %10, %11 in 2 : vector<16x16x8xf32>, vector<16x16x8xf32>, vector<16x16x8xf32> -> vector<16x16x24xf32>
    %13 = vector.shape_cast %12 : vector<16x16x24xf32> to vector<256x24xf32>
    %c0_11 = arith.constant 0 : index
    %c0_12 = arith.constant 0 : index
    %c0_13 = arith.constant 0 : index
    %14 = vector.load %arg5[%c0_11, %c0_12, %c0_13] : memref<3x24x16xf32, #tpu.memory_space<vmem>>, vector<1x24x16xf32>
    %15 = vector.shape_cast %14 : vector<1x24x16xf32> to vector<24x16xf32>
    %cst_14 = arith.constant dense<0.000000e+00> : vector<256x16xf32>
    %16 = tpu.matmul %13, %15, %cst_14 {dimension_numbers = #tpu.dot_dimension_numbers<[1], [0], [0], [1], [0, 0, 1, 1], [], []>} : vector<256x24xf32>, vector<24x16xf32>, vector<256x16xf32> -> vector<256x16xf32>
    %17 = arith.addf %7, %16 : vector<256x16xf32>
    %18 = vector.extract_strided_slice %6 {offsets = [1, 0, 0], sizes = [16, 18, 8], strides = [1, 1, 1]} : vector<18x18x8xf32> to vector<16x18x8xf32>
    %19 = vector.extract_strided_slice %18 {offsets = [0, 0, 0], sizes = [16, 16, 8], strides = [1, 1, 1]} : vector<16x18x8xf32> to vector<16x16x8xf32>
    %20 = vector.extract_strided_slice %18 {offsets = [0, 1, 0], sizes = [16, 16, 8], strides = [1, 1, 1]} : vector<16x18x8xf32> to vector<16x16x8xf32>
    %21 = vector.extract_strided_slice %18 {offsets = [0, 2, 0], sizes = [16, 16, 8], strides = [1, 1, 1]} : vector<16x18x8xf32> to vector<16x16x8xf32>
    %22 = tpu.concatenate %19, %20, %21 in 2 : vector<16x16x8xf32>, vector<16x16x8xf32>, vector<16x16x8xf32> -> vector<16x16x24xf32>
    %23 = vector.shape_cast %22 : vector<16x16x24xf32> to vector<256x24xf32>
    %c1 = arith.constant 1 : index
    %c0_15 = arith.constant 0 : index
    %c0_16 = arith.constant 0 : index
    %24 = vector.load %arg5[%c1, %c0_15, %c0_16] : memref<3x24x16xf32, #tpu.memory_space<vmem>>, vector<1x24x16xf32>
    %25 = vector.shape_cast %24 : vector<1x24x16xf32> to vector<24x16xf32>
    %cst_17 = arith.constant dense<0.000000e+00> : vector<256x16xf32>
    %26 = tpu.matmul %23, %25, %cst_17 {dimension_numbers = #tpu.dot_dimension_numbers<[1], [0], [0], [1], [0, 0, 1, 1], [], []>} : vector<256x24xf32>, vector<24x16xf32>, vector<256x16xf32> -> vector<256x16xf32>
    %27 = arith.addf %17, %26 : vector<256x16xf32>
    %28 = vector.extract_strided_slice %6 {offsets = [2, 0, 0], sizes = [16, 18, 8], strides = [1, 1, 1]} : vector<18x18x8xf32> to vector<16x18x8xf32>
    %29 = vector.extract_strided_slice %28 {offsets = [0, 0, 0], sizes = [16, 16, 8], strides = [1, 1, 1]} : vector<16x18x8xf32> to vector<16x16x8xf32>
    %30 = vector.extract_strided_slice %28 {offsets = [0, 1, 0], sizes = [16, 16, 8], strides = [1, 1, 1]} : vector<16x18x8xf32> to vector<16x16x8xf32>
    %31 = vector.extract_strided_slice %28 {offsets = [0, 2, 0], sizes = [16, 16, 8], strides = [1, 1, 1]} : vector<16x18x8xf32> to vector<16x16x8xf32>
    %32 = tpu.concatenate %29, %30, %31 in 2 : vector<16x16x8xf32>, vector<16x16x8xf32>, vector<16x16x8xf32> -> vector<16x16x24xf32>
    %33 = vector.shape_cast %32 : vector<16x16x24xf32> to vector<256x24xf32>
    %c2 = arith.constant 2 : index
    %c0_18 = arith.constant 0 : index
    %c0_19 = arith.constant 0 : index
    %34 = vector.load %arg5[%c2, %c0_18, %c0_19] : memref<3x24x16xf32, #tpu.memory_space<vmem>>, vector<1x24x16xf32>
    %35 = vector.shape_cast %34 : vector<1x24x16xf32> to vector<24x16xf32>
    %cst_20 = arith.constant dense<0.000000e+00> : vector<256x16xf32>
    %36 = tpu.matmul %33, %35, %cst_20 {dimension_numbers = #tpu.dot_dimension_numbers<[1], [0], [0], [1], [0, 0, 1, 1], [], []>} : vector<256x24xf32>, vector<24x16xf32>, vector<256x16xf32> -> vector<256x16xf32>
    %37 = arith.addf %27, %36 : vector<256x16xf32>
    %38 = vector.shape_cast %37 : vector<256x16xf32> to vector<16x16x16xf32>
    %c0_21 = arith.constant 0 : index
    %c0_22 = arith.constant 0 : index
    %c0_23 = arith.constant 0 : index
    %c0_24 = arith.constant 0 : index
    %39 = vector.load %arg6[%c0_21, %c0_22, %c0_23, %c0_24] : memref<1x16x16x16xf32, #tpu.memory_space<vmem>>, vector<1x16x16x16xf32>
    %40 = vector.shape_cast %39 : vector<1x16x16x16xf32> to vector<16x16x16xf32>
    %41 = vector.shape_cast %38 : vector<16x16x16xf32> to vector<1x16x16x16xf32>
    tpu.vector_store %arg6[%c0_21, %c0_22, %c0_23, %c0_24], %41 {strides = array<i32>} : memref<1x16x16x16xf32, #tpu.memory_space<vmem>>, vector<1x16x16x16xf32>,
    %c0_i32 = arith.constant 0 : i32
    %42 = arith.cmpi eq, %arg1, %c0_i32 : i32
    %43 = arith.extui %42 : i1 to i32
    %c0_i32_25 = arith.constant 0 : i32
    %44 = arith.cmpi ne, %43, %c0_i32_25 : i32
    scf.if %44 {
      %cst_40 = arith.constant 0.000000e+00 : f32
      %58 = vector.broadcast %cst_40 : f32 to vector<1x1x16xf32>
      %c0_41 = arith.constant 0 : index
      %c0_42 = arith.constant 0 : index
      %c0_43 = arith.constant 0 : index
      %59 = vector.load %arg7[%c0_41, %c0_42, %c0_43] : memref<1x1x16xf32, #tpu.memory_space<vmem>>, vector<1x1x16xf32>
      tpu.vector_store %arg7[%c0_41, %c0_42, %c0_43], %58 {strides = array<i32>} : memref<1x1x16xf32, #tpu.memory_space<vmem>>, vector<1x1x16xf32>,
      %cst_44 = arith.constant 0.000000e+00 : f32
      %60 = vector.broadcast %cst_44 : f32 to vector<1x1x16xf32>
      %c0_45 = arith.constant 0 : index
      %c0_46 = arith.constant 0 : index
      %c0_47 = arith.constant 0 : index
      %61 = vector.load %arg8[%c0_45, %c0_46, %c0_47] : memref<1x1x16xf32, #tpu.memory_space<vmem>>, vector<1x1x16xf32>
      tpu.vector_store %arg8[%c0_45, %c0_46, %c0_47], %60 {strides = array<i32>} : memref<1x1x16xf32, #tpu.memory_space<vmem>>, vector<1x1x16xf32>,
    } else {
    }
    %cst_26 = arith.constant dense<0.000000e+00> : vector<16xf32>
    %45 = vector.multi_reduction <add>, %37, %cst_26 [0] : vector<256x16xf32> to vector<16xf32>
    %46 = vector.shape_cast %45 : vector<16xf32> to vector<1x16xf32>
    %47 = arith.mulf %37, %37 : vector<256x16xf32>
    %cst_27 = arith.constant dense<0.000000e+00> : vector<16xf32>
    %48 = vector.multi_reduction <add>, %47, %cst_27 [0] : vector<256x16xf32> to vector<16xf32>
    %49 = vector.shape_cast %48 : vector<16xf32> to vector<1x16xf32>
    %c0_28 = arith.constant 0 : index
    %c0_29 = arith.constant 0 : index
    %c0_30 = arith.constant 0 : index
    %50 = vector.load %arg7[%c0_28, %c0_29, %c0_30] : memref<1x1x16xf32, #tpu.memory_space<vmem>>, vector<1x1x16xf32>
    %51 = vector.shape_cast %46 : vector<1x16xf32> to vector<1x1x16xf32>
    %52 = arith.addf %50, %51 : vector<1x1x16xf32>
    %c0_31 = arith.constant 0 : index
    %c0_32 = arith.constant 0 : index
    %c0_33 = arith.constant 0 : index
    %53 = vector.load %arg7[%c0_31, %c0_32, %c0_33] : memref<1x1x16xf32, #tpu.memory_space<vmem>>, vector<1x1x16xf32>
    tpu.vector_store %arg7[%c0_31, %c0_32, %c0_33], %52 {strides = array<i32>} : memref<1x1x16xf32, #tpu.memory_space<vmem>>, vector<1x1x16xf32>,
    %c0_34 = arith.constant 0 : index
    %c0_35 = arith.constant 0 : index
    %c0_36 = arith.constant 0 : index
    %54 = vector.load %arg8[%c0_34, %c0_35, %c0_36] : memref<1x1x16xf32, #tpu.memory_space<vmem>>, vector<1x1x16xf32>
    %55 = vector.shape_cast %49 : vector<1x16xf32> to vector<1x1x16xf32>
    %56 = arith.addf %54, %55 : vector<1x1x16xf32>
    %c0_37 = arith.constant 0 : index
    %c0_38 = arith.constant 0 : index
    %c0_39 = arith.constant 0 : index
    %57 = vector.load %arg8[%c0_37, %c0_38, %c0_39] : memref<1x1x16xf32, #tpu.memory_space<vmem>>, vector<1x1x16xf32>
    tpu.vector_store %arg8[%c0_37, %c0_38, %c0_39], %56 {strides = array<i32>} : memref<1x1x16xf32, #tpu.memory_space<vmem>>, vector<1x1x16xf32>,
    return
  }
  func.func @transform_0(%arg0: i32, %arg1: i32) -> (i32, i32, i32, i32) {
    %c0_i32 = arith.constant 0 : i32
    %c0_i32_0 = arith.constant 0 : i32
    %c0_i32_1 = arith.constant 0 : i32
    return %arg0, %arg1, %c0_i32, %c0_i32_0 : i32, i32, i32, i32
  }
  func.func @transform_1(%arg0: i32, %arg1: i32) -> (i32, i32, i32, i32) {
    %c16_i32 = arith.constant 16 : i32
    %0 = arith.muli %arg1, %c16_i32 : i32
    %c16_i32_0 = arith.constant 16 : i32
    %1 = arith.addi %0, %c16_i32_0 : i32
    %c0_i32 = arith.constant 0 : i32
    %c0_i32_1 = arith.constant 0 : i32
    %c0_i32_2 = arith.constant 0 : i32
    return %arg0, %1, %c0_i32, %c0_i32_1 : i32, i32, i32, i32
  }
  func.func @transform_2(%arg0: i32, %arg1: i32) -> (i32, i32, i32, i32) {
    %c16_i32 = arith.constant 16 : i32
    %0 = arith.muli %arg1, %c16_i32 : i32
    %c16_i32_0 = arith.constant 16 : i32
    %1 = arith.addi %0, %c16_i32_0 : i32
    %c1_i32 = arith.constant 1 : i32
    %2 = arith.addi %1, %c1_i32 : i32
    %c0_i32 = arith.constant 0 : i32
    %c0_i32_1 = arith.constant 0 : i32
    %c0_i32_2 = arith.constant 0 : i32
    return %arg0, %2, %c0_i32, %c0_i32_1 : i32, i32, i32, i32
  }
  func.func @transform_3(%arg0: i32, %arg1: i32) -> (i32, i32, i32) {
    %c0_i32 = arith.constant 0 : i32
    %c0_i32_0 = arith.constant 0 : i32
    %c0_i32_1 = arith.constant 0 : i32
    %c0_i32_2 = arith.constant 0 : i32
    return %c0_i32, %c0_i32_0, %c0_i32_1 : i32, i32, i32
  }
  func.func @transform_4(%arg0: i32, %arg1: i32) -> (i32, i32, i32, i32) {
    %c0_i32 = arith.constant 0 : i32
    %c0_i32_0 = arith.constant 0 : i32
    %c0_i32_1 = arith.constant 0 : i32
    return %arg0, %arg1, %c0_i32, %c0_i32_0 : i32, i32, i32, i32
  }
  func.func @transform_5(%arg0: i32, %arg1: i32) -> (i32, i32, i32) {
    %c0_i32 = arith.constant 0 : i32
    %c0_i32_0 = arith.constant 0 : i32
    %c0_i32_1 = arith.constant 0 : i32
    return %arg0, %c0_i32, %c0_i32_0 : i32, i32, i32
  }
  func.func @transform_6(%arg0: i32, %arg1: i32) -> (i32, i32, i32) {
    %c0_i32 = arith.constant 0 : i32
    %c0_i32_0 = arith.constant 0 : i32
    %c0_i32_1 = arith.constant 0 : i32
    return %arg0, %c0_i32, %c0_i32_0 : i32, i32, i32
  }
}

module attributes {stable_mosaic.version = 11 : i64} {
  func.func @kernel(%arg0: i32, %arg1: i32, %arg2: memref<1x16x16x16xf32, #tpu.memory_space<vmem>>, %arg3: memref<1x1x1x16xf32, #tpu.memory_space<vmem>>, %arg4: memref<1x1x1x16xf32, #tpu.memory_space<vmem>>, %arg5: memref<1x16x16x16xf32, #tpu.memory_space<vmem>>) attributes {dimension_semantics = [#tpu.dimension_semantics<parallel>, #tpu.dimension_semantics<parallel>], iteration_bounds = array<i64: 2, 1>, scalar_prefetch = 0 : i64, scratch_operands = 0 : i64, tpu.core_type = #tpu.core_type<tc>, window_params = [{transform_indices = @transform_0, window_bounds = array<i64: 1, 16, 16, 16>}, {transform_indices = @transform_1, window_bounds = array<i64: 1, 1, 1, 16>}, {transform_indices = @transform_2, window_bounds = array<i64: 1, 1, 1, 16>}, {transform_indices = @transform_3, window_bounds = array<i64: 1, 16, 16, 16>}]} {
    %c0 = arith.constant 0 : index
    %c0_0 = arith.constant 0 : index
    %c0_1 = arith.constant 0 : index
    %c0_2 = arith.constant 0 : index
    %0 = vector.load %arg2[%c0, %c0_0, %c0_1, %c0_2] : memref<1x16x16x16xf32, #tpu.memory_space<vmem>>, vector<1x16x16x16xf32>
    %c0_3 = arith.constant 0 : index
    %c0_4 = arith.constant 0 : index
    %c0_5 = arith.constant 0 : index
    %c0_6 = arith.constant 0 : index
    %1 = vector.load %arg3[%c0_3, %c0_4, %c0_5, %c0_6] : memref<1x1x1x16xf32, #tpu.memory_space<vmem>>, vector<1x1x1x16xf32>
    %2 = vector.broadcast %1 : vector<1x1x1x16xf32> to vector<1x16x16x16xf32>
    %3 = arith.mulf %0, %2 : vector<1x16x16x16xf32>
    %c0_7 = arith.constant 0 : index
    %c0_8 = arith.constant 0 : index
    %c0_9 = arith.constant 0 : index
    %c0_10 = arith.constant 0 : index
    %4 = vector.load %arg4[%c0_7, %c0_8, %c0_9, %c0_10] : memref<1x1x1x16xf32, #tpu.memory_space<vmem>>, vector<1x1x1x16xf32>
    %5 = vector.broadcast %4 : vector<1x1x1x16xf32> to vector<1x16x16x16xf32>
    %6 = arith.addf %3, %5 : vector<1x16x16x16xf32>
    %cst = arith.constant 5.000000e-01 : f32
    %7 = vector.broadcast %cst : f32 to vector<1x16x16x16xf32>
    %8 = arith.mulf %7, %6 : vector<1x16x16x16xf32>
    %cst_11 = arith.constant 0.707106769 : f32
    %9 = vector.broadcast %cst_11 : f32 to vector<1x16x16x16xf32>
    %10 = arith.mulf %6, %9 : vector<1x16x16x16xf32>
    %cst_12 = arith.constant 0.000000e+00 : f32
    %11 = vector.broadcast %cst_12 : f32 to vector<1x16x16x16xf32>
    %12 = arith.cmpf oge, %10, %11 : vector<1x16x16x16xf32>
    %cst_13 = arith.constant 1.000000e+00 : f32
    %cst_14 = arith.constant -1.000000e+00 : f32
    %13 = vector.broadcast %cst_13 : f32 to vector<1x16x16x16xf32>
    %14 = vector.broadcast %cst_14 : f32 to vector<1x16x16x16xf32>
    %15 = arith.select %12, %13, %14 : vector<1x16x16x16xi1>, vector<1x16x16x16xf32>
    %16 = math.absf %10 : vector<1x16x16x16xf32>
    %cst_15 = arith.constant 0.327591091 : f32
    %17 = vector.broadcast %cst_15 : f32 to vector<1x16x16x16xf32>
    %18 = arith.mulf %17, %16 : vector<1x16x16x16xf32>
    %cst_16 = arith.constant 1.000000e+00 : f32
    %19 = vector.broadcast %cst_16 : f32 to vector<1x16x16x16xf32>
    %20 = arith.addf %19, %18 : vector<1x16x16x16xf32>
    %cst_17 = arith.constant 1.000000e+00 : f32
    %21 = vector.broadcast %cst_17 : f32 to vector<1x16x16x16xf32>
    %22 = arith.divf %21, %20 : vector<1x16x16x16xf32>
    %cst_18 = arith.constant 1.06140542 : f32
    %23 = vector.broadcast %cst_18 : f32 to vector<1x16x16x16xf32>
    %24 = arith.mulf %23, %22 : vector<1x16x16x16xf32>
    %cst_19 = arith.constant -1.45315206 : f32
    %25 = vector.broadcast %cst_19 : f32 to vector<1x16x16x16xf32>
    %26 = arith.addf %24, %25 : vector<1x16x16x16xf32>
    %27 = arith.mulf %26, %22 : vector<1x16x16x16xf32>
    %cst_20 = arith.constant 1.42141378 : f32
    %28 = vector.broadcast %cst_20 : f32 to vector<1x16x16x16xf32>
    %29 = arith.addf %27, %28 : vector<1x16x16x16xf32>
    %30 = arith.mulf %29, %22 : vector<1x16x16x16xf32>
    %cst_21 = arith.constant -0.284496725 : f32
    %31 = vector.broadcast %cst_21 : f32 to vector<1x16x16x16xf32>
    %32 = arith.addf %30, %31 : vector<1x16x16x16xf32>
    %33 = arith.mulf %32, %22 : vector<1x16x16x16xf32>
    %cst_22 = arith.constant 0.254829586 : f32
    %34 = vector.broadcast %cst_22 : f32 to vector<1x16x16x16xf32>
    %35 = arith.addf %33, %34 : vector<1x16x16x16xf32>
    %36 = arith.mulf %35, %22 : vector<1x16x16x16xf32>
    %cst_23 = arith.constant 0.000000e+00 : f32
    %37 = vector.broadcast %cst_23 : f32 to vector<1x16x16x16xf32>
    %38 = arith.subf %37, %16 : vector<1x16x16x16xf32>
    %39 = arith.mulf %38, %16 : vector<1x16x16x16xf32>
    %40 = math.exp %39 : vector<1x16x16x16xf32>
    %41 = arith.mulf %36, %40 : vector<1x16x16x16xf32>
    %cst_24 = arith.constant 1.000000e+00 : f32
    %42 = vector.broadcast %cst_24 : f32 to vector<1x16x16x16xf32>
    %43 = arith.subf %42, %41 : vector<1x16x16x16xf32>
    %44 = arith.mulf %15, %43 : vector<1x16x16x16xf32>
    %cst_25 = arith.constant 1.000000e+00 : f32
    %45 = vector.broadcast %cst_25 : f32 to vector<1x16x16x16xf32>
    %46 = arith.addf %45, %44 : vector<1x16x16x16xf32>
    %47 = arith.mulf %8, %46 : vector<1x16x16x16xf32>
    %c0_26 = arith.constant 0 : index
    %c0_27 = arith.constant 0 : index
    %c0_28 = arith.constant 0 : index
    %c0_29 = arith.constant 0 : index
    %48 = vector.load %arg5[%c0_26, %c0_27, %c0_28, %c0_29] : memref<1x16x16x16xf32, #tpu.memory_space<vmem>>, vector<1x16x16x16xf32>
    tpu.vector_store %arg5[%c0_26, %c0_27, %c0_28, %c0_29], %47 {strides = array<i32>} : memref<1x16x16x16xf32, #tpu.memory_space<vmem>>, vector<1x16x16x16xf32>,
    return
  }
  func.func @transform_0(%arg0: i32, %arg1: i32) -> (i32, i32, i32, i32) {
    %c0_i32 = arith.constant 0 : i32
    %c0_i32_0 = arith.constant 0 : i32
    %c0_i32_1 = arith.constant 0 : i32
    return %arg0, %arg1, %c0_i32, %c0_i32_0 : i32, i32, i32, i32
  }
  func.func @transform_1(%arg0: i32, %arg1: i32) -> (i32, i32, i32, i32) {
    %c0_i32 = arith.constant 0 : i32
    %c0_i32_0 = arith.constant 0 : i32
    %c0_i32_1 = arith.constant 0 : i32
    %c0_i32_2 = arith.constant 0 : i32
    return %arg0, %c0_i32, %c0_i32_0, %c0_i32_1 : i32, i32, i32, i32
  }
  func.func @transform_2(%arg0: i32, %arg1: i32) -> (i32, i32, i32, i32) {
    %c0_i32 = arith.constant 0 : i32
    %c0_i32_0 = arith.constant 0 : i32
    %c0_i32_1 = arith.constant 0 : i32
    %c0_i32_2 = arith.constant 0 : i32
    return %arg0, %c0_i32, %c0_i32_0, %c0_i32_1 : i32, i32, i32, i32
  }
  func.func @transform_3(%arg0: i32, %arg1: i32) -> (i32, i32, i32, i32) {
    %c0_i32 = arith.constant 0 : i32
    %c0_i32_0 = arith.constant 0 : i32
    %c0_i32_1 = arith.constant 0 : i32
    return %arg0, %arg1, %c0_i32, %c0_i32_0 : i32, i32, i32, i32
  }
}

module attributes {stable_mosaic.version = 11 : i64} {
  func.func @kernel(%arg0: i32, %arg1: i32, %arg2: memref<1x16x18x16xf32, #tpu.memory_space<vmem>>, %arg3: memref<1x1x18x16xf32, #tpu.memory_space<vmem>>, %arg4: memref<1x1x18x16xf32, #tpu.memory_space<vmem>>, %arg5: memref<3x48x16xf32, #tpu.memory_space<vmem>>, %arg6: memref<1x16x16x16xf32, #tpu.memory_space<vmem>>, %arg7: memref<1x1x16xf32, #tpu.memory_space<vmem>>, %arg8: memref<1x1x16xf32, #tpu.memory_space<vmem>>) attributes {dimension_semantics = [#tpu.dimension_semantics<arbitrary>, #tpu.dimension_semantics<arbitrary>], iteration_bounds = array<i64: 2, 1>, scalar_prefetch = 0 : i64, scratch_operands = 0 : i64, tpu.core_type = #tpu.core_type<tc>, window_params = [{transform_indices = @transform_0, window_bounds = array<i64: 1, 16, 18, 16>}, {transform_indices = @transform_1, window_bounds = array<i64: 1, 1, 18, 16>}, {transform_indices = @transform_2, window_bounds = array<i64: 1, 1, 18, 16>}, {pipeline_mode = #tpu.pipeline_mode<synchronous>, transform_indices = @transform_3, window_bounds = array<i64: 3, 48, 16>}, {transform_indices = @transform_4, window_bounds = array<i64: 1, 16, 16, 16>}, {transform_indices = @transform_5, window_bounds = array<i64: 1, 1, 16>}, {transform_indices = @transform_6, window_bounds = array<i64: 1, 1, 16>}]} {
    %c0 = arith.constant 0 : index
    %c0_0 = arith.constant 0 : index
    %c0_1 = arith.constant 0 : index
    %c0_2 = arith.constant 0 : index
    %0 = vector.load %arg2[%c0, %c0_0, %c0_1, %c0_2] : memref<1x16x18x16xf32, #tpu.memory_space<vmem>>, vector<1x16x18x16xf32>
    %1 = vector.shape_cast %0 : vector<1x16x18x16xf32> to vector<16x18x16xf32>
    %c0_3 = arith.constant 0 : index
    %c0_4 = arith.constant 0 : index
    %c0_5 = arith.constant 0 : index
    %c0_6 = arith.constant 0 : index
    %2 = vector.load %arg3[%c0_3, %c0_4, %c0_5, %c0_6] : memref<1x1x18x16xf32, #tpu.memory_space<vmem>>, vector<1x1x18x16xf32>
    %3 = vector.shape_cast %2 : vector<1x1x18x16xf32> to vector<1x18x16xf32>
    %c0_7 = arith.constant 0 : index
    %c0_8 = arith.constant 0 : index
    %c0_9 = arith.constant 0 : index
    %c0_10 = arith.constant 0 : index
    %4 = vector.load %arg4[%c0_7, %c0_8, %c0_9, %c0_10] : memref<1x1x18x16xf32, #tpu.memory_space<vmem>>, vector<1x1x18x16xf32>
    %5 = vector.shape_cast %4 : vector<1x1x18x16xf32> to vector<1x18x16xf32>
    %6 = tpu.concatenate %1, %3, %5 in 0 : vector<16x18x16xf32>, vector<1x18x16xf32>, vector<1x18x16xf32> -> vector<18x18x16xf32>
    %cst = arith.constant 0.000000e+00 : f32
    %7 = vector.broadcast %cst : f32 to vector<256x16xf32>
    %8 = vector.extract_strided_slice %6 {offsets = [0, 0, 0], sizes = [16, 18, 16], strides = [1, 1, 1]} : vector<18x18x16xf32> to vector<16x18x16xf32>
    %9 = vector.extract_strided_slice %8 {offsets = [0, 0, 0], sizes = [16, 16, 16], strides = [1, 1, 1]} : vector<16x18x16xf32> to vector<16x16x16xf32>
    %10 = vector.extract_strided_slice %8 {offsets = [0, 1, 0], sizes = [16, 16, 16], strides = [1, 1, 1]} : vector<16x18x16xf32> to vector<16x16x16xf32>
    %11 = vector.extract_strided_slice %8 {offsets = [0, 2, 0], sizes = [16, 16, 16], strides = [1, 1, 1]} : vector<16x18x16xf32> to vector<16x16x16xf32>
    %12 = tpu.concatenate %9, %10, %11 in 2 : vector<16x16x16xf32>, vector<16x16x16xf32>, vector<16x16x16xf32> -> vector<16x16x48xf32>
    %13 = vector.shape_cast %12 : vector<16x16x48xf32> to vector<256x48xf32>
    %c0_11 = arith.constant 0 : index
    %c0_12 = arith.constant 0 : index
    %c0_13 = arith.constant 0 : index
    %14 = vector.load %arg5[%c0_11, %c0_12, %c0_13] : memref<3x48x16xf32, #tpu.memory_space<vmem>>, vector<1x48x16xf32>
    %15 = vector.shape_cast %14 : vector<1x48x16xf32> to vector<48x16xf32>
    %cst_14 = arith.constant dense<0.000000e+00> : vector<256x16xf32>
    %16 = tpu.matmul %13, %15, %cst_14 {dimension_numbers = #tpu.dot_dimension_numbers<[1], [0], [0], [1], [0, 0, 1, 1], [], []>} : vector<256x48xf32>, vector<48x16xf32>, vector<256x16xf32> -> vector<256x16xf32>
    %17 = arith.addf %7, %16 : vector<256x16xf32>
    %18 = vector.extract_strided_slice %6 {offsets = [1, 0, 0], sizes = [16, 18, 16], strides = [1, 1, 1]} : vector<18x18x16xf32> to vector<16x18x16xf32>
    %19 = vector.extract_strided_slice %18 {offsets = [0, 0, 0], sizes = [16, 16, 16], strides = [1, 1, 1]} : vector<16x18x16xf32> to vector<16x16x16xf32>
    %20 = vector.extract_strided_slice %18 {offsets = [0, 1, 0], sizes = [16, 16, 16], strides = [1, 1, 1]} : vector<16x18x16xf32> to vector<16x16x16xf32>
    %21 = vector.extract_strided_slice %18 {offsets = [0, 2, 0], sizes = [16, 16, 16], strides = [1, 1, 1]} : vector<16x18x16xf32> to vector<16x16x16xf32>
    %22 = tpu.concatenate %19, %20, %21 in 2 : vector<16x16x16xf32>, vector<16x16x16xf32>, vector<16x16x16xf32> -> vector<16x16x48xf32>
    %23 = vector.shape_cast %22 : vector<16x16x48xf32> to vector<256x48xf32>
    %c1 = arith.constant 1 : index
    %c0_15 = arith.constant 0 : index
    %c0_16 = arith.constant 0 : index
    %24 = vector.load %arg5[%c1, %c0_15, %c0_16] : memref<3x48x16xf32, #tpu.memory_space<vmem>>, vector<1x48x16xf32>
    %25 = vector.shape_cast %24 : vector<1x48x16xf32> to vector<48x16xf32>
    %cst_17 = arith.constant dense<0.000000e+00> : vector<256x16xf32>
    %26 = tpu.matmul %23, %25, %cst_17 {dimension_numbers = #tpu.dot_dimension_numbers<[1], [0], [0], [1], [0, 0, 1, 1], [], []>} : vector<256x48xf32>, vector<48x16xf32>, vector<256x16xf32> -> vector<256x16xf32>
    %27 = arith.addf %17, %26 : vector<256x16xf32>
    %28 = vector.extract_strided_slice %6 {offsets = [2, 0, 0], sizes = [16, 18, 16], strides = [1, 1, 1]} : vector<18x18x16xf32> to vector<16x18x16xf32>
    %29 = vector.extract_strided_slice %28 {offsets = [0, 0, 0], sizes = [16, 16, 16], strides = [1, 1, 1]} : vector<16x18x16xf32> to vector<16x16x16xf32>
    %30 = vector.extract_strided_slice %28 {offsets = [0, 1, 0], sizes = [16, 16, 16], strides = [1, 1, 1]} : vector<16x18x16xf32> to vector<16x16x16xf32>
    %31 = vector.extract_strided_slice %28 {offsets = [0, 2, 0], sizes = [16, 16, 16], strides = [1, 1, 1]} : vector<16x18x16xf32> to vector<16x16x16xf32>
    %32 = tpu.concatenate %29, %30, %31 in 2 : vector<16x16x16xf32>, vector<16x16x16xf32>, vector<16x16x16xf32> -> vector<16x16x48xf32>
    %33 = vector.shape_cast %32 : vector<16x16x48xf32> to vector<256x48xf32>
    %c2 = arith.constant 2 : index
    %c0_18 = arith.constant 0 : index
    %c0_19 = arith.constant 0 : index
    %34 = vector.load %arg5[%c2, %c0_18, %c0_19] : memref<3x48x16xf32, #tpu.memory_space<vmem>>, vector<1x48x16xf32>
    %35 = vector.shape_cast %34 : vector<1x48x16xf32> to vector<48x16xf32>
    %cst_20 = arith.constant dense<0.000000e+00> : vector<256x16xf32>
    %36 = tpu.matmul %33, %35, %cst_20 {dimension_numbers = #tpu.dot_dimension_numbers<[1], [0], [0], [1], [0, 0, 1, 1], [], []>} : vector<256x48xf32>, vector<48x16xf32>, vector<256x16xf32> -> vector<256x16xf32>
    %37 = arith.addf %27, %36 : vector<256x16xf32>
    %38 = vector.shape_cast %37 : vector<256x16xf32> to vector<16x16x16xf32>
    %c0_21 = arith.constant 0 : index
    %c0_22 = arith.constant 0 : index
    %c0_23 = arith.constant 0 : index
    %c0_24 = arith.constant 0 : index
    %39 = vector.load %arg6[%c0_21, %c0_22, %c0_23, %c0_24] : memref<1x16x16x16xf32, #tpu.memory_space<vmem>>, vector<1x16x16x16xf32>
    %40 = vector.shape_cast %39 : vector<1x16x16x16xf32> to vector<16x16x16xf32>
    %41 = vector.shape_cast %38 : vector<16x16x16xf32> to vector<1x16x16x16xf32>
    tpu.vector_store %arg6[%c0_21, %c0_22, %c0_23, %c0_24], %41 {strides = array<i32>} : memref<1x16x16x16xf32, #tpu.memory_space<vmem>>, vector<1x16x16x16xf32>,
    %c0_i32 = arith.constant 0 : i32
    %42 = arith.cmpi eq, %arg1, %c0_i32 : i32
    %43 = arith.extui %42 : i1 to i32
    %c0_i32_25 = arith.constant 0 : i32
    %44 = arith.cmpi ne, %43, %c0_i32_25 : i32
    scf.if %44 {
      %cst_40 = arith.constant 0.000000e+00 : f32
      %58 = vector.broadcast %cst_40 : f32 to vector<1x1x16xf32>
      %c0_41 = arith.constant 0 : index
      %c0_42 = arith.constant 0 : index
      %c0_43 = arith.constant 0 : index
      %59 = vector.load %arg7[%c0_41, %c0_42, %c0_43] : memref<1x1x16xf32, #tpu.memory_space<vmem>>, vector<1x1x16xf32>
      tpu.vector_store %arg7[%c0_41, %c0_42, %c0_43], %58 {strides = array<i32>} : memref<1x1x16xf32, #tpu.memory_space<vmem>>, vector<1x1x16xf32>,
      %cst_44 = arith.constant 0.000000e+00 : f32
      %60 = vector.broadcast %cst_44 : f32 to vector<1x1x16xf32>
      %c0_45 = arith.constant 0 : index
      %c0_46 = arith.constant 0 : index
      %c0_47 = arith.constant 0 : index
      %61 = vector.load %arg8[%c0_45, %c0_46, %c0_47] : memref<1x1x16xf32, #tpu.memory_space<vmem>>, vector<1x1x16xf32>
      tpu.vector_store %arg8[%c0_45, %c0_46, %c0_47], %60 {strides = array<i32>} : memref<1x1x16xf32, #tpu.memory_space<vmem>>, vector<1x1x16xf32>,
    } else {
    }
    %cst_26 = arith.constant dense<0.000000e+00> : vector<16xf32>
    %45 = vector.multi_reduction <add>, %37, %cst_26 [0] : vector<256x16xf32> to vector<16xf32>
    %46 = vector.shape_cast %45 : vector<16xf32> to vector<1x16xf32>
    %47 = arith.mulf %37, %37 : vector<256x16xf32>
    %cst_27 = arith.constant dense<0.000000e+00> : vector<16xf32>
    %48 = vector.multi_reduction <add>, %47, %cst_27 [0] : vector<256x16xf32> to vector<16xf32>
    %49 = vector.shape_cast %48 : vector<16xf32> to vector<1x16xf32>
    %c0_28 = arith.constant 0 : index
    %c0_29 = arith.constant 0 : index
    %c0_30 = arith.constant 0 : index
    %50 = vector.load %arg7[%c0_28, %c0_29, %c0_30] : memref<1x1x16xf32, #tpu.memory_space<vmem>>, vector<1x1x16xf32>
    %51 = vector.shape_cast %46 : vector<1x16xf32> to vector<1x1x16xf32>
    %52 = arith.addf %50, %51 : vector<1x1x16xf32>
    %c0_31 = arith.constant 0 : index
    %c0_32 = arith.constant 0 : index
    %c0_33 = arith.constant 0 : index
    %53 = vector.load %arg7[%c0_31, %c0_32, %c0_33] : memref<1x1x16xf32, #tpu.memory_space<vmem>>, vector<1x1x16xf32>
    tpu.vector_store %arg7[%c0_31, %c0_32, %c0_33], %52 {strides = array<i32>} : memref<1x1x16xf32, #tpu.memory_space<vmem>>, vector<1x1x16xf32>,
    %c0_34 = arith.constant 0 : index
    %c0_35 = arith.constant 0 : index
    %c0_36 = arith.constant 0 : index
    %54 = vector.load %arg8[%c0_34, %c0_35, %c0_36] : memref<1x1x16xf32, #tpu.memory_space<vmem>>, vector<1x1x16xf32>
    %55 = vector.shape_cast %49 : vector<1x16xf32> to vector<1x1x16xf32>
    %56 = arith.addf %54, %55 : vector<1x1x16xf32>
    %c0_37 = arith.constant 0 : index
    %c0_38 = arith.constant 0 : index
    %c0_39 = arith.constant 0 : index
    %57 = vector.load %arg8[%c0_37, %c0_38, %c0_39] : memref<1x1x16xf32, #tpu.memory_space<vmem>>, vector<1x1x16xf32>
    tpu.vector_store %arg8[%c0_37, %c0_38, %c0_39], %56 {strides = array<i32>} : memref<1x1x16xf32, #tpu.memory_space<vmem>>, vector<1x1x16xf32>,
    return
  }
  func.func @transform_0(%arg0: i32, %arg1: i32) -> (i32, i32, i32, i32) {
    %c0_i32 = arith.constant 0 : i32
    %c0_i32_0 = arith.constant 0 : i32
    %c0_i32_1 = arith.constant 0 : i32
    return %arg0, %arg1, %c0_i32, %c0_i32_0 : i32, i32, i32, i32
  }
  func.func @transform_1(%arg0: i32, %arg1: i32) -> (i32, i32, i32, i32) {
    %c16_i32 = arith.constant 16 : i32
    %0 = arith.muli %arg1, %c16_i32 : i32
    %c16_i32_0 = arith.constant 16 : i32
    %1 = arith.addi %0, %c16_i32_0 : i32
    %c0_i32 = arith.constant 0 : i32
    %c0_i32_1 = arith.constant 0 : i32
    %c0_i32_2 = arith.constant 0 : i32
    return %arg0, %1, %c0_i32, %c0_i32_1 : i32, i32, i32, i32
  }
  func.func @transform_2(%arg0: i32, %arg1: i32) -> (i32, i32, i32, i32) {
    %c16_i32 = arith.constant 16 : i32
    %0 = arith.muli %arg1, %c16_i32 : i32
    %c16_i32_0 = arith.constant 16 : i32
    %1 = arith.addi %0, %c16_i32_0 : i32
    %c1_i32 = arith.constant 1 : i32
    %2 = arith.addi %1, %c1_i32 : i32
    %c0_i32 = arith.constant 0 : i32
    %c0_i32_1 = arith.constant 0 : i32
    %c0_i32_2 = arith.constant 0 : i32
    return %arg0, %2, %c0_i32, %c0_i32_1 : i32, i32, i32, i32
  }
  func.func @transform_3(%arg0: i32, %arg1: i32) -> (i32, i32, i32) {
    %c0_i32 = arith.constant 0 : i32
    %c0_i32_0 = arith.constant 0 : i32
    %c0_i32_1 = arith.constant 0 : i32
    %c0_i32_2 = arith.constant 0 : i32
    return %c0_i32, %c0_i32_0, %c0_i32_1 : i32, i32, i32
  }
  func.func @transform_4(%arg0: i32, %arg1: i32) -> (i32, i32, i32, i32) {
    %c0_i32 = arith.constant 0 : i32
    %c0_i32_0 = arith.constant 0 : i32
    %c0_i32_1 = arith.constant 0 : i32
    return %arg0, %arg1, %c0_i32, %c0_i32_0 : i32, i32, i32, i32
  }
  func.func @transform_5(%arg0: i32, %arg1: i32) -> (i32, i32, i32) {
    %c0_i32 = arith.constant 0 : i32
    %c0_i32_0 = arith.constant 0 : i32
    %c0_i32_1 = arith.constant 0 : i32
    return %arg0, %c0_i32, %c0_i32_0 : i32, i32, i32
  }
  func.func @transform_6(%arg0: i32, %arg1: i32) -> (i32, i32, i32) {
    %c0_i32 = arith.constant 0 : i32
    %c0_i32_0 = arith.constant 0 : i32
    %c0_i32_1 = arith.constant 0 : i32
    return %arg0, %c0_i32, %c0_i32_0 : i32, i32, i32
  }
}

module attributes {stable_mosaic.version = 11 : i64} {
  func.func @kernel(%arg0: i32, %arg1: i32, %arg2: memref<1x16x16x16xf32, #tpu.memory_space<vmem>>, %arg3: memref<1x1x1x16xf32, #tpu.memory_space<vmem>>, %arg4: memref<1x1x1x16xf32, #tpu.memory_space<vmem>>, %arg5: memref<1x16x16x16xf32, #tpu.memory_space<vmem>>) attributes {dimension_semantics = [#tpu.dimension_semantics<parallel>, #tpu.dimension_semantics<parallel>], iteration_bounds = array<i64: 2, 1>, scalar_prefetch = 0 : i64, scratch_operands = 0 : i64, tpu.core_type = #tpu.core_type<tc>, window_params = [{transform_indices = @transform_0, window_bounds = array<i64: 1, 16, 16, 16>}, {transform_indices = @transform_1, window_bounds = array<i64: 1, 1, 1, 16>}, {transform_indices = @transform_2, window_bounds = array<i64: 1, 1, 1, 16>}, {transform_indices = @transform_3, window_bounds = array<i64: 1, 16, 16, 16>}]} {
    %c0 = arith.constant 0 : index
    %c0_0 = arith.constant 0 : index
    %c0_1 = arith.constant 0 : index
    %c0_2 = arith.constant 0 : index
    %0 = vector.load %arg2[%c0, %c0_0, %c0_1, %c0_2] : memref<1x16x16x16xf32, #tpu.memory_space<vmem>>, vector<1x16x16x16xf32>
    %c0_3 = arith.constant 0 : index
    %c0_4 = arith.constant 0 : index
    %c0_5 = arith.constant 0 : index
    %c0_6 = arith.constant 0 : index
    %1 = vector.load %arg3[%c0_3, %c0_4, %c0_5, %c0_6] : memref<1x1x1x16xf32, #tpu.memory_space<vmem>>, vector<1x1x1x16xf32>
    %2 = vector.broadcast %1 : vector<1x1x1x16xf32> to vector<1x16x16x16xf32>
    %3 = arith.mulf %0, %2 : vector<1x16x16x16xf32>
    %c0_7 = arith.constant 0 : index
    %c0_8 = arith.constant 0 : index
    %c0_9 = arith.constant 0 : index
    %c0_10 = arith.constant 0 : index
    %4 = vector.load %arg4[%c0_7, %c0_8, %c0_9, %c0_10] : memref<1x1x1x16xf32, #tpu.memory_space<vmem>>, vector<1x1x1x16xf32>
    %5 = vector.broadcast %4 : vector<1x1x1x16xf32> to vector<1x16x16x16xf32>
    %6 = arith.addf %3, %5 : vector<1x16x16x16xf32>
    %c0_11 = arith.constant 0 : index
    %c0_12 = arith.constant 0 : index
    %c0_13 = arith.constant 0 : index
    %c0_14 = arith.constant 0 : index
    %7 = vector.load %arg5[%c0_11, %c0_12, %c0_13, %c0_14] : memref<1x16x16x16xf32, #tpu.memory_space<vmem>>, vector<1x16x16x16xf32>
    tpu.vector_store %arg5[%c0_11, %c0_12, %c0_13, %c0_14], %6 {strides = array<i32>} : memref<1x16x16x16xf32, #tpu.memory_space<vmem>>, vector<1x16x16x16xf32>,
    return
  }
  func.func @transform_0(%arg0: i32, %arg1: i32) -> (i32, i32, i32, i32) {
    %c0_i32 = arith.constant 0 : i32
    %c0_i32_0 = arith.constant 0 : i32
    %c0_i32_1 = arith.constant 0 : i32
    return %arg0, %arg1, %c0_i32, %c0_i32_0 : i32, i32, i32, i32
  }
  func.func @transform_1(%arg0: i32, %arg1: i32) -> (i32, i32, i32, i32) {
    %c0_i32 = arith.constant 0 : i32
    %c0_i32_0 = arith.constant 0 : i32
    %c0_i32_1 = arith.constant 0 : i32
    %c0_i32_2 = arith.constant 0 : i32
    return %arg0, %c0_i32, %c0_i32_0, %c0_i32_1 : i32, i32, i32, i32
  }
  func.func @transform_2(%arg0: i32, %arg1: i32) -> (i32, i32, i32, i32) {
    %c0_i32 = arith.constant 0 : i32
    %c0_i32_0 = arith.constant 0 : i32
    %c0_i32_1 = arith.constant 0 : i32
    %c0_i32_2 = arith.constant 0 : i32
    return %arg0, %c0_i32, %c0_i32_0, %c0_i32_1 : i32, i32, i32, i32
  }
  func.func @transform_3(%arg0: i32, %arg1: i32) -> (i32, i32, i32, i32) {
    %c0_i32 = arith.constant 0 : i32
    %c0_i32_0 = arith.constant 0 : i32
    %c0_i32_1 = arith.constant 0 : i32
    return %arg0, %arg1, %c0_i32, %c0_i32_0 : i32, i32, i32, i32
  }
}

</mosaic_0001>

<bundles_post_ra>
// kernel: double_conv.7
= control target key start
LH: loop header
LB: loop body
LE: loop exit
PB: predicated region body
PF: predicated region fallthrough
CT: control target
= control target key end

     0   :  { %8 = vsyncpa [#allocation3], 0  ;;  %s965_s0 = inlined_call_operand.vmem [shape: f32[2,16,16,16], index: 0, kind: input, shape index: {}]   ;;  %s966_s1 = inlined_call_operand.vmem [shape: f32[2,1,1,16], index: 1, kind: input, shape index: {}]   ;;  %s967_s2 = inlined_call_operand.vmem [shape: f32[2,1,1,16], index: 2, kind: input, shape index: {}]   ;;  %s968_s3 = inlined_call_operand.hbm [shape: f32[2,16,16,16], index: 3, kind: output, shape index: {}]  }
   0x1   :  { %10 = vsyncpa [#allocation3 + $0x1], 0  ;;  %s668_s12 = smov 0   ;;  %s670_s13 = smov 0  }
   0x2   :  { %s672_s14 = smov 0   ;;  %s674_s15 = smov 0  }
   0x3   :  { %s676_s16 = smov 0   ;;  %s678_s17 = smov 0  }
   0x4 LB: > { %s491_s18 = sadd.s32 4294967295, %s643_s17   ;;  %s492_s19 = sadd.s32 4294967294, %s643_s17   ;;  %s643_s17 = sphi %s678_s17, %s16_s17   ;;  %s639_s16 = sphi %s676_s16, %s975_s16   ;;  %s635_s15 = sphi %s674_s15, %s974_s15   ;;  %s631_s14 = sphi %s672_s14, %s973_s14   ;;  %s627_s13 = sphi %s670_s13, %s972_s13   ;;  %s623_s12 = sphi %s668_s12, %s971_s12  }
   0x5   : > { %s28_s20 = sadd.s32 1, %s639_s16  ;;  %s117_s21 = sadd.s32 1, %s631_s14 }
   0x6   : > { %p30_p0 = scmp.ge.s32.totalorder %s28_s20, 2  ;;  %p127_p1 = scmp.ne.s32.totalorder %s631_s14, %s627_s13 }
   0x7   : > { %p128_p2 = scmp.eq.s32.totalorder %s491_s18, 1  ;;  %p133_p3 = scmp.ne.s32.totalorder %s627_s13, %s623_s12 }
   0x8   : > { %s977_s20 = smov (%p30_p0, %s28_s20), 0  ;;  %p134_p5 = scmp.eq.s32.totalorder %s492_s19, 1 }
   0x9   : > { %p708_p4 = por %p128_p2, %p127_p1  ;;  %s112_s23 = ssub.s32 %s639_s16, %s977_s20 }
   0xa   : > { %p495_p6 = scmp.ge.s32.totalorder %s643_s17, 1  ;;  %p115_p7 = scmp.eq.s32.totalorder %s112_s23, 0 }
   0xb   : > { %p715_p8 = por %p134_p5, %p133_p3  ;;  %p178_p9 = scmp.lt.s32.totalorder %s643_s17, 3 }
   0xc   : > { %s721_s25 = scalar_select %p115_p7, %s631_s14, %s117_s21  }
   0xd   : > { %p179_p10 = pnand %p495_p6, %p178_p9 }
   0xe   : > { %p214_p11 = scmp.lt.s32.totalorder (!%p179_p10), %s635_s15, 1  ;;  %s210_s26 = sand.u32 (!%p179_p10), 1, %s627_s13   ;;  %vm341_vm0 = vcmask (!%p179_p10), 130048  }
   0xf   : > { %182 = sbr.rel (%p179_p10) target bundleno = 64 (0x40), region = 32  ;;  %s728_s28 = sshll.u32 (!%p179_p10), %s210_s26, 8 }
  0x10   : > { %s773_s18 = scalar_lea.vmem (!%p179_p10), [#allocation2], %s728_s28  ;;  %s507_s19 = sshll.u32 (!%p179_p10), %s635_s15, 12 }
  0x11   : > { %s391_s21 = sshll.u32 (!%p179_p10), %s773_s18, 4  ;;  %s919_s28 = scalar_lea.sflag (!%p179_p10), [#allocation3], %s210_s26  ;;  %s902_s21 = int_to_ptr.vmem [resolvable:$true] %s391_s21 }
  0x12   : > { %s645_s30 = smov (!%p179_p10), [#allocation2]  }
  0x13   : > { %s569_s4 = sshll.u32 (!%p179_p10), %s645_s30, 4  ;;  %s570_s4 = int_to_ptr.vmem [resolvable:$false] %s569_s4 }
  0x14   : > { %p572_p1 = scmp.lt.s32.totalorder (!%p179_p10), %s902_s21, %s570_s4 }
  0x16   : > { %s215_s27 = scalar_select %p214_p11, %s635_s15, 1 }
  0x18   : > { %s506_s29 = sshll.u32 %s215_s27, 8  ;;  %s226_s5 = scalar_lea.vmem %s966_s1, %s215_s27 }
  0x19   : > { %s736_s8 = scalar_lea.vmem %s965_s0, %s506_s29  ;;  %s229_s11 = scalar_lea.vmem %s967_s2, %s215_s27  ;;  %v741_v0 = vld [vmem:[%s226_s5] ss:$0 sm:$0xff] }
  0x1a   : > { %v231_v1 = vld [vmem:[%s736_s8] sm:$0xff]  ;;  %v232_v3 = vld [vmem:[%s736_s8 + $0x8] sm:$0xff]  ;;  %v233_v6 = vld [vmem:[%s736_s8 + $0x10] sm:$0xff]  ;;  %s900_s27 = scalar_lea.hbm %s968_s3, %s507_s19  ;;  %s565_s29 = scalar_lea.vmem %s902_s21, 4096 }
  0x1b   : > { %v744_v2 = vld [vmem:[%s229_s11] ss:$0 sm:$0xff]  ;;  %v270_v4 = vmul.f32 %v741_v0, %v231_v1  ;;  %v271_v5 = vmul.f32 %v741_v0, %v232_v3  ;;  %v234_v7 = vld [vmem:[%s736_s8 + $0x18] sm:$0xff]  ;;  %v272_v9 = vmul.f32 %v741_v0, %v233_v6  ;;  %v236_v12 = vld [vmem:[%s736_s8 + $0x28] sm:$0xff]  ;;  %p566_p12 = scmp.ne.s32.totalorder %s902_s21, %s565_s29  ;;  %s571_s5 = scalar_lea.vmem %s570_s4, 8192 }
  0x1c   : > { %v235_v8 = vld [vmem:[%s736_s8 + $0x20] sm:$0xff]  ;;  %v273_v10 = vmul.f32 %v741_v0, %v234_v7  ;;  %v237_v13 = vld [vmem:[%s736_s8 + $0x30] sm:$0xff]  ;;  %v238_v14 = vld [vmem:[%s736_s8 + $0x38] sm:$0xff]  ;;  %v275_v17 = vmul.f32 %v741_v0, %v236_v12  ;;  %p573_p2 = scmp.lt.s32.totalorder %s571_s5, %s565_s29 }
  0x1d   : > { %v274_v11 = vmul.f32 %v741_v0, %v235_v8  ;;  %v309_v15 = vadd.f32 %v744_v2, %v270_v4  ;;  %v310_v16 = vadd.f32 %v744_v2, %v271_v5  ;;  %v276_v18 = vmul.f32 %v741_v0, %v237_v13  ;;  %v239_v19 = vld [vmem:[%s736_s8 + $0x40] sm:$0xff]  ;;  %v240_v20 = vld [vmem:[%s736_s8 + $0x48] sm:$0xff]  ;;  %v241_v21 = vld [vmem:[%s736_s8 + $0x50] sm:$0xff]  ;;  %p567_p13 = pnand %p566_p12, %p708_p4 }
  0x1e   : > { %v311_v22 = vadd.f32 %v744_v2, %v272_v9  ;;  %v312_v23 = vadd.f32 %v744_v2, %v273_v10  ;;  %v277_v25 = vmul.f32 %v741_v0, %v238_v14  ;;  %v242_v26 = vld [vmem:[%s736_s8 + $0x58] sm:$0xff]  ;;  %v243_v27 = vld [vmem:[%s736_s8 + $0x60] sm:$0xff]  ;;  %v244_v28 = vld [vmem:[%s736_s8 + $0x68] sm:$0xff]  ;;  %v314_v29 = vadd.f32 %v744_v2, %v275_v17  ;;  %p574_p3 = por %p573_p2, %p572_p1 }
  0x1f   : > { %v313_v24 = vadd.f32 %v744_v2, %v274_v11  ;;  %342 = vst.msk [vmem:[%s773_s18] sm:$0xff] %vm341_vm0, %v309_v15  ;;  %343 = vst.msk [vmem:[%s773_s18 + $0x8] sm:$0xff] %vm341_vm0, %v310_v16  ;;  %v315_v30 = vadd.f32 %v744_v2, %v276_v18  ;;  %v278_v31 = vmul.f32 %v741_v0, %v239_v19  ;;  %v245_v33 = vld [vmem:[%s736_s8 + $0x70] sm:$0xff]  ;;  %v246_v34 = vld [vmem:[%s736_s8 + $0x78] sm:$0xff]  ;;  %p568_p0 = pneg %p567_p13 }
  0x20   : > { %v279_v32 = vmul.f32 %v741_v0, %v240_v20  ;;  %344 = vst.msk [vmem:[%s773_s18 + $0x10] sm:$0xff] %vm341_vm0, %v311_v22  ;;  %345 = vst.msk [vmem:[%s773_s18 + $0x18] sm:$0xff] %vm341_vm0, %v312_v23  ;;  %v316_v35 = vadd.f32 %v744_v2, %v277_v25  ;;  %v280_v36 = vmul.f32 %v741_v0, %v241_v21  ;;  %v247_v39 = vld [vmem:[%s736_s8 + $0x80] sm:$0xff]  ;;  %v248_v40 = vld [vmem:[%s736_s8 + $0x88] sm:$0xff] }
  0x21   : > { %346 = vst.msk [vmem:[%s773_s18 + $0x20] sm:$0xff] %vm341_vm0, %v313_v24  ;;  %v281_v37 = vmul.f32 %v741_v0, %v242_v26  ;;  %v282_v38 = vmul.f32 %v741_v0, %v243_v27  ;;  %347 = vst.msk [vmem:[%s773_s18 + $0x28] sm:$0xff] %vm341_vm0, %v314_v29  ;;  %v317_v41 = vadd.f32 %v744_v2, %v278_v31  ;;  %v249_v45 = vld [vmem:[%s736_s8 + $0x90] sm:$0xff]  ;;  %v250_v46 = vld [vmem:[%s736_s8 + $0x98] sm:$0xff]  ;;  %p575_p5 = pnand %p574_p3, %p568_p0 }
  0x22   : > { %348 = vst.msk [vmem:[%s773_s18 + $0x30] sm:$0xff] %vm341_vm0, %v315_v30  ;;  %v318_v42 = vadd.f32 %v744_v2, %v279_v32  ;;  %v283_v43 = vmul.f32 %v741_v0, %v244_v28  ;;  %v284_v44 = vmul.f32 %v741_v0, %v245_v33  ;;  %v251_v47 = vld [vmem:[%s736_s8 + $0xa0] sm:$0xff]  ;;  %349 = vst.msk [vmem:[%s773_s18 + $0x38] sm:$0xff] %vm341_vm0, %v316_v35  ;;  %v252_v52 = vld [vmem:[%s736_s8 + $0xa8] sm:$0xff] }
  0x23   : > { %v319_v48 = vadd.f32 %v744_v2, %v280_v36  ;;  %v320_v49 = vadd.f32 %v744_v2, %v281_v37  ;;  %v321_v50 = vadd.f32 %v744_v2, %v282_v38  ;;  %v285_v51 = vmul.f32 %v741_v0, %v246_v34  ;;  %v253_v53 = vld [vmem:[%s736_s8 + $0xb0] sm:$0xff]  ;;  %350 = vst.msk [vmem:[%s773_s18 + $0x40] sm:$0xff] %vm341_vm0, %v317_v41  ;;  %v254_v58 = vld [vmem:[%s736_s8 + $0xb8] sm:$0xff]  ;;  %v255_v63 = vld [vmem:[%s736_s8 + $0xc0] sm:$0xff] }
  0x24   : > { %351 = vst.msk [vmem:[%s773_s18 + $0x48] sm:$0xff] %vm341_vm0, %v318_v42  ;;  %v322_v54 = vadd.f32 %v744_v2, %v283_v43  ;;  %v323_v55 = vadd.f32 %v744_v2, %v284_v44  ;;  %v286_v56 = vmul.f32 %v741_v0, %v247_v39  ;;  %v287_v57 = vmul.f32 %v741_v0, %v248_v40  ;;  %v256_v1 = vld [vmem:[%s736_s8 + $0xc8] sm:$0xff]  ;;  %v257_v7 = vld [vmem:[%s736_s8 + $0xd0] sm:$0xff]  ;;  %v258_v8 = vld [vmem:[%s736_s8 + $0xd8] sm:$0xff] }
  0x25   : > { %352 = vst.msk [vmem:[%s773_s18 + $0x50] sm:$0xff] %vm341_vm0, %v319_v48  ;;  %353 = vst.msk [vmem:[%s773_s18 + $0x58] sm:$0xff] %vm341_vm0, %v320_v49  ;;  %v324_v59 = vadd.f32 %v744_v2, %v285_v51  ;;  %v288_v60 = vmul.f32 %v741_v0, %v249_v45  ;;  %v289_v61 = vmul.f32 %v741_v0, %v250_v46  ;;  %v259_v9 = vld [vmem:[%s736_s8 + $0xe0] sm:$0xff]  ;;  %v260_v14 = vld [vmem:[%s736_s8 + $0xe8] sm:$0xff] }
  0x26   : > { %354 = vst.msk [vmem:[%s773_s18 + $0x60] sm:$0xff] %vm341_vm0, %v321_v50  ;;  %v290_v62 = vmul.f32 %v741_v0, %v251_v47  ;;  %355 = vst.msk [vmem:[%s773_s18 + $0x68] sm:$0xff] %vm341_vm0, %v322_v54  ;;  %v325_v3 = vadd.f32 %v744_v2, %v286_v56  ;;  %v326_v4 = vadd.f32 %v744_v2, %v287_v57  ;;  %v261_v15 = vld [vmem:[%s736_s8 + $0xf0] sm:$0xff]  ;;  %v262_v20 = vld [vmem:[%s736_s8 + $0xf8] sm:$0xff] }
  0x27   : > { %356 = vst.msk [vmem:[%s773_s18 + $0x70] sm:$0xff] %vm341_vm0, %v323_v55  ;;  %v291_v5 = vmul.f32 %v741_v0, %v252_v52  ;;  %v292_v6 = vmul.f32 %v741_v0, %v253_v53  ;;  %357 = vst.msk [vmem:[%s773_s18 + $0x78] sm:$0xff] %vm341_vm0, %v324_v59  ;;  %v327_v10 = vadd.f32 %v744_v2, %v288_v60 }
  0x28   : > { %v328_v11 = vadd.f32 %v744_v2, %v289_v61  ;;  %v329_v12 = vadd.f32 %v744_v2, %v290_v62  ;;  %v293_v13 = vmul.f32 %v741_v0, %v254_v58  ;;  %358 = vst.msk [vmem:[%s773_s18 + $0x80] sm:$0xff] %vm341_vm0, %v325_v3  ;;  %359 = vst.msk [vmem:[%s773_s18 + $0x88] sm:$0xff] %vm341_vm0, %v326_v4 }
  0x29   : > { %v330_v16 = vadd.f32 %v744_v2, %v291_v5  ;;  %v331_v17 = vadd.f32 %v744_v2, %v292_v6  ;;  %v294_v18 = vmul.f32 %v741_v0, %v255_v63  ;;  %v295_v19 = vmul.f32 %v741_v0, %v256_v1  ;;  %360 = vst.msk [vmem:[%s773_s18 + $0x90] sm:$0xff] %vm341_vm0, %v327_v10 }
  0x2a   : > { %361 = vst.msk [vmem:[%s773_s18 + $0x98] sm:$0xff] %vm341_vm0, %v328_v11  ;;  %362 = vst.msk [vmem:[%s773_s18 + $0xa0] sm:$0xff] %vm341_vm0, %v329_v12  ;;  %v332_v21 = vadd.f32 %v744_v2, %v293_v13  ;;  %v296_v22 = vmul.f32 %v741_v0, %v257_v7  ;;  %v297_v23 = vmul.f32 %v741_v0, %v258_v8 }
  0x2b   : > { %v298_v24 = vmul.f32 %v741_v0, %v259_v9  ;;  %363 = vst.msk [vmem:[%s773_s18 + $0xa8] sm:$0xff] %vm341_vm0, %v330_v16  ;;  %364 = vst.msk [vmem:[%s773_s18 + $0xb0] sm:$0xff] %vm341_vm0, %v331_v17  ;;  %v333_v25 = vadd.f32 %v744_v2, %v294_v18  ;;  %v334_v26 = vadd.f32 %v744_v2, %v295_v19 }
  0x2c   : > { %v299_v27 = vmul.f32 %v741_v0, %v260_v14  ;;  %v300_v28 = vmul.f32 %v741_v0, %v261_v15  ;;  %365 = vst.msk [vmem:[%s773_s18 + $0xb8] sm:$0xff] %vm341_vm0, %v332_v21  ;;  %v335_v29 = vadd.f32 %v744_v2, %v296_v22  ;;  %v336_v30 = vadd.f32 %v744_v2, %v297_v23 }
  0x2d   : > { %v337_v31 = vadd.f32 %v744_v2, %v298_v24  ;;  %v301_v32 = vmul.f32 %v741_v0, %v262_v20  ;;  %366 = vst.msk [vmem:[%s773_s18 + $0xc0] sm:$0xff] %vm341_vm0, %v333_v25  ;;  %367 = vst.msk [vmem:[%s773_s18 + $0xc8] sm:$0xff] %vm341_vm0, %v334_v26 }
  0x2e   : > { %v338_v33 = vadd.f32 %v744_v2, %v299_v27  ;;  %v339_v34 = vadd.f32 %v744_v2, %v300_v28  ;;  %368 = vst.msk [vmem:[%s773_s18 + $0xd0] sm:$0xff] %vm341_vm0, %v335_v29  ;;  %369 = vst.msk [vmem:[%s773_s18 + $0xd8] sm:$0xff] %vm341_vm0, %v336_v30 }
  0x2f   : > { %370 = vst.msk [vmem:[%s773_s18 + $0xe0] sm:$0xff] %vm341_vm0, %v337_v31  ;;  %v340_v0 = vadd.f32 %v744_v2, %v301_v32 }
  0x30   : > { %371 = vst.msk [vmem:[%s773_s18 + $0xe8] sm:$0xff] %vm341_vm0, %v338_v33  ;;  %372 = vst.msk [vmem:[%s773_s18 + $0xf0] sm:$0xff] %vm341_vm0, %v339_v34 }
  0x31   : > { %373 = vst.msk [vmem:[%s773_s18 + $0xf8] sm:$0xff] %vm341_vm0, %v340_v0 }
  0x32   : > { %578 = shalt.err (!%p575_p5)
}
  0x33   : > { %s579_s26 = scalar_lea.hbm %s900_s27, 4096  ;;  %s583_s8 = scalar_lea.hbm %s968_s3, 8192 }
  0x34   : > { %p580_p6 = scmp.ne.s32.totalorder %s900_s27, %s579_s26  ;;  %p584_p10 = scmp.lt.u32.totalorder %s900_s27, %s968_s3 }
  0x35   : > { %p585_p11 = scmp.lt.u32.totalorder %s583_s8, %s579_s26  ;;  %p587_p13 = scmp.lt.u32.totalorder %s579_s26, %s900_s27 }
  0x36   : > { %p581_p7 = pnand %p580_p6, %p708_p4 }
  0x37   : > { %p586_p12 = por %p585_p11, %p584_p10 }
  0x38   : > { %p582_p9 = pneg %p581_p7 }
  0x39   : > { %p588_p0 = por %p587_p13, %p586_p12 }
  0x3b   : > { %p589_p1 = pnand %p588_p0, %p582_p9 }
  0x3d   : > { %592 = shalt.err (!%p589_p1)
}
  0x3e   : > { %s646_s11 = smov 128   ;;  %s647_s18 = smov 8  }
  0x3f   : > { %508 = dma.vmem_to_hbm [thread:$0]  (%p708_p4), %s902_s21, 4096, %s900_s27, %s919_s28, %s646_s11, %s646_s11, %s647_s18  }
  0x40 PF: > { %p514_p2 = scmp.ge.s32.totalorder %s643_s17, 2  ;;  %s406_s19 = sand.u32 1, %s623_s12  }
  0x41   : > { %s407_s15 = scalar_lea.sflag [#allocation3], %s406_s19 }
  0x42   : > { %p511_p3 = pnand %p514_p2, %p715_p8 }
  0x44   : > { %618 = dma.done.wait (!%p511_p3), %s407_s15, 4096  }
  0x45   : > { %620 = vsyncadd (!%p511_p3), %s407_s15, 4294963200  ;;  %s16_s17 = sadd.s32 1, %s643_s17   ;;  %s971_s12 = smov %s627_s13 }
  0x46   : > { %p13_p5 = scmp.ge.s32.totalorder %s16_s17, 4   ;;  %s972_s13 = smov %s631_s14 }
  0x47   : > { %s973_s14 = smov %s721_s25  ;;  %s974_s15 = smov %s639_s16 }
  0x48   : > { %s975_s16 = smov %s977_s20  ;;  %15 = sbr.rel (!%p13_p5) target bundleno = 4 (0x4), region = 73 }
  0x4f   :  { %412 = vsyncpa [#allocation3], 1 }
  0x50   :  { %414 = vsyncpa [#allocation3 + $0x1], 1 }

// kernel: double_conv.5
= control target key start
LH: loop header
LB: loop body
LE: loop exit
PB: predicated region body
PF: predicated region fallthrough
CT: control target
= control target key end

     0   :  { %s1579_s12 = smov 0   ;;  %s1581_s13 = smov 0   ;;  %s2423_s0 = inlined_call_operand.vmem [shape: f32[2,16,16,16], index: 0, kind: input, shape index: {}]   ;;  %s2424_s1 = inlined_call_operand.vmem [shape: f32[2,1,1,16], index: 1, kind: input, shape index: {}]   ;;  %s2425_s2 = inlined_call_operand.vmem [shape: f32[2,1,1,16], index: 2, kind: input, shape index: {}]   ;;  %s2426_s3 = inlined_call_operand.vmem [shape: f32[2,16,16,16], index: 3, kind: output, shape index: {}]  }
   0x1   :  { %s1583_s14 = smov 0  }
   0x2 LB: > { %s25_s15 = sadd.s32 1, %s1552_s13  ;;  %p1368_p0 = scmp.ge.s32.totalorder %s1556_s14, 1  ;;  %s1556_s14 = sphi %s1583_s14, %s13_s14   ;;  %s1552_s13 = sphi %s1581_s13, %s2428_s13   ;;  %s1548_s12 = sphi %s1579_s12, %s2427_s12  }
   0x3   : > { %p27_p1 = scmp.ge.s32.totalorder %s25_s15, 2  ;;  %p175_p2 = scmp.lt.s32.totalorder %s1556_s14, 3 }
   0x5   : > { %s2430_s15 = smov (%p27_p1, %s25_s15), 0  ;;  %p176_p3 = pnand %p1368_p0, %p175_p2 }
   0x6   : > { %p216_p4 = scmp.lt.s32.totalorder (!%p176_p3), %s1548_s12, 1  ;;  %v1558_v55 = vmov (!%p176_p3), -1.0   ;;  %vm1217_vm4 = vcmask (!%p176_p3), 130048  }
   0x7   : > { %179 = sbr.rel (%p176_p3) target bundleno = 261 (0x105), region = 32 }
   0xe   : > { %s2432_s12 = smov (!%p216_p4, %s1548_s12), 1 }
   0xf   : > { %s1377_s16 = sshll.u32 %s2432_s12, 8  ;;  %s1604_s19 = scalar_lea.vmem %s2424_s1, %s2432_s12 }
  0x10   : > { %s1611_s22 = scalar_lea.vmem %s2423_s0, %s1377_s16  ;;  %s1617_s25 = scalar_lea.vmem %s2425_s2, %s2432_s12  ;;  %v1620_v0 = vld [vmem:[%s1604_s19] ss:$0 sm:$0xff] }
  0x11   : > { %v243_v1 = vld [vmem:[%s1611_s22] sm:$0xff]  ;;  %v244_v3 = vld [vmem:[%s1611_s22 + $0x8] sm:$0xff]  ;;  %v245_v6 = vld [vmem:[%s1611_s22 + $0x10] sm:$0xff]  ;;  %s1784_s28 = scalar_lea.vmem %s2426_s3, %s1377_s16 }
  0x12   : > { %v1624_v2 = vld [vmem:[%s1617_s25] ss:$0 sm:$0xff]  ;;  %v282_v4 = vmul.f32 %v1620_v0, %v243_v1  ;;  %v283_v5 = vmul.f32 %v1620_v0, %v244_v3  ;;  %v246_v7 = vld [vmem:[%s1611_s22 + $0x18] sm:$0xff]  ;;  %v284_v8 = vmul.f32 %v1620_v0, %v245_v6  ;;  %v248_v21 = vld [vmem:[%s1611_s22 + $0x28] sm:$0xff] }
  0x13   : > { %v285_v9 = vmul.f32 %v1620_v0, %v246_v7  ;;  %v247_v14 = vld [vmem:[%s1611_s22 + $0x20] sm:$0xff]  ;;  %v249_v22 = vld [vmem:[%s1611_s22 + $0x30] sm:$0xff]  ;;  %v250_v25 = vld [vmem:[%s1611_s22 + $0x38] sm:$0xff]  ;;  %v287_v31 = vmul.f32 %v1620_v0, %v248_v21 }
  0x14   : > { %v321_v10 = vadd.f32 %v1624_v2, %v282_v4  ;;  %v322_v11 = vadd.f32 %v1624_v2, %v283_v5  ;;  %v323_v12 = vadd.f32 %v1624_v2, %v284_v8  ;;  %v286_v20 = vmul.f32 %v1620_v0, %v247_v14 }
  0x15   : > { %v324_v13 = vadd.f32 %v1624_v2, %v285_v9  ;;  %v288_v32 = vmul.f32 %v1620_v0, %v249_v22  ;;  %v289_v36 = vmul.f32 %v1620_v0, %v250_v25  ;;  %v1663_v49 = vadd.f32 %v1624_v2, %v287_v31  ;;  %v251_v22 = vld [vmem:[%s1611_s22 + $0x40] sm:$0xff] }
  0x16   : > { %v385_v15 = vmul.f32 0.70710677, %v321_v10  ;;  %v386_v16 = vmul.f32 0.70710677, %v322_v11  ;;  %v387_v17 = vmul.f32 0.70710677, %v323_v12  ;;  %v1647_v35 = vadd.f32 %v1624_v2, %v286_v20 }
  0x17   : > { %v1641_v24 = vmul.f32 0.70710677, %v324_v13  ;;  %v1650_v37 = vmul.f32 0.5, %v321_v10  ;;  %v1652_v38 = vmul.f32 0.5, %v322_v11  ;;  %v1654_v39 = vmul.f32 0.5, %v323_v12 }
  0x18   : > { %v481_v18 = vand.u32 2147483647, %v385_v15  ;;  %v482_v19 = vand.u32 2147483647, %v386_v16  ;;  %v483_v23 = vand.u32 2147483647, %v387_v17  ;;  %v1666_v51 = vadd.f32 %v1624_v2, %v288_v32 }
  0x19   : > { %v484_v40 = vand.u32 2147483647, %v1641_v24  ;;  %vm417_vm0 = vcmp.ge.f32.partialorder %v385_v15, 0.0  ;;  %v1657_v47 = vmul.f32 0.5, %v324_v13  ;;  %v1660_v48 = vmul.f32 0.70710677, %v1647_v35 }
  0x1a   : > { %v513_v26 = vmul.f32 0.3275911, %v481_v18  ;;  %v929_v27 = vsub.f32 0.0, %v481_v18  ;;  %v514_v28 = vmul.f32 0.3275911, %v482_v19  ;;  %v930_v29 = vsub.f32 0.0, %v482_v19 }
  0x1b   : > { %v515_v30 = vmul.f32 0.3275911, %v483_v23  ;;  %v931_v43 = vsub.f32 0.0, %v483_v23  ;;  %v516_v45 = vmul.f32 0.3275911, %v484_v40  ;;  %v932_v46 = vsub.f32 0.0, %v484_v40 }
  0x1c   : > { %v545_v33 = vadd.f32 1.0, %v513_v26  ;;  %v546_v34 = vadd.f32 1.0, %v514_v28  ;;  %v961_v41 = vmul.f32 %v929_v27, %v481_v18  ;;  %v962_v44 = vmul.f32 %v930_v29, %v482_v19 }
  0x1d   : > { %v547_v42 = vadd.f32 1.0, %v515_v30  ;;  %vm418_vm1 = vcmp.ge.f32.partialorder %v386_v16, 0.0  ;;  %vm419_vm2 = vcmp.ge.f32.partialorder %v387_v17, 0.0  ;;  %v548_v50 = vadd.f32 1.0, %v516_v45 }
  0x1e   : > { %1404 = vrcp.f32 %v545_v33  ;;  %v993_v52 = vmul.f32 1.442695, %v961_v41  ;;  %v963_v53 = vmul.f32 %v931_v43, %v483_v23  ;;  %v485_v54 = vand.u32 2147483647, %v1660_v48 }
  0x1f   : > { %1406 = vrcp.f32 %v546_v34  ;;  %v1670_v56 = vsel %vm417_vm0, 1.0, %v1558_v55  ;;  %v995_v57 = vmul.f32 1.442695, %v962_v44  ;;  %v964_v58 = vmul.f32 %v932_v46, %v484_v40 }
  0x20   : > { %1408 = vrcp.f32 %v547_v42  ;;  %v1673_v59 = vmul.f32 0.70710677, %v1663_v49  ;;  %v517_v60 = vmul.f32 0.3275911, %v485_v54  ;;  %v933_v61 = vsub.f32 0.0, %v485_v54 }
  0x21   : > { %1410 = vrcp.f32 %v548_v50  ;;  %v1676_v62 = vadd.f32 %v1624_v2, %v289_v36  ;;  %v1680_v63 = vsel %vm418_vm1, 1.0, %v1558_v55  ;;  %v1684_v1 = vsel %vm419_vm2, 1.0, %v1558_v55 }
  0x22   : > { %v486_v3 = vand.u32 2147483647, %v1673_v59  ;;  %v1688_v4 = vmul.f32 0.70710677, %v1666_v51  ;;  %1412 = vpow2.f32 %v993_v52  ;;  %v997_v5 = vmul.f32 1.442695, %v963_v53 }
  0x23   : > { %v549_v6 = vadd.f32 1.0, %v517_v60  ;;  %v965_v7 = vmul.f32 %v933_v61, %v485_v54  ;;  %1414 = vpow2.f32 %v995_v57  ;;  %v999_v12 = vmul.f32 1.442695, %v964_v58  ;;  %v252_v61 = vld [vmem:[%s1611_s22 + $0x48] sm:$0xff] }
  0x24   : > { %v518_v8 = vmul.f32 0.3275911, %v486_v3  ;;  %v934_v9 = vsub.f32 0.0, %v486_v3  ;;  %v487_v10 = vand.u32 2147483647, %v1688_v4  ;;  %vm420_vm3 = vcmp.ge.f32.partialorder %v1641_v24, 0.0 }
  0x25   : > { %1416 = vrcp.f32 %v549_v6  ;;  %v1001_v13 = vmul.f32 1.442695, %v965_v7  ;;  %v1694_v14 = vmul.f32 0.70710677, %v1676_v62  ;;  %v290_v33 = vmul.f32 %v1620_v0, %v251_v22 }
  0x26   : > { %v550_v17 = vadd.f32 1.0, %v518_v8  ;;  %v966_v18 = vmul.f32 %v934_v9, %v486_v3  ;;  %v519_v19 = vmul.f32 0.3275911, %v487_v10  ;;  %1418 = vpow2.f32 %v997_v5 }
  0x27   : > { %v935_v21 = vsub.f32 0.0, %v487_v10  ;;  %v488_v30 = vand.u32 2147483647, %v1694_v14  ;;  %v1713_v53 = vadd.f32 %v1624_v2, %v290_v33  ;;  %v1724_v6 = vsel %vm420_vm3, 1.0, %v1558_v55 }
  0x28   : > { %v1691_v11 = vpop.eup %1404  ;;  %1420 = vrcp.f32 %v550_v17  ;;  %v1003_v25 = vmul.f32 1.442695, %v966_v18  ;;  %v551_v26 = vadd.f32 1.0, %v519_v19  ;;  %v291_v19 = vmul.f32 %v1620_v0, %v252_v61 }
  0x29   : > { %v1696_v15 = vpop.eup %1406  ;;  %v641_v16 = vmul.f32 1.0614054, %v1691_v11  ;;  %1422 = vpow2.f32 %v999_v12  ;;  %v967_v29 = vmul.f32 %v935_v21, %v487_v10  ;;  %v520_v41 = vmul.f32 0.3275911, %v488_v30 }
  0x2a   : > { %v642_v20 = vmul.f32 1.0614054, %v1696_v15  ;;  %v1702_v27 = vpop.eup %1408  ;;  %1424 = vpow2.f32 %v1001_v13  ;;  %v936_v52 = vsub.f32 0.0, %v488_v30  ;;  %v1729_v18 = vmul.f32 0.70710677, %v1713_v53 }
  0x2b   : > { %v673_v23 = vadd.f32 -1.4531521, %v641_v16  ;;  %v643_v32 = vmul.f32 1.0614054, %v1702_v27  ;;  %v1708_v34 = vpop.eup %1410  ;;  %1426 = vrcp.f32 %v551_v26  ;;  %v1005_v40 = vmul.f32 1.442695, %v967_v29 }
  0x2c   : > { %v674_v28 = vadd.f32 -1.4531521, %v642_v20  ;;  %v644_v44 = vmul.f32 1.0614054, %v1708_v34  ;;  %1428 = vpow2.f32 %v1003_v25  ;;  %v1413_v45 = vpop.eup %1412  ;;  %v552_v50 = vadd.f32 1.0, %v520_v41 }
  0x2d   : > { %v705_v31 = vmul.f32 %v1691_v11, %v673_v23  ;;  %v675_v43 = vadd.f32 -1.4531521, %v643_v32  ;;  %v1415_v54 = vpop.eup %1414  ;;  %1430 = vpow2.f32 %v1005_v40  ;;  %v968_v7 = vmul.f32 %v936_v52, %v488_v30 }
  0x2e   : > { %v706_v36 = vmul.f32 %v1696_v15, %v674_v28  ;;  %v676_v60 = vadd.f32 -1.4531521, %v644_v44  ;;  %1432 = vrcp.f32 %v552_v50  ;;  %v1738_v28 = vmul.f32 0.5, %v1647_v35 }
  0x2f   : > { %v737_v42 = vadd.f32 1.4214138, %v705_v31  ;;  %v707_v58 = vmul.f32 %v1702_v27, %v675_v43  ;;  %v1718_v3 = vpop.eup %1416  ;;  %v1007_v17 = vmul.f32 1.442695, %v968_v7  ;;  %v1748_v43 = vand.u32 2147483647, %v1729_v18 }
  0x30   : > { %v738_v46 = vadd.f32 1.4214138, %v706_v36  ;;  %v708_v10 = vmul.f32 %v1708_v34, %v676_v60  ;;  %v645_v12 = vmul.f32 1.0614054, %v1718_v3  ;;  %v1419_v13 = vpop.eup %1418  ;;  %v1751_v35 = vadd.f32 %v1624_v2, %v291_v19 }
  0x31   : > { %v769_v57 = vmul.f32 %v1691_v11, %v737_v42  ;;  %v739_v9 = vadd.f32 1.4214138, %v707_v58  ;;  %1434 = vpow2.f32 %v1007_v17  ;;  %vm421_vm5 = vcmp.ge.f32.partialorder %v1660_v48, 0.0 }
  0x32   : > { %v770_v5 = vmul.f32 %v1696_v15, %v738_v46  ;;  %v1732_v20 = vpop.eup %1420  ;;  %v740_v22 = vadd.f32 1.4214138, %v708_v10  ;;  %v677_v23 = vadd.f32 -1.4531521, %v645_v12  ;;  %vm422_vm6 = vcmp.ge.f32.partialorder %v1673_v59, 0.0 }
  0x33   : > { %v801_v8 = vadd.f32 -0.28449672, %v769_v57  ;;  %v771_v21 = vmul.f32 %v1702_v27, %v739_v9  ;;  %v1423_v25 = vpop.eup %1422  ;;  %v646_v29 = vmul.f32 1.0614054, %v1732_v20  ;;  %vm423_vm7 = vcmp.ge.f32.partialorder %v1688_v4, 0.0  ;;  %v254_v4 = vld [vmem:[%s1611_s22 + $0x58] sm:$0xff] }
  0x34   : > { %v802_v16 = vadd.f32 -0.28449672, %v770_v5  ;;  %v1741_v30 = vpop.eup %1424  ;;  %v772_v33 = vmul.f32 %v1708_v34, %v740_v22  ;;  %v709_v36 = vmul.f32 %v1718_v3, %v677_v23  ;;  %v521_v5 = vmul.f32 0.3275911, %v1748_v43 }
  0x35   : > { %v833_v24 = vmul.f32 %v1691_v11, %v801_v8  ;;  %v803_v32 = vadd.f32 -0.28449672, %v771_v21  ;;  %v1745_v40 = vpop.eup %1426  ;;  %v678_v42 = vadd.f32 -1.4531521, %v646_v29  ;;  %vm424_vm8 = vcmp.ge.f32.partialorder %v1694_v14, 0.0 }
  0x36   : > { %v834_v26 = vmul.f32 %v1696_v15, %v802_v16  ;;  %v1753_v44 = vpop.eup %1428  ;;  %v804_v52 = vadd.f32 -0.28449672, %v772_v33  ;;  %v741_v57 = vadd.f32 1.4214138, %v709_v36  ;;  %v647_v61 = vmul.f32 1.0614054, %v1745_v40 }
  0x37   : > { %v865_v31 = vadd.f32 0.2548296, %v833_v24  ;;  %v835_v50 = vmul.f32 %v1702_v27, %v803_v32  ;;  %v710_v60 = vmul.f32 %v1732_v20, %v678_v42  ;;  %v1761_v7 = vpop.eup %1430  ;;  %v553_v19 = vadd.f32 1.0, %v521_v5 }
  0x38   : > { %v866_v41 = vadd.f32 0.2548296, %v834_v26  ;;  %v836_v10 = vmul.f32 %v1708_v34, %v804_v52  ;;  %v1766_v12 = vpop.eup %1432  ;;  %v679_v17 = vadd.f32 -1.4531521, %v647_v61  ;;  %vm425_vm9 = vcmp.ge.f32.partialorder %v1729_v18, 0.0 }
  0x39   : > { %v897_v46 = vmul.f32 %v1691_v11, %v865_v31  ;;  %v867_v9 = vadd.f32 0.2548296, %v835_v50  ;;  %v773_v11 = vmul.f32 %v1718_v3, %v741_v57  ;;  %v648_v31 = vmul.f32 1.0614054, %v1766_v12 }
  0x3a   : > { %v898_v58 = vmul.f32 %v1696_v15, %v866_v41  ;;  %v742_v15 = vadd.f32 1.4214138, %v710_v60  ;;  %v868_v22 = vadd.f32 0.2548296, %v836_v10  ;;  %v711_v29 = vmul.f32 %v1745_v40, %v679_v17 }
  0x3b   : > { %v1057_v8 = vmul.f32 %v1413_v45, %v897_v46  ;;  %v899_v21 = vmul.f32 %v1702_v27, %v867_v9  ;;  %v805_v45 = vadd.f32 -0.28449672, %v773_v11  ;;  %v1776_v41 = vpop.eup %1434  ;;  %v680_v50 = vadd.f32 -1.4531521, %v648_v31 }
  0x3c   : > { %v1058_v16 = vmul.f32 %v1415_v54, %v898_v58  ;;  %v774_v26 = vmul.f32 %v1732_v20, %v742_v15  ;;  %v900_v33 = vmul.f32 %v1708_v34, %v868_v22  ;;  %v743_v46 = vadd.f32 1.4214138, %v711_v29 }
  0x3d   : > { %v1089_v24 = vsub.f32 1.0, %v1057_v8  ;;  %v1059_v32 = vmul.f32 %v1419_v13, %v899_v21  ;;  %v837_v36 = vmul.f32 %v1718_v3, %v805_v45  ;;  %v712_v13 = vmul.f32 %v1766_v12, %v680_v50  ;;  %v253_v21 = vld [vmem:[%s1611_s22 + $0x50] sm:$0xff] }
  0x3e   : > { %v1090_v23 = vsub.f32 1.0, %v1058_v16  ;;  %v806_v42 = vadd.f32 -0.28449672, %v774_v26  ;;  %v1060_v58 = vmul.f32 %v1423_v25, %v900_v33  ;;  %1436 = vrcp.f32 %v553_v19 }
  0x3f   : > { %v1121_v54 = vmul.f32 %v1089_v24, %v1670_v56  ;;  %v1091_v57 = vsub.f32 1.0, %v1059_v32  ;;  %v869_v60 = vadd.f32 0.2548296, %v837_v36  ;;  %v744_v16 = vadd.f32 1.4214138, %v712_v13 }
  0x40   : > { %v1122_v27 = vmul.f32 %v1090_v23, %v1680_v63  ;;  %v838_v34 = vmul.f32 %v1732_v20, %v806_v42  ;;  %v775_v63 = vmul.f32 %v1745_v40, %v743_v46  ;;  %v1092_v5 = vsub.f32 1.0, %v1060_v58 }
  0x41   : > { %v1153_v52 = vadd.f32 1.0, %v1121_v54  ;;  %v1123_v25 = vmul.f32 %v1091_v57, %v1684_v1  ;;  %v901_v8 = vmul.f32 %v1718_v3, %v869_v60  ;;  %v776_v3 = vmul.f32 %v1766_v12, %v744_v16 }
  0x42   : > { %v1154_v56 = vadd.f32 1.0, %v1122_v27  ;;  %v870_v10 = vadd.f32 0.2548296, %v838_v34  ;;  %v807_v11 = vadd.f32 -0.28449672, %v775_v63  ;;  %v1124_v17 = vmul.f32 %v1092_v5, %v1724_v6 }
  0x43   : > { %v1185_v61 = vmul.f32 %v1153_v52, %v1650_v37  ;;  %v1155_v15 = vadd.f32 1.0, %v1123_v25  ;;  %v1061_v24 = vmul.f32 %v1741_v30, %v901_v8  ;;  %v453_v37 = vsel %vm421_vm5, 1.0, %v1558_v55 }
  0x44   : > { %v1186_v9 = vmul.f32 %v1154_v56, %v1652_v38  ;;  %v902_v38 = vmul.f32 %v1732_v20, %v870_v10  ;;  %v839_v1 = vmul.f32 %v1745_v40, %v807_v11  ;;  %v1156_v6 = vadd.f32 1.0, %v1124_v17  ;;  %v256_v17 = vld [vmem:[%s1611_s22 + $0x68] sm:$0xff] }
  0x45   : > { %1218 = vst.msk [vmem:[%s1784_s28] sm:$0xff] %vm1217_vm4, %v1185_v61  ;;  %v1187_v22 = vmul.f32 %v1155_v15, %v1654_v39  ;;  %v1093_v30 = vsub.f32 1.0, %v1061_v24  ;;  %v454_v19 = vsel %vm422_vm6, 1.0, %v1558_v55  ;;  %v808_v23 = vadd.f32 -0.28449672, %v776_v3 }
  0x46   : > { %1219 = vst.msk [vmem:[%s1784_s28 + $0x8] sm:$0xff] %vm1217_vm4, %v1186_v9  ;;  %v1062_v45 = vmul.f32 %v1753_v44, %v902_v38  ;;  %v871_v48 = vadd.f32 0.2548296, %v839_v1  ;;  %v937_v20 = vsub.f32 0.0, %v1748_v43  ;;  %v1188_v26 = vmul.f32 %v1156_v6, %v1657_v47 }
  0x47   : > { %1220 = vst.msk [vmem:[%s1784_s28 + $0x10] sm:$0xff] %vm1217_vm4, %v1187_v22  ;;  %v1125_v29 = vmul.f32 %v1093_v30, %v453_v37  ;;  %v1816_v39 = vmul.f32 0.70710677, %v1751_v35  ;;  %v292_v31 = vmul.f32 %v1620_v0, %v253_v21  ;;  %v840_v44 = vmul.f32 %v1766_v12, %v808_v23 }
  0x48   : > { %v1094_v54 = vsub.f32 1.0, %v1062_v45  ;;  %v903_v59 = vmul.f32 %v1745_v40, %v871_v48  ;;  %1221 = vst.msk [vmem:[%s1784_s28 + $0x18] sm:$0xff] %vm1217_vm4, %v1188_v26  ;;  %v358_v36 = vmul.f32 0.5, %v1663_v49  ;;  %v455_v50 = vsel %vm423_vm7, 1.0, %v1558_v55  ;;  %v1836_v49 = vpop.eup %1436 }
  0x49   : > { %v1157_v32 = vadd.f32 1.0, %v1125_v29  ;;  %v490_v33 = vand.u32 2147483647, %v1816_v39  ;;  %v1826_v47 = vadd.f32 %v1624_v2, %v292_v31  ;;  %v872_v46 = vadd.f32 0.2548296, %v840_v44 }
  0x4a   : > { %v1126_v27 = vmul.f32 %v1094_v54, %v454_v19  ;;  %v1063_v42 = vmul.f32 %v1761_v7, %v903_v59  ;;  %v969_v52 = vmul.f32 %v937_v20, %v1748_v43  ;;  %v359_v7 = vmul.f32 0.5, %v1666_v51  ;;  %v255_v51 = vld [vmem:[%s1611_s22 + $0x60] sm:$0xff]  ;;  %v257_v20 = vld [vmem:[%s1611_s22 + $0x70] sm:$0xff] }
  0x4b   : > { %v1189_v40 = vmul.f32 %v1157_v32, %v1738_v28  ;;  %v522_v57 = vmul.f32 0.3275911, %v490_v33  ;;  %v904_v56 = vmul.f32 %v1766_v12, %v872_v46  ;;  %v1842_v34 = vmul.f32 0.70710677, %v1826_v47 }
  0x4c   : > { %v1158_v58 = vadd.f32 1.0, %v1126_v27  ;;  %v1095_v60 = vsub.f32 1.0, %v1063_v42  ;;  %v293_v43 = vmul.f32 %v1620_v0, %v254_v4  ;;  %v649_v12 = vmul.f32 1.0614054, %v1836_v49  ;;  %v258_v4 = vld [vmem:[%s1611_s22 + $0x78] sm:$0xff] }
  0x4d   : > { %1222 = vst.msk [vmem:[%s1784_s28 + $0x20] sm:$0xff] %vm1217_vm4, %v1189_v40  ;;  %v554_v28 = vadd.f32 1.0, %v522_v57  ;;  %v1064_v14 = vmul.f32 %v1776_v41, %v904_v56  ;;  %v456_v61 = vsel %vm424_vm8, 1.0, %v1558_v55  ;;  %v1009_v25 = vmul.f32 1.442695, %v969_v52 }
  0x4e   : > { %v1190_v63 = vmul.f32 %v1158_v58, %v358_v36  ;;  %v1127_v13 = vmul.f32 %v1095_v60, %v455_v50  ;;  %v491_v5 = vand.u32 2147483647, %v1842_v34  ;;  %v681_v10 = vadd.f32 -1.4531521, %v649_v12 }
  0x4f   : > { %1438 = vrcp.f32 %v554_v28  ;;  %v1096_v9 = vsub.f32 1.0, %v1064_v14  ;;  %v360_v11 = vmul.f32 0.5, %v1676_v62  ;;  %v938_v16 = vsub.f32 0.0, %v490_v33 }
  0x50   : > { %1223 = vst.msk [vmem:[%s1784_s28 + $0x28] sm:$0xff] %vm1217_vm4, %v1190_v63  ;;  %v1159_v8 = vadd.f32 1.0, %v1127_v13  ;;  %v523_v15 = vmul.f32 0.3275911, %v491_v5  ;;  %v1854_v41 = vadd.f32 %v1624_v2, %v293_v43  ;;  %v713_v38 = vmul.f32 %v1836_v49, %v681_v10 }
  0x51   : > { %v1128_v37 = vmul.f32 %v1096_v9, %v456_v61  ;;  %v294_v1 = vmul.f32 %v1620_v0, %v255_v51  ;;  %1440 = vpow2.f32 %v1009_v25  ;;  %v295_v30 = vmul.f32 %v1620_v0, %v256_v17 }
  0x52   : > { %v1191_v24 = vmul.f32 %v1159_v8, %v359_v7  ;;  %v555_v3 = vadd.f32 1.0, %v523_v15  ;;  %v1860_v21 = vmul.f32 0.70710677, %v1854_v41  ;;  %v745_v22 = vadd.f32 1.4214138, %v713_v38 }
  0x53   : > { %v1160_v62 = vadd.f32 1.0, %v1128_v37  ;;  %v1865_v6 = vadd.f32 %v1624_v2, %v294_v1  ;;  %v970_v23 = vmul.f32 %v938_v16, %v490_v33  ;;  %v1873_v26 = vmul.f32 0.5, %v1713_v53 }
  0x54   : > { %1224 = vst.msk [vmem:[%s1784_s28 + $0x30] sm:$0xff] %vm1217_vm4, %v1191_v24  ;;  %1442 = vrcp.f32 %v555_v3  ;;  %v492_v19 = vand.u32 2147483647, %v1860_v21  ;;  %v777_v48 = vmul.f32 %v1836_v49, %v745_v22  ;;  %vm426_vm10 = vcmp.ge.f32.partialorder %v1816_v39, 0.0 }
  0x55   : > { %v1192_v45 = vmul.f32 %v1160_v62, %v360_v11  ;;  %v1877_v31 = vmul.f32 0.70710677, %v1865_v6  ;;  %v457_v18 = vsel %vm425_vm9, 1.0, %v1558_v55  ;;  %v1883_v59 = vmul.f32 0.5, %v1751_v35 }
  0x56   : > { %v524_v29 = vmul.f32 0.3275911, %v492_v19  ;;  %v809_v54 = vadd.f32 -0.28449672, %v777_v48  ;;  %v1886_v44 = vadd.f32 %v1624_v2, %v295_v30  ;;  %v939_v32 = vsub.f32 0.0, %v491_v5 }
  0x57   : > { %1225 = vst.msk [vmem:[%s1784_s28 + $0x38] sm:$0xff] %vm1217_vm4, %v1192_v45  ;;  %v493_v33 = vand.u32 2147483647, %v1877_v31  ;;  %v296_v36 = vmul.f32 %v1620_v0, %v257_v20  ;;  %v1894_v42 = vsel %vm426_vm10, 1.0, %v1558_v55  ;;  %v1011_v35 = vmul.f32 1.442695, %v970_v23 }
  0x58   : > { %v556_v39 = vadd.f32 1.0, %v524_v29  ;;  %v841_v27 = vmul.f32 %v1836_v49, %v809_v54  ;;  %v1899_v40 = vmul.f32 0.5, %v1826_v47  ;;  %vm427_vm11 = vcmp.ge.f32.partialorder %v1842_v34, 0.0 }
  0x59   : > { %v1888_v53 = vpop.eup %1438  ;;  %v525_v50 = vmul.f32 0.3275911, %v493_v33  ;;  %v1903_v58 = vmul.f32 0.70710677, %v1886_v44  ;;  %v971_v56 = vmul.f32 %v939_v32, %v491_v5  ;;  %v1906_v28 = vadd.f32 %v1624_v2, %v296_v36 }
  0x5a   : > { %v650_v46 = vmul.f32 1.0614054, %v1888_v53  ;;  %1444 = vrcp.f32 %v556_v39  ;;  %v873_v52 = vadd.f32 0.2548296, %v841_v27  ;;  %v297_v43 = vmul.f32 %v1620_v0, %v258_v4 }
  0x5b   : > { %v1441_v60 = vpop.eup %1440  ;;  %v557_v7 = vadd.f32 1.0, %v525_v50  ;;  %1446 = vpow2.f32 %v1011_v35  ;;  %v494_v13 = vand.u32 2147483647, %v1903_v58  ;;  %v1917_v12 = vsel %vm427_vm11, 1.0, %v1558_v55  ;;  %v259_v35 = vld [vmem:[%s1611_s22 + $0x80] sm:$0xff] }
  0x5c   : > { %v682_v57 = vadd.f32 -1.4531521, %v650_v46  ;;  %v905_v47 = vmul.f32 %v1836_v49, %v873_v52  ;;  %vm428_vm12 = vcmp.ge.f32.partialorder %v1860_v21, 0.0  ;;  %v940_v61 = vsub.f32 0.0, %v492_v19 }
  0x5d   : > { %1448 = vrcp.f32 %v557_v7  ;;  %v526_v51 = vmul.f32 0.3275911, %v494_v13  ;;  %v1013_v8 = vmul.f32 1.442695, %v971_v56  ;;  %v941_v9 = vsub.f32 0.0, %v493_v33 }
  0x5e   : > { %v714_v63 = vmul.f32 %v1888_v53, %v682_v57  ;;  %v1912_v14 = vpop.eup %1442  ;;  %v1065_v25 = vmul.f32 %v1441_v60, %v905_v47  ;;  %v1922_v10 = vmul.f32 0.70710677, %v1906_v28  ;;  %v1925_v11 = vadd.f32 %v1624_v2, %v297_v43 }
  0x5f   : > { %v651_v49 = vmul.f32 1.0614054, %v1912_v14  ;;  %v558_v17 = vadd.f32 1.0, %v526_v51  ;;  %v1929_v24 = vmul.f32 0.5, %v1854_v41  ;;  %v1934_v37 = vsel %vm428_vm12, 1.0, %v1558_v55 }
  0x60   : > { %v746_v5 = vadd.f32 1.4214138, %v714_v63  ;;  %v1097_v34 = vsub.f32 1.0, %v1065_v25  ;;  %v972_v38 = vmul.f32 %v940_v61, %v492_v19  ;;  %v495_v1 = vand.u32 2147483647, %v1922_v10 }
  0x61   : > { %v683_v15 = vadd.f32 -1.4531521, %v651_v49  ;;  %1450 = vrcp.f32 %v558_v17  ;;  %v973_v45 = vmul.f32 %v941_v9, %v493_v33  ;;  %v1941_v48 = vmul.f32 0.70710677, %v1925_v11 }
  0x62   : > { %v778_v16 = vmul.f32 %v1888_v53, %v746_v5  ;;  %v1129_v3 = vmul.f32 %v1097_v34, %v457_v18  ;;  %1452 = vpow2.f32 %v1013_v8  ;;  %v527_v41 = vmul.f32 0.3275911, %v495_v1 }
  0x63   : > { %v715_v22 = vmul.f32 %v1912_v14, %v683_v15  ;;  %v1015_v29 = vmul.f32 1.442695, %v972_v38  ;;  %v1946_v18 = vmul.f32 0.5, %v1865_v6  ;;  %v942_v54 = vsub.f32 0.0, %v494_v13 }
  0x64   : > { %v810_v62 = vadd.f32 -0.28449672, %v778_v16  ;;  %v1938_v30 = vpop.eup %1444  ;;  %v1161_v21 = vadd.f32 1.0, %v1129_v3  ;;  %v559_v32 = vadd.f32 1.0, %v527_v41  ;;  %vm429_vm13 = vcmp.ge.f32.partialorder %v1877_v31, 0.0  ;;  %v260_v16 = vld [vmem:[%s1611_s22 + $0x88] sm:$0xff] }
  0x65   : > { %v747_v19 = vadd.f32 1.4214138, %v715_v22  ;;  %v652_v20 = vmul.f32 1.0614054, %v1938_v30  ;;  %v1447_v39 = vpop.eup %1446  ;;  %v1017_v50 = vmul.f32 1.442695, %v973_v45  ;;  %v974_v56 = vmul.f32 %v942_v54, %v494_v13 }
  0x66   : > { %v842_v23 = vmul.f32 %v1888_v53, %v810_v62  ;;  %v1193_v33 = vmul.f32 %v1161_v21, %v1873_v26  ;;  %1454 = vrcp.f32 %v559_v32  ;;  %v1955_v52 = vand.u32 2147483647, %v1941_v48 }
  0x67   : > { %v779_v27 = vmul.f32 %v1912_v14, %v747_v19  ;;  %v684_v46 = vadd.f32 -1.4531521, %v652_v20  ;;  %v1951_v4 = vpop.eup %1448  ;;  %1456 = vpow2.f32 %v1015_v29  ;;  %v298_v43 = vmul.f32 %v1620_v0, %v259_v35 }
  0x68   : > { %v874_v36 = vadd.f32 0.2548296, %v842_v23  ;;  %1226 = vst.msk [vmem:[%s1784_s28 + $0x40] sm:$0xff] %vm1217_vm4, %v1193_v33  ;;  %v653_v60 = vmul.f32 1.0614054, %v1951_v4  ;;  %1458 = vpow2.f32 %v1017_v50  ;;  %v943_v5 = vsub.f32 0.0, %v495_v1 }
  0x69   : > { %v811_v57 = vadd.f32 -0.28449672, %v779_v27  ;;  %v716_v26 = vmul.f32 %v1938_v30, %v684_v46  ;;  %v528_v7 = vmul.f32 0.3275911, %v1955_v52  ;;  %v1966_v49 = vadd.f32 %v1624_v2, %v298_v43 }
  0x6a   : > { %v906_v6 = vmul.f32 %v1888_v53, %v874_v36  ;;  %v685_v25 = vadd.f32 -1.4531521, %v653_v60  ;;  %v1976_v17 = vsel %vm429_vm13, 1.0, %v1558_v55  ;;  %v1019_v3 = vmul.f32 1.442695, %v974_v56 }
  0x6b   : > { %v843_v63 = vmul.f32 %v1912_v14, %v811_v57  ;;  %v748_v61 = vadd.f32 1.4214138, %v716_v26  ;;  %v560_v53 = vadd.f32 1.0, %v528_v7  ;;  %v1968_v51 = vpop.eup %1450  ;;  %v975_v23 = vmul.f32 %v943_v5, %v495_v1 }
  0x6c   : > { %v1066_v47 = vmul.f32 %v1447_v39, %v906_v6  ;;  %v717_v34 = vmul.f32 %v1951_v4, %v685_v25  ;;  %v1453_v15 = vpop.eup %1452  ;;  %v654_v38 = vmul.f32 1.0614054, %v1968_v51  ;;  %v1982_v19 = vmul.f32 0.70710677, %v1966_v49 }
  0x6d   : > { %v875_v13 = vadd.f32 0.2548296, %v843_v63  ;;  %v780_v9 = vmul.f32 %v1938_v30, %v748_v61  ;;  %1460 = vrcp.f32 %v560_v53  ;;  %v299_v20 = vmul.f32 %v1620_v0, %v260_v16 }
  0x6e   : > { %v1098_v8 = vsub.f32 1.0, %v1066_v47  ;;  %v749_v41 = vadd.f32 1.4214138, %v717_v34  ;;  %v686_v21 = vadd.f32 -1.4531521, %v654_v38  ;;  %1462 = vpow2.f32 %v1019_v3  ;;  %v261_v38 = vld [vmem:[%s1611_s22 + $0x90] sm:$0xff] }
  0x6f   : > { %v907_v22 = vmul.f32 %v1912_v14, %v875_v13  ;;  %v812_v45 = vadd.f32 -0.28449672, %v780_v9  ;;  %v944_v14 = vsub.f32 0.0, %v1955_v52  ;;  %v1992_v1 = vand.u32 2147483647, %v1982_v19 }
  0x70   : > { %v1130_v62 = vmul.f32 %v1098_v8, %v1894_v42  ;;  %v781_v32 = vmul.f32 %v1951_v4, %v749_v41  ;;  %v1987_v39 = vpop.eup %1454  ;;  %v718_v42 = vmul.f32 %v1968_v51, %v686_v21  ;;  %v1021_v57 = vmul.f32 1.442695, %v975_v23 }
  0x71   : > { %v1067_v29 = vmul.f32 %v1453_v15, %v907_v22  ;;  %v844_v54 = vmul.f32 %v1938_v30, %v812_v45  ;;  %v1457_v35 = vpop.eup %1456  ;;  %v655_v6 = vmul.f32 1.0614054, %v1987_v39  ;;  %v1997_v26 = vadd.f32 %v1624_v2, %v299_v20 }
  0x72   : > { %v1162_v31 = vadd.f32 1.0, %v1130_v62  ;;  %v813_v46 = vadd.f32 -0.28449672, %v781_v32  ;;  %v750_v50 = vadd.f32 1.4214138, %v718_v42  ;;  %v1459_v43 = vpop.eup %1458  ;;  %v2006_v47 = vmul.f32 0.5, %v1886_v44 }
  0x73   : > { %v1099_v36 = vsub.f32 1.0, %v1067_v29  ;;  %v876_v27 = vadd.f32 0.2548296, %v844_v54  ;;  %v687_v61 = vadd.f32 -1.4531521, %v655_v6  ;;  %v976_v25 = vmul.f32 %v944_v14, %v1955_v52 }
  0x74   : > { %v1194_v33 = vmul.f32 %v1162_v31, %v1883_v59  ;;  %v845_v7 = vmul.f32 %v1951_v4, %v813_v46  ;;  %v529_v59 = vmul.f32 0.3275911, %v1992_v1  ;;  %v782_v63 = vmul.f32 %v1968_v51, %v750_v50  ;;  %v262_v50 = vld [vmem:[%s1611_s22 + $0x98] sm:$0xff] }
  0x75   : > { %v1131_v60 = vmul.f32 %v1099_v36, %v1917_v12  ;;  %v908_v56 = vmul.f32 %v1938_v30, %v876_v27  ;;  %v719_v9 = vmul.f32 %v1987_v39, %v687_v61  ;;  %1464 = vpow2.f32 %v1021_v57 }
  0x76   : > { %1227 = vst.msk [vmem:[%s1784_s28 + $0x48] sm:$0xff] %vm1217_vm4, %v1194_v33  ;;  %v877_v8 = vadd.f32 0.2548296, %v845_v7  ;;  %v561_v12 = vadd.f32 1.0, %v529_v59  ;;  %v814_v13 = vadd.f32 -0.28449672, %v782_v63  ;;  %v300_v29 = vmul.f32 %v1620_v0, %v261_v38 }
  0x77   : > { %v1163_v5 = vadd.f32 1.0, %v1131_v60  ;;  %v1068_v53 = vmul.f32 %v1457_v35, %v908_v56  ;;  %v2010_v30 = vpop.eup %1460  ;;  %v2014_v44 = vmul.f32 0.70710677, %v1997_v26  ;;  %v751_v62 = vadd.f32 1.4214138, %v719_v9 }
  0x78   : > { %v909_v15 = vmul.f32 %v1951_v4, %v877_v8  ;;  %v656_v52 = vmul.f32 1.0614054, %v2010_v30  ;;  %v846_v3 = vmul.f32 %v1968_v51, %v814_v13  ;;  %v1023_v22 = vmul.f32 1.442695, %v976_v25 }
  0x79   : > { %v1195_v34 = vmul.f32 %v1163_v5, %v1899_v40  ;;  %v1100_v16 = vsub.f32 1.0, %v1068_v53  ;;  %1466 = vrcp.f32 %v561_v12  ;;  %v945_v23 = vsub.f32 0.0, %v1992_v1  ;;  %v1463_v40 = vpop.eup %1462  ;;  %v263_v5 = vld [vmem:[%s1611_s22 + $0xa0] sm:$0xff] }
  0x7a   : > { %v1069_v41 = vmul.f32 %v1459_v43, %v909_v15  ;;  %v688_v21 = vadd.f32 -1.4531521, %v656_v52  ;;  %v878_v20 = vadd.f32 0.2548296, %v846_v3  ;;  %v783_v4 = vmul.f32 %v1987_v39, %v751_v62  ;;  %v2066_v15 = vld [vmem:[%s1617_s25] ss:$0 sm:$0xff] }
  0x7b   : > { %1228 = vst.msk [vmem:[%s1784_s28 + $0x50] sm:$0xff] %vm1217_vm4, %v1195_v34  ;;  %v1132_v45 = vmul.f32 %v1100_v16, %v1934_v37  ;;  %v2027_v31 = vand.u32 2147483647, %v2014_v44  ;;  %vm430_vm14 = vcmp.ge.f32.partialorder %v1903_v58, 0.0  ;;  %1468 = vpow2.f32 %v1023_v22 }
  0x7c   : > { %v1101_v32 = vsub.f32 1.0, %v1069_v41  ;;  %v720_v37 = vmul.f32 %v2010_v30, %v688_v21  ;;  %v910_v42 = vmul.f32 %v1968_v51, %v878_v20  ;;  %v815_v14 = vadd.f32 -0.28449672, %v783_v4 }
  0x7d   : > { %v1164_v54 = vadd.f32 1.0, %v1132_v45  ;;  %v530_v33 = vmul.f32 0.3275911, %v2027_v31  ;;  %v2037_v35 = vadd.f32 %v1624_v2, %v300_v29  ;;  %v977_v60 = vmul.f32 %v945_v23, %v1992_v1 }
  0x7e   : > { %v1133_v27 = vmul.f32 %v1101_v32, %v1976_v17  ;;  %v752_v46 = vadd.f32 1.4214138, %v720_v37  ;;  %v1070_v6 = vmul.f32 %v1463_v40, %v910_v42  ;;  %v847_v57 = vmul.f32 %v1987_v39, %v815_v14  ;;  %v264_v42 = vld [vmem:[%s1611_s22 + $0xa8] sm:$0xff] }
  0x7f   : > { %v1196_v36 = vmul.f32 %v1164_v54, %v1929_v24  ;;  %v562_v51 = vadd.f32 1.0, %v530_v33  ;;  %v462_v24 = vsel %vm430_vm14, 1.0, %v1558_v55  ;;  %v2049_v2 = vmul.f32 0.70710677, %v2037_v35  ;;  %v1465_v7 = vpop.eup %1464 }
  0x80   : > { %v1165_v56 = vadd.f32 1.0, %v1133_v27  ;;  %v784_v17 = vmul.f32 %v2010_v30, %v752_v46  ;;  %v1102_v59 = vsub.f32 1.0, %v1070_v6  ;;  %v879_v43 = vadd.f32 0.2548296, %v847_v57 }
  0x81   : > { %1229 = vst.msk [vmem:[%s1784_s28 + $0x58] sm:$0xff] %vm1217_vm4, %v1196_v36  ;;  %1470 = vrcp.f32 %v562_v51  ;;  %v301_v1 = vmul.f32 %v1620_v0, %v262_v50  ;;  %v367_v61 = vmul.f32 0.5, %v1906_v28  ;;  %v499_v58 = vand.u32 2147483647, %v2049_v2 }
  0x82   : > { %v1197_v63 = vmul.f32 %v1165_v56, %v1946_v18  ;;  %v816_v25 = vadd.f32 -0.28449672, %v784_v17  ;;  %v1134_v8 = vmul.f32 %v1102_v59, %v462_v24  ;;  %vm431_vm15 = vcmp.ge.f32.partialorder %v1922_v10, 0.0  ;;  %v2072_v10 = vld [vmem:[%s1604_s19] ss:$0 sm:$0xff]  ;;  %v265_v59 = vld [vmem:[%s1611_s22 + $0xb0] sm:$0xff] }
  0x83   : > { %v2056_v53 = vpop.eup %1466  ;;  %v911_v12 = vmul.f32 %v1987_v39, %v879_v43  ;;  %v1025_v13 = vmul.f32 1.442695, %v977_v60  ;;  %v946_v18 = vsub.f32 0.0, %v2027_v31  ;;  %v531_v9 = vmul.f32 0.3275911, %v499_v58 }
  0x84   : > { %1230 = vst.msk [vmem:[%s1784_s28 + $0x60] sm:$0xff] %vm1217_vm4, %v1197_v63  ;;  %v848_v0 = vmul.f32 %v2010_v30, %v816_v25  ;;  %v657_v28 = vmul.f32 1.0614054, %v2056_v53  ;;  %v1166_v34 = vadd.f32 1.0, %v1134_v8  ;;  %v2069_v52 = vadd.f32 %v2066_v15, %v301_v1 }
  0x85   : > { %v1071_v16 = vmul.f32 %v1465_v7, %v911_v12  ;;  %v302_v39 = vmul.f32 %v2072_v10, %v263_v5  ;;  %v463_v38 = vsel %vm431_vm15, 1.0, %v1558_v55  ;;  %v563_v22 = vadd.f32 1.0, %v531_v9  ;;  %v1469_v45 = vpop.eup %1468 }
  0x86   : > { %v880_v3 = vadd.f32 0.2548296, %v848_v0  ;;  %v689_v62 = vadd.f32 -1.4531521, %v657_v28  ;;  %v1198_v41 = vmul.f32 %v1166_v34, %v2006_v47  ;;  %1472 = vpow2.f32 %v1025_v13 }
  0x87   : > { %v1103_v21 = vsub.f32 1.0, %v1071_v16  ;;  %v2078_v23 = vmul.f32 0.70710677, %v2069_v52  ;;  %vm432_vm0 = vcmp.ge.f32.partialorder %v1941_v48, 0.0  ;;  %1474 = vrcp.f32 %v563_v22  ;;  %v266_v22 = vld [vmem:[%s1611_s22 + $0xb8] sm:$0xff] }
  0x88   : > { %v912_v40 = vmul.f32 %v2010_v30, %v880_v3  ;;  %v721_v20 = vmul.f32 %v2056_v53, %v689_v62  ;;  %1231 = vst.msk [vmem:[%s1784_s28 + $0x68] sm:$0xff] %vm1217_vm4, %v1198_v41  ;;  %v978_v29 = vmul.f32 %v946_v18, %v2027_v31  ;;  %v2088_v47 = vadd.f32 %v2066_v15, %v302_v39 }
  0x89   : > { %v1135_v4 = vmul.f32 %v1103_v21, %v463_v38  ;;  %v500_v54 = vand.u32 2147483647, %v2078_v23  ;;  %v464_v30 = vsel %vm432_vm0, 1.0, %v1558_v55  ;;  %v947_v33 = vsub.f32 0.0, %v499_v58 }
  0x8a   : > { %v1072_v32 = vmul.f32 %v1469_v45, %v912_v40  ;;  %v753_v37 = vadd.f32 1.4214138, %v721_v20  ;;  %v2097_v50 = vmul.f32 0.70710677, %v2088_v47  ;;  %v1027_v57 = vmul.f32 1.442695, %v978_v29 }
  0x8b   : > { %v2091_v14 = vpop.eup %1470  ;;  %v1167_v48 = vadd.f32 1.0, %v1135_v4  ;;  %v532_v36 = vmul.f32 0.3275911, %v500_v54  ;;  %v303_v51 = vmul.f32 %v2072_v10, %v264_v42  ;;  %v368_v56 = vmul.f32 0.5, %v1925_v11 }
  0x8c   : > { %v1104_v27 = vsub.f32 1.0, %v1072_v32  ;;  %v785_v31 = vmul.f32 %v2056_v53, %v753_v37  ;;  %v658_v46 = vmul.f32 1.0614054, %v2091_v14  ;;  %v2105_v43 = vmul.f32 0.5, %v1966_v49 }
  0x8d   : > { %v1199_v6 = vmul.f32 %v1167_v48, %v367_v61  ;;  %v564_v60 = vadd.f32 1.0, %v532_v36  ;;  %v979_v1 = vmul.f32 %v947_v33, %v499_v58  ;;  %v501_v63 = vand.u32 2147483647, %v2097_v50 }
  0x8e   : > { %v1136_v24 = vmul.f32 %v1104_v27, %v464_v30  ;;  %v817_v17 = vadd.f32 -0.28449672, %v785_v31  ;;  %v690_v7 = vadd.f32 -1.4531521, %v658_v46  ;;  %v2111_v11 = vadd.f32 %v2066_v15, %v303_v51 }
  0x8f   : > { %1232 = vst.msk [vmem:[%s1784_s28 + $0x70] sm:$0xff] %vm1217_vm4, %v1199_v6  ;;  %1476 = vrcp.f32 %v564_v60  ;;  %vm433_vm1 = vcmp.ge.f32.partialorder %v1982_v19, 0.0  ;;  %v533_v12 = vmul.f32 0.3275911, %v501_v63  ;;  %v304_v49 = vmul.f32 %v2072_v10, %v265_v59 }
  0x90   : > { %v1168_v61 = vadd.f32 1.0, %v1136_v24  ;;  %v849_v25 = vmul.f32 %v2056_v53, %v817_v17  ;;  %v722_v5 = vmul.f32 %v2091_v14, %v690_v7  ;;  %v1473_v8 = vpop.eup %1472  ;;  %1478 = vpow2.f32 %v1027_v57 }
  0x91   : > { %v2115_v58 = vpop.eup %1474  ;;  %vm434_vm2 = vcmp.ge.f32.partialorder %v2014_v44, 0.0  ;;  %v948_v9 = vsub.f32 0.0, %v500_v54  ;;  %v565_v34 = vadd.f32 1.0, %v533_v12  ;;  %v2120_v16 = vmul.f32 0.70710677, %v2111_v11 }
  0x92   : > { %v1200_v13 = vmul.f32 %v1168_v61, %v368_v56  ;;  %v881_v0 = vadd.f32 0.2548296, %v849_v25  ;;  %v754_v28 = vadd.f32 1.4214138, %v722_v5  ;;  %v659_v18 = vmul.f32 1.0614054, %v2115_v58 }
  0x93   : > { %v1029_v3 = vmul.f32 1.442695, %v979_v1  ;;  %v2127_v62 = vadd.f32 %v2066_v15, %v304_v49  ;;  %v465_v45 = vsel %vm433_vm1, 1.0, %v1558_v55  ;;  %v2134_v41 = vmul.f32 0.5, %v1997_v26 }
  0x94   : > { %1233 = vst.msk [vmem:[%s1784_s28 + $0x78] sm:$0xff] %vm1217_vm4, %v1200_v13  ;;  %v913_v39 = vmul.f32 %v2056_v53, %v881_v0  ;;  %v786_v38 = vmul.f32 %v2091_v14, %v754_v28  ;;  %v691_v21 = vadd.f32 -1.4531521, %v659_v18  ;;  %1480 = vrcp.f32 %v565_v34  ;;  %v267_v13 = vld [vmem:[%s1611_s22 + $0xc0] sm:$0xff] }
  0x95   : > { %v466_v53 = vsel %vm434_vm2, 1.0, %v1558_v55  ;;  %v502_v4 = vand.u32 2147483647, %v2120_v16  ;;  %v980_v32 = vmul.f32 %v948_v9, %v500_v54  ;;  %v2142_v37 = vmul.f32 0.70710677, %v2127_v62 }
  0x96   : > { %v1073_v40 = vmul.f32 %v1473_v8, %v913_v39  ;;  %v818_v20 = vadd.f32 -0.28449672, %v786_v38  ;;  %v723_v29 = vmul.f32 %v2115_v58, %v691_v21  ;;  %v305_v19 = vmul.f32 %v2072_v10, %v266_v22 }
  0x97   : > { %1482 = vpow2.f32 %v1029_v3  ;;  %v534_v48 = vmul.f32 0.3275911, %v502_v4  ;;  %vm435_vm3 = vcmp.ge.f32.partialorder %v2049_v2, 0.0  ;;  %v949_v33 = vsub.f32 0.0, %v501_v63 }
  0x98   : > { %v1105_v26 = vsub.f32 1.0, %v1073_v40  ;;  %v850_v42 = vmul.f32 %v2091_v14, %v818_v20  ;;  %v755_v44 = vadd.f32 1.4214138, %v723_v29  ;;  %v2150_v36 = vand.u32 2147483647, %v2142_v37 }
  0x99   : > { %v2146_v30 = vpop.eup %1476  ;;  %v566_v46 = vadd.f32 1.0, %v534_v48  ;;  %v1031_v60 = vmul.f32 1.442695, %v980_v32  ;;  %v2156_v56 = vadd.f32 %v2066_v15, %v305_v19  ;;  %v2160_v59 = vmul.f32 0.5, %v2037_v35 }
  0x9a   : > { %v1137_v54 = vmul.f32 %v1105_v26, %v465_v45  ;;  %v882_v27 = vadd.f32 0.2548296, %v850_v42  ;;  %v660_v31 = vmul.f32 1.0614054, %v2146_v30  ;;  %v1479_v6 = vpop.eup %1478  ;;  %v787_v57 = vmul.f32 %v2115_v58, %v755_v44 }
  0x9b   : > { %v535_v51 = vmul.f32 0.3275911, %v2150_v36  ;;  %1484 = vrcp.f32 %v566_v46  ;;  %v981_v61 = vmul.f32 %v949_v33, %v501_v63  ;;  %v467_v12 = vsel %vm435_vm3, 1.0, %v1558_v55 }
  0x9c   : > { %v1169_v24 = vadd.f32 1.0, %v1137_v54  ;;  %v914_v17 = vmul.f32 %v2091_v14, %v882_v27  ;;  %v692_v7 = vadd.f32 -1.4531521, %v660_v31  ;;  %v819_v1 = vadd.f32 -0.28449672, %v787_v57  ;;  %v268_v54 = vld [vmem:[%s1611_s22 + $0xc8] sm:$0xff] }
  0x9d   : > { %v567_v25 = vadd.f32 1.0, %v535_v51  ;;  %1486 = vpow2.f32 %v1031_v60  ;;  %v950_v35 = vsub.f32 0.0, %v502_v4  ;;  %v2172_v28 = vmul.f32 0.70710677, %v2156_v56 }
  0x9e   : > { %v1201_v5 = vmul.f32 %v1169_v24, %v2105_v43  ;;  %v1074_v8 = vmul.f32 %v1479_v6, %v914_v17  ;;  %v724_v49 = vmul.f32 %v2146_v30, %v692_v7  ;;  %v2168_v14 = vpop.eup %1480  ;;  %v851_v0 = vmul.f32 %v2115_v58, %v819_v1 }
  0x9f   : > { %v661_v18 = vmul.f32 1.0614054, %v2168_v14  ;;  %1488 = vrcp.f32 %v567_v25  ;;  %v2178_v9 = vmul.f32 0.5, %v2069_v52  ;;  %v1033_v34 = vmul.f32 1.442695, %v981_v61 }
  0xa0   : > { %1234 = vst.msk [vmem:[%s1784_s28 + $0x80] sm:$0xff] %vm1217_vm4, %v1201_v5  ;;  %v1106_v43 = vsub.f32 1.0, %v1074_v8  ;;  %v756_v63 = vadd.f32 1.4214138, %v724_v49  ;;  %v883_v2 = vadd.f32 0.2548296, %v851_v0  ;;  %v306_v39 = vmul.f32 %v2072_v10, %v267_v13 }
  0xa1   : > { %v1483_v38 = vpop.eup %1482  ;;  %vm436_vm5 = vcmp.ge.f32.partialorder %v2078_v23, 0.0  ;;  %v693_v45 = vadd.f32 -1.4531521, %v661_v18  ;;  %v982_v40 = vmul.f32 %v950_v35, %v502_v4  ;;  %v504_v20 = vand.u32 2147483647, %v2172_v28 }
  0xa2   : > { %v1138_v3 = vmul.f32 %v1106_v43, %v466_v53  ;;  %v788_v22 = vmul.f32 %v2146_v30, %v756_v63  ;;  %v915_v21 = vmul.f32 %v2115_v58, %v883_v2  ;;  %v2186_v29 = vadd.f32 %v2066_v15, %v306_v39  ;;  %v269_v39 = vld [vmem:[%s1611_s22 + $0xd0] sm:$0xff] }
  0xa3   : > { %v725_v19 = vmul.f32 %v2168_v14, %v693_v45  ;;  %v951_v53 = vsub.f32 0.0, %v2150_v36  ;;  %v468_v26 = vsel %vm436_vm5, 1.0, %v1558_v55  ;;  %1490 = vpow2.f32 %v1033_v34 }
  0xa4   : > { %v1170_v52 = vadd.f32 1.0, %v1138_v3  ;;  %v820_v32 = vadd.f32 -0.28449672, %v788_v22  ;;  %v1075_v23 = vmul.f32 %v1483_v38, %v915_v21  ;;  %v536_v42 = vmul.f32 0.3275911, %v504_v20 }
  0xa5   : > { %v2191_v58 = vpop.eup %1484  ;;  %vm437_vm6 = vcmp.ge.f32.partialorder %v2097_v50, 0.0  ;;  %v757_v44 = vadd.f32 1.4214138, %v725_v19  ;;  %v2197_v33 = vmul.f32 0.70710677, %v2186_v29  ;;  %v307_v1 = vmul.f32 %v2072_v10, %v268_v54 }
  0xa6   : > { %v1202_v4 = vmul.f32 %v1170_v52, %v2134_v41  ;;  %v852_v48 = vmul.f32 %v2146_v30, %v820_v32  ;;  %v1107_v27 = vsub.f32 1.0, %v1075_v23  ;;  %v662_v31 = vmul.f32 1.0614054, %v2191_v58 }
  0xa7   : > { %v1035_v46 = vmul.f32 1.442695, %v982_v40  ;;  %v568_v6 = vadd.f32 1.0, %v536_v42  ;;  %v789_v60 = vmul.f32 %v2168_v14, %v757_v44  ;;  %v983_v41 = vmul.f32 %v951_v53, %v2150_v36  ;;  %v1487_v24 = vpop.eup %1486 }
  0xa8   : > { %1235 = vst.msk [vmem:[%s1784_s28 + $0x88] sm:$0xff] %vm1217_vm4, %v1202_v4  ;;  %v884_v57 = vadd.f32 0.2548296, %v852_v48  ;;  %v2206_v51 = vand.u32 2147483647, %v2197_v33  ;;  %v1139_v17 = vmul.f32 %v1107_v27, %v467_v12  ;;  %v952_v8 = vsub.f32 0.0, %v504_v20 }
  0xa9   : > { %v694_v7 = vadd.f32 -1.4531521, %v662_v31  ;;  %1492 = vrcp.f32 %v568_v6  ;;  %v2209_v61 = vpop.eup %1488  ;;  %v821_v5 = vadd.f32 -0.28449672, %v789_v60  ;;  %v1037_v43 = vmul.f32 1.442695, %v983_v41 }
  0xaa   : > { %v916_v25 = vmul.f32 %v2146_v30, %v884_v57  ;;  %v537_v49 = vmul.f32 0.3275911, %v2206_v51  ;;  %v1171_v13 = vadd.f32 1.0, %v1139_v17  ;;  %1494 = vpow2.f32 %v1035_v46 }
  0xab   : > { %v726_v36 = vmul.f32 %v2191_v58, %v694_v7  ;;  %v663_v12 = vmul.f32 1.0614054, %v2209_v61  ;;  %v853_v35 = vmul.f32 %v2168_v14, %v821_v5  ;;  %v2218_v34 = vadd.f32 %v2066_v15, %v307_v1 }
  0xac   : > { %v1076_v0 = vmul.f32 %v1487_v24, %v916_v25  ;;  %v569_v63 = vadd.f32 1.0, %v537_v49  ;;  %v1203_v18 = vmul.f32 %v1171_v13, %v2160_v59  ;;  %v984_v22 = vmul.f32 %v952_v8, %v504_v20  ;;  %v270_v20 = vld [vmem:[%s1611_s22 + $0xd8] sm:$0xff] }
  0xad   : > { %v758_v30 = vadd.f32 1.4214138, %v726_v36  ;;  %v695_v2 = vadd.f32 -1.4531521, %v663_v12  ;;  %v885_v3 = vadd.f32 0.2548296, %v853_v35  ;;  %v1491_v45 = vpop.eup %1490  ;;  %v308_v53 = vmul.f32 %v2072_v10, %v269_v39 }
  0xae   : > { %v1108_v38 = vsub.f32 1.0, %v1076_v0  ;;  %1496 = vrcp.f32 %v569_v63  ;;  %1236 = vst.msk [vmem:[%s1784_s28 + $0x90] sm:$0xff] %vm1217_vm4, %v1203_v18  ;;  %v373_v21 = vmul.f32 0.5, %v2088_v47  ;;  %v2227_v52 = vmul.f32 0.70710677, %v2218_v34 }
  0xaf   : > { %v790_v40 = vmul.f32 %v2191_v58, %v758_v30  ;;  %v727_v59 = vmul.f32 %v2209_v61, %v695_v2  ;;  %v917_v19 = vmul.f32 %v2168_v14, %v885_v3  ;;  %1498 = vpow2.f32 %v1037_v43  ;;  %v271_v43 = vld [vmem:[%s1611_s22 + $0xe0] sm:$0xff] }
  0xb0   : > { %v1140_v32 = vmul.f32 %v1108_v38, %v468_v26  ;;  %v469_v23 = vsel %vm437_vm6, 1.0, %v1558_v55  ;;  %vm438_vm7 = vcmp.ge.f32.partialorder %v2120_v16, 0.0  ;;  %v1039_v44 = vmul.f32 1.442695, %v984_v22 }
  0xb1   : > { %v822_v47 = vadd.f32 -0.28449672, %v790_v40  ;;  %v759_v42 = vadd.f32 1.4214138, %v727_v59  ;;  %v1077_v48 = vmul.f32 %v1491_v45, %v917_v19  ;;  %v953_v26 = vsub.f32 0.0, %v2206_v51 }
  0xb2   : > { %v1172_v4 = vadd.f32 1.0, %v1140_v32  ;;  %v2242_v31 = vand.u32 2147483647, %v2227_v52  ;;  %v309_v50 = vmul.f32 %v2072_v10, %v270_v20  ;;  %v2248_v60 = vadd.f32 %v2066_v15, %v308_v53 }
  0xb3   : > { %v2237_v54 = vpop.eup %1492  ;;  %v854_v14 = vmul.f32 %v2191_v58, %v822_v47  ;;  %v791_v27 = vmul.f32 %v2209_v61, %v759_v42  ;;  %v1109_v6 = vsub.f32 1.0, %v1077_v48  ;;  %v470_v25 = vsel %vm438_vm7, 1.0, %v1558_v55 }
  0xb4   : > { %v1204_v46 = vmul.f32 %v1172_v4, %v2178_v9  ;;  %v664_v57 = vmul.f32 1.0614054, %v2237_v54  ;;  %v1495_v41 = vpop.eup %1494  ;;  %v538_v7 = vmul.f32 0.3275911, %v2242_v31  ;;  %v985_v5 = vmul.f32 %v953_v26, %v2206_v51 }
  0xb5   : > { %v886_v24 = vadd.f32 0.2548296, %v854_v14  ;;  %v823_v17 = vadd.f32 -0.28449672, %v791_v27  ;;  %v1141_v1 = vmul.f32 %v1109_v6, %v469_v23  ;;  %1500 = vpow2.f32 %v1039_v44 }
  0xb6   : > { %1237 = vst.msk [vmem:[%s1784_s28 + $0x98] sm:$0xff] %vm1217_vm4, %v1204_v46  ;;  %v696_v9 = vadd.f32 -1.4531521, %v664_v57  ;;  %v570_v13 = vadd.f32 1.0, %v538_v7  ;;  %v2263_v35 = vmul.f32 0.70710677, %v2248_v60  ;;  %v2266_v16 = vadd.f32 %v2066_v15, %v309_v50 }
  0xb7   : > { %v918_v8 = vmul.f32 %v2191_v58, %v886_v24  ;;  %v855_v49 = vmul.f32 %v2209_v61, %v823_v17  ;;  %v1173_v12 = vadd.f32 1.0, %v1141_v1  ;;  %vm439_vm8 = vcmp.ge.f32.partialorder %v2142_v37, 0.0 }
  0xb8   : > { %v2259_v36 = vpop.eup %1496  ;;  %v728_v0 = vmul.f32 %v2237_v54, %v696_v9  ;;  %1502 = vrcp.f32 %v570_v13  ;;  %v1041_v39 = vmul.f32 1.442695, %v985_v5  ;;  %v310_v45 = vmul.f32 %v2072_v10, %v271_v43 }
  0xb9   : > { %v1078_v51 = vmul.f32 %v1495_v41, %v918_v8  ;;  %v887_v63 = vadd.f32 0.2548296, %v855_v49  ;;  %v665_v58 = vmul.f32 1.0614054, %v2259_v36  ;;  %v1499_v18 = vpop.eup %1498  ;;  %v1205_v30 = vmul.f32 %v1173_v12, %v373_v21  ;;  %v272_v49 = vld [vmem:[%s1611_s22 + $0xe8] sm:$0xff] }
  0xba   : > { %v760_v2 = vadd.f32 1.4214138, %v728_v0  ;;  %v374_v40 = vmul.f32 0.5, %v2111_v11  ;;  %v507_v32 = vand.u32 2147483647, %v2263_v35  ;;  %v471_v23 = vsel %vm439_vm8, 1.0, %v1558_v55 }
  0xbb   : > { %v1110_v38 = vsub.f32 1.0, %v1078_v51  ;;  %v919_v3 = vmul.f32 %v2209_v61, %v887_v63  ;;  %v697_v22 = vadd.f32 -1.4531521, %v665_v58  ;;  %1238 = vst.msk [vmem:[%s1784_s28 + $0xa0] sm:$0xff] %vm1217_vm4, %v1205_v30  ;;  %v2279_v21 = vmul.f32 0.70710677, %v2266_v16 }
  0xbc   : > { %v792_v59 = vmul.f32 %v2237_v54, %v760_v2  ;;  %v954_v61 = vsub.f32 0.0, %v2242_v31  ;;  %1504 = vpow2.f32 %v1041_v39  ;;  %v539_v11 = vmul.f32 0.3275911, %v507_v32  ;;  %v273_v58 = vld [vmem:[%s1611_s22 + $0xf0] sm:$0xff] }
  0xbd   : > { %v1142_v19 = vmul.f32 %v1110_v38, %v470_v25  ;;  %v1079_v53 = vmul.f32 %v1499_v18, %v919_v3  ;;  %v729_v20 = vmul.f32 %v2259_v36, %v697_v22  ;;  %v2287_v44 = vadd.f32 %v2066_v15, %v310_v45 }
  0xbe   : > { %v824_v47 = vadd.f32 -0.28449672, %v792_v59  ;;  %v375_v26 = vmul.f32 0.5, %v2127_v62  ;;  %v571_v27 = vadd.f32 1.0, %v539_v11  ;;  %v508_v50 = vand.u32 2147483647, %v2279_v21 }
  0xbf   : > { %v1174_v42 = vadd.f32 1.0, %v1142_v19  ;;  %v1111_v4 = vsub.f32 1.0, %v1079_v53  ;;  %v761_v48 = vadd.f32 1.4214138, %v729_v20  ;;  %v1501_v46 = vpop.eup %1500  ;;  %v986_v41 = vmul.f32 %v954_v61, %v2242_v31 }
  0xc0   : > { %v856_v14 = vmul.f32 %v2237_v54, %v824_v47  ;;  %vm440_vm9 = vcmp.ge.f32.partialorder %v2172_v28, 0.0  ;;  %1506 = vrcp.f32 %v571_v27  ;;  %v540_v17 = vmul.f32 0.3275911, %v508_v50  ;;  %v274_v47 = vld [vmem:[%s1611_s22 + $0xf8] sm:$0xff] }
  0xc1   : > { %v1206_v37 = vmul.f32 %v1174_v42, %v374_v40  ;;  %v1143_v6 = vmul.f32 %v1111_v4, %v471_v23  ;;  %v793_v57 = vmul.f32 %v2259_v36, %v761_v48  ;;  %v955_v25 = vsub.f32 0.0, %v507_v32 }
  0xc2   : > { %v888_v24 = vadd.f32 0.2548296, %v856_v14  ;;  %v2295_v7 = vpop.eup %1502  ;;  %v2300_v9 = vmul.f32 0.70710677, %v2287_v44  ;;  %v572_v8 = vadd.f32 1.0, %v540_v17  ;;  %v472_v43 = vsel %vm440_vm9, 1.0, %v1558_v55 }
  0xc3   : > { %1239 = vst.msk [vmem:[%s1784_s28 + $0xa8] sm:$0xff] %vm1217_vm4, %v1206_v37  ;;  %v1175_v62 = vadd.f32 1.0, %v1143_v6  ;;  %v825_v1 = vadd.f32 -0.28449672, %v793_v57  ;;  %v666_v31 = vmul.f32 1.0614054, %v2295_v7  ;;  %v311_v2 = vmul.f32 %v2072_v10, %v272_v49 }
  0xc4   : > { %v920_v5 = vmul.f32 %v2237_v54, %v888_v24  ;;  %v1043_v0 = vmul.f32 1.442695, %v986_v41  ;;  %1508 = vrcp.f32 %v572_v8  ;;  %v987_v54 = vmul.f32 %v955_v25, %v507_v32 }
  0xc5   : > { %v1207_v13 = vmul.f32 %v1175_v62, %v375_v26  ;;  %v857_v12 = vmul.f32 %v2259_v36, %v825_v1  ;;  %v698_v63 = vadd.f32 -1.4531521, %v666_v31  ;;  %v509_v30 = vand.u32 2147483647, %v2300_v9 }
  0xc6   : > { %v1080_v51 = vmul.f32 %v1501_v46, %v920_v5  ;;  %v1505_v39 = vpop.eup %1504  ;;  %vm441_vm10 = vcmp.ge.f32.partialorder %v2197_v33, 0.0  ;;  %v956_v3 = vsub.f32 0.0, %v508_v50  ;;  %1510 = vpow2.f32 %v1043_v0 }
  0xc7   : > { %1240 = vst.msk [vmem:[%s1784_s28 + $0xb0] sm:$0xff] %vm1217_vm4, %v1207_v13  ;;  %v889_v18 = vadd.f32 0.2548296, %v857_v12  ;;  %v730_v28 = vmul.f32 %v2295_v7, %v698_v63  ;;  %v541_v45 = vmul.f32 0.3275911, %v509_v30  ;;  %v312_v40 = vmul.f32 %v2072_v10, %v273_v58 }
  0xc8   : > { %v1112_v38 = vsub.f32 1.0, %v1080_v51  ;;  %v376_v59 = vmul.f32 0.5, %v2156_v56  ;;  %v2320_v53 = vadd.f32 %v2066_v15, %v311_v2  ;;  %v473_v20 = vsel %vm441_vm10, 1.0, %v1558_v55 }
  0xc9   : > { %v921_v22 = vmul.f32 %v2259_v36, %v889_v18  ;;  %v762_v19 = vadd.f32 1.4214138, %v730_v28  ;;  %v1045_v33 = vmul.f32 1.442695, %v987_v54  ;;  %v573_v23 = vadd.f32 1.0, %v541_v45 }
  0xca   : > { %v1144_v32 = vmul.f32 %v1112_v38, %v472_v43  ;;  %v2324_v11 = vpop.eup %1506  ;;  %v988_v4 = vmul.f32 %v956_v3, %v508_v50  ;;  %v2328_v56 = vmul.f32 0.70710677, %v2320_v53  ;;  %v2332_v14 = vadd.f32 %v2066_v15, %v312_v40 }
  0xcb   : > { %v1081_v61 = vmul.f32 %v1505_v39, %v921_v22  ;;  %v794_v42 = vmul.f32 %v2295_v7, %v762_v19  ;;  %v667_v26 = vmul.f32 1.0614054, %v2324_v11  ;;  %1512 = vrcp.f32 %v573_v23 }
  0xcc   : > { %v1176_v36 = vadd.f32 1.0, %v1144_v32  ;;  %v510_v37 = vand.u32 2147483647, %v2328_v56  ;;  %v313_v6 = vmul.f32 %v2072_v10, %v274_v47  ;;  %v377_v57 = vmul.f32 0.5, %v2186_v29 }
  0xcd   : > { %v1113_v48 = vsub.f32 1.0, %v1081_v61  ;;  %v826_v46 = vadd.f32 -0.28449672, %v794_v42  ;;  %v699_v50 = vadd.f32 -1.4531521, %v667_v26  ;;  %1514 = vpow2.f32 %v1045_v33 }
  0xce   : > { %v1208_v27 = vmul.f32 %v1176_v36, %v376_v59  ;;  %v2337_v24 = vpop.eup %1508  ;;  %v957_v62 = vsub.f32 0.0, %v509_v30  ;;  %v542_v1 = vmul.f32 0.3275911, %v510_v37  ;;  %v2345_v10 = vmul.f32 0.70710677, %v2332_v14 }
  0xcf   : > { %v1145_v41 = vmul.f32 %v1113_v48, %v473_v20  ;;  %v858_v17 = vmul.f32 %v2295_v7, %v826_v46  ;;  %v731_v5 = vmul.f32 %v2324_v11, %v699_v50  ;;  %v668_v31 = vmul.f32 1.0614054, %v2337_v24 }
  0xd0   : > { %1241 = vst.msk [vmem:[%s1784_s28 + $0xb8] sm:$0xff] %vm1217_vm4, %v1208_v27  ;;  %v1047_v8 = vmul.f32 1.442695, %v988_v4  ;;  %v574_v49 = vadd.f32 1.0, %v542_v1  ;;  %v2348_v13 = vadd.f32 %v2066_v15, %v313_v6  ;;  %v1511_v12 = vpop.eup %1510  ;;  %vm442_vm11 = vcmp.ge.f32.partialorder %v2227_v52, 0.0 }
  0xd1   : > { %v1177_v25 = vadd.f32 1.0, %v1145_v41  ;;  %v890_v29 = vadd.f32 0.2548296, %v858_v17  ;;  %v763_v43 = vadd.f32 1.4214138, %v731_v5  ;;  %v989_v54 = vmul.f32 %v957_v62, %v509_v30 }
  0xd2   : > { %v700_v51 = vadd.f32 -1.4531521, %v668_v31  ;;  %1516 = vrcp.f32 %v574_v49  ;;  %v511_v2 = vand.u32 2147483647, %v2345_v10  ;;  %v474_v15 = vsel %vm442_vm11, 1.0, %v1558_v55 }
  0xd3   : > { %v1209_v0 = vmul.f32 %v1177_v25, %v377_v57  ;;  %v922_v63 = vmul.f32 %v2295_v7, %v890_v29  ;;  %v795_v58 = vmul.f32 %v2324_v11, %v763_v43  ;;  %1518 = vpow2.f32 %v1047_v8 }
  0xd4   : > { %v732_v18 = vmul.f32 %v2337_v24, %v700_v51  ;;  %v2359_v52 = vmul.f32 0.70710677, %v2348_v13  ;;  %v543_v3 = vmul.f32 0.3275911, %v511_v2  ;;  %v958_v40 = vsub.f32 0.0, %v510_v37 }
  0xd5   : > { %1242 = vst.msk [vmem:[%s1784_s28 + $0xc0] sm:$0xff] %vm1217_vm4, %v1209_v0  ;;  %v1082_v39 = vmul.f32 %v1511_v12, %v922_v63  ;;  %v2361_v38 = vpop.eup %1512  ;;  %v827_v7 = vadd.f32 -0.28449672, %v795_v58  ;;  %v1049_v32 = vmul.f32 1.442695, %v989_v54  ;;  %v378_v61 = vmul.f32 0.5, %v2218_v34 }
  0xd6   : > { %v764_v28 = vadd.f32 1.4214138, %v732_v18  ;;  %v669_v45 = vmul.f32 1.0614054, %v2361_v38  ;;  %v575_v19 = vadd.f32 1.0, %v543_v3  ;;  %v990_v26 = vmul.f32 %v958_v40, %v510_v37 }
  0xd7   : > { %v1114_v22 = vsub.f32 1.0, %v1082_v39  ;;  %v859_v30 = vmul.f32 %v2324_v11, %v827_v7  ;;  %v1515_v20 = vpop.eup %1514  ;;  %v512_v47 = vand.u32 2147483647, %v2359_v52  ;;  %vm443_vm12 = vcmp.ge.f32.partialorder %v2263_v35, 0.0 }
  0xd8   : > { %v796_v59 = vmul.f32 %v2337_v24, %v764_v28  ;;  %v701_v23 = vadd.f32 -1.4531521, %v669_v45  ;;  %1520 = vrcp.f32 %v575_v19  ;;  %v959_v25 = vsub.f32 0.0, %v511_v2 }
  0xd9   : > { %v1146_v33 = vmul.f32 %v1114_v22, %v474_v15  ;;  %v891_v36 = vadd.f32 0.2548296, %v859_v30  ;;  %v544_v27 = vmul.f32 0.3275911, %v512_v47  ;;  %1522 = vpow2.f32 %v1049_v32 }
  0xda   : > { %v828_v42 = vadd.f32 -0.28449672, %v796_v59  ;;  %v733_v48 = vmul.f32 %v2361_v38, %v701_v23  ;;  %v475_v35 = vsel %vm443_vm12, 1.0, %v1558_v55  ;;  %v1051_v37 = vmul.f32 1.442695, %v990_v26 }
  0xdb   : > { %v1178_v4 = vadd.f32 1.0, %v1146_v33  ;;  %v923_v46 = vmul.f32 %v2324_v11, %v891_v36  ;;  %v576_v50 = vadd.f32 1.0, %v544_v27  ;;  %vm444_vm13 = vcmp.ge.f32.partialorder %v2279_v21, 0.0 }
  0xdc   : > { %v860_v6 = vmul.f32 %v2337_v24, %v828_v42  ;;  %v2372_v34 = vpop.eup %1516  ;;  %v765_v41 = vadd.f32 1.4214138, %v733_v48  ;;  %v379_v49 = vmul.f32 0.5, %v2248_v60  ;;  %v991_v63 = vmul.f32 %v959_v25, %v511_v2 }
  0xdd   : > { %v1210_v57 = vmul.f32 %v1178_v4, %v378_v61  ;;  %v1083_v17 = vmul.f32 %v1515_v20, %v923_v46  ;;  %v670_v1 = vmul.f32 1.0614054, %v2372_v34  ;;  %v1519_v5 = vpop.eup %1518  ;;  %1524 = vrcp.f32 %v576_v50 }
  0xde   : > { %v892_v62 = vadd.f32 0.2548296, %v860_v6  ;;  %v797_v11 = vmul.f32 %v2361_v38, %v765_v41  ;;  %v476_v58 = vsel %vm444_vm13, 1.0, %v1558_v55  ;;  %1526 = vpow2.f32 %v1051_v37 }
  0xdf   : > { %1243 = vst.msk [vmem:[%s1784_s28 + $0xc8] sm:$0xff] %vm1217_vm4, %v1210_v57  ;;  %v1115_v31 = vsub.f32 1.0, %v1083_v17  ;;  %v702_v8 = vadd.f32 -1.4531521, %v670_v1  ;;  %v960_v54 = vsub.f32 0.0, %v512_v47  ;;  %v380_v7 = vmul.f32 0.5, %v2266_v16 }
  0xe0   : > { %v924_v29 = vmul.f32 %v2337_v24, %v892_v62  ;;  %v829_v12 = vadd.f32 -0.28449672, %v797_v11  ;;  %vm445_vm14 = vcmp.ge.f32.partialorder %v2300_v9, 0.0  ;;  %v1053_v40 = vmul.f32 1.442695, %v991_v63 }
  0xe1   : > { %v1147_v0 = vmul.f32 %v1115_v31, %v475_v35  ;;  %v734_v51 = vmul.f32 %v2372_v34, %v702_v8  ;;  %v992_v32 = vmul.f32 %v960_v54, %v512_v47  ;;  %v477_v9 = vsel %vm445_vm14, 1.0, %v1558_v55 }
  0xe2   : > { %v1084_v43 = vmul.f32 %v1519_v5, %v924_v29  ;;  %v861_v18 = vmul.f32 %v2361_v38, %v829_v12  ;;  %v1521_v15 = vpop.eup %1520  ;;  %1528 = vpow2.f32 %v1053_v40  ;;  %v381_v46 = vmul.f32 0.5, %v2287_v44 }
  0xe3   : > { %v1179_v21 = vadd.f32 1.0, %v1147_v0  ;;  %v766_v24 = vadd.f32 1.4214138, %v734_v51  ;;  %v671_v28 = vmul.f32 1.0614054, %v1521_v15  ;;  %v1523_v3 = vpop.eup %1522  ;;  %vm446_vm15 = vcmp.ge.f32.partialorder %v2328_v56, 0.0 }
  0xe4   : > { %v1116_v39 = vsub.f32 1.0, %v1084_v43  ;;  %v893_v60 = vadd.f32 0.2548296, %v861_v18  ;;  %v478_v35 = vsel %vm446_vm15, 1.0, %v1558_v55  ;;  %v382_v56 = vmul.f32 0.5, %v2320_v53 }
  0xe5   : > { %v1211_v22 = vmul.f32 %v1179_v21, %v379_v49  ;;  %v798_v45 = vmul.f32 %v2372_v34, %v766_v24  ;;  %v703_v59 = vadd.f32 -1.4531521, %v671_v28  ;;  %vm447_vm0 = vcmp.ge.f32.partialorder %v2345_v10, 0.0 }
  0xe6   : > { %v1148_v2 = vmul.f32 %v1116_v39, %v476_v58  ;;  %v925_v30 = vmul.f32 %v2361_v38, %v893_v60  ;;  %v1055_v38 = vmul.f32 1.442695, %v992_v32  ;;  %v479_v63 = vsel %vm447_vm0, 1.0, %v1558_v55 }
  0xe7   : > { %1244 = vst.msk [vmem:[%s1784_s28 + $0xd0] sm:$0xff] %vm1217_vm4, %v1211_v22  ;;  %v830_v20 = vadd.f32 -0.28449672, %v798_v45  ;;  %v1525_v16 = vpop.eup %1524  ;;  %v735_v33 = vmul.f32 %v1521_v15, %v703_v59  ;;  %vm448_vm1 = vcmp.ge.f32.partialorder %v2359_v52, 0.0  ;;  %v383_v21 = vmul.f32 0.5, %v2332_v14 }
  0xe8   : > { %v1180_v19 = vadd.f32 1.0, %v1148_v2  ;;  %v1085_v61 = vmul.f32 %v1523_v3, %v925_v30  ;;  %v672_v42 = vmul.f32 1.0614054, %v1525_v16  ;;  %v1527_v27 = vpop.eup %1526  ;;  %1530 = vpow2.f32 %v1055_v38 }
  0xe9   : > { %v862_v36 = vmul.f32 %v2372_v34, %v830_v20  ;;  %v767_v48 = vadd.f32 1.4214138, %v735_v33  ;;  %v480_v24 = vsel %vm448_vm1, 1.0, %v1558_v55  ;;  %v384_v28 = vmul.f32 0.5, %v2348_v13 }
  0xea   : > { %v1212_v23 = vmul.f32 %v1180_v19, %v380_v7  ;;  %v1117_v4 = vsub.f32 1.0, %v1085_v61  ;;  %v704_v26 = vadd.f32 -1.4531521, %v672_v42 }
  0xeb   : > { %v894_v47 = vadd.f32 0.2548296, %v862_v36  ;;  %v799_v57 = vmul.f32 %v1521_v15, %v767_v48 }
  0xec   : > { %1245 = vst.msk [vmem:[%s1784_s28 + $0xd8] sm:$0xff] %vm1217_vm4, %v1212_v23  ;;  %v1149_v6 = vmul.f32 %v1117_v4, %v477_v9  ;;  %v736_v50 = vmul.f32 %v1525_v16, %v704_v26  ;;  %v1529_v29 = vpop.eup %1528 }
  0xed   : > { %v926_v41 = vmul.f32 %v2372_v34, %v894_v47  ;;  %v831_v62 = vadd.f32 -0.28449672, %v799_v57 }
  0xee   : > { %v1181_v17 = vadd.f32 1.0, %v1149_v6  ;;  %v768_v25 = vadd.f32 1.4214138, %v736_v50 }
  0xef   : > { %v1086_v1 = vmul.f32 %v1527_v27, %v926_v41  ;;  %v863_v11 = vmul.f32 %v1521_v15, %v831_v62 }
  0xf0   : > { %v1213_v5 = vmul.f32 %v1181_v17, %v381_v46  ;;  %v800_v31 = vmul.f32 %v1525_v16, %v768_v25 }
  0xf1   : > { %v1118_v37 = vsub.f32 1.0, %v1086_v1  ;;  %v895_v44 = vadd.f32 0.2548296, %v863_v11 }
  0xf2   : > { %1246 = vst.msk [vmem:[%s1784_s28 + $0xe0] sm:$0xff] %vm1217_vm4, %v1213_v5  ;;  %v832_v8 = vadd.f32 -0.28449672, %v800_v31  ;;  %v1531_v18 = vpop.eup %1530 }
  0xf3   : > { %v1150_v34 = vmul.f32 %v1118_v37, %v478_v35  ;;  %v927_v49 = vmul.f32 %v1521_v15, %v895_v44 }
  0xf4   : > { %v864_v0 = vmul.f32 %v1525_v16, %v832_v8 }
  0xf5   : > { %v1182_v12 = vadd.f32 1.0, %v1150_v34  ;;  %v1087_v43 = vmul.f32 %v1529_v29, %v927_v49 }
  0xf6   : > { %v896_v58 = vadd.f32 0.2548296, %v864_v0 }
  0xf7   : > { %v1214_v51 = vmul.f32 %v1182_v12, %v382_v56  ;;  %v1119_v54 = vsub.f32 1.0, %v1087_v43 }
  0xf8   : > { %v928_v53 = vmul.f32 %v1525_v16, %v896_v58 }
  0xf9   : > { %1247 = vst.msk [vmem:[%s1784_s28 + $0xe8] sm:$0xff] %vm1217_vm4, %v1214_v51  ;;  %v1151_v10 = vmul.f32 %v1119_v54, %v479_v63 }
  0xfa   : > { %v1088_v15 = vmul.f32 %v1531_v18, %v928_v53 }
  0xfb   : > { %v1183_v39 = vadd.f32 1.0, %v1151_v10 }
  0xfc   : > { %v1120_v7 = vsub.f32 1.0, %v1088_v15 }
  0xfd   : > { %v1215_v60 = vmul.f32 %v1183_v39, %v383_v21 }
  0xfe   : > { %v1152_v3 = vmul.f32 %v1120_v7, %v480_v24 }
  0xff   : > { %1248 = vst.msk [vmem:[%s1784_s28 + $0xf0] sm:$0xff] %vm1217_vm4, %v1215_v60 }
 0x100   : > { %v1184_v22 = vadd.f32 1.0, %v1152_v3 }
 0x102   : > { %v1216_v2 = vmul.f32 %v1184_v22, %v384_v28 }
 0x104   : > { %1249 = vst.msk [vmem:[%s1784_s28 + $0xf8] sm:$0xff] %vm1217_vm4, %v1216_v2 }
 0x105 PF: > { %s13_s14 = sadd.s32 1, %s1556_s14   ;;  %s2427_s12 = smov %s1552_s13 }
 0x106   : > { %p10_p5 = scmp.ge.s32.totalorder %s13_s14, 4   ;;  %s2428_s13 = smov %s2430_s15 }
 0x108   :  { %12 = sbr.rel (!%p10_p5) target bundleno = 2 (0x2), region = 68 }

// kernel: double_conv.4
= control target key start
LH: loop header
LB: loop body
LE: loop exit
PB: predicated region body
PF: predicated region fallthrough
CT: control target
= control target key end

     0   :  { %s2803_s21 = smov 0   ;;  %s2805_s22 = smov 0   ;;  %s3861_s0 = inlined_call_operand.vmem [shape: f32[2,18,18,8], index: 0, kind: input, shape index: {}, may-alias: {0,1,2}]   ;;  %s3862_s1 = inlined_call_operand.vmem [shape: f32[2,18,18,8], index: 1, kind: input, shape index: {}, may-alias: {0,1,2}]   ;;  %s3863_s2 = inlined_call_operand.vmem [shape: f32[2,18,18,8], index: 2, kind: input, shape index: {}, may-alias: {0,1,2}]   ;;  %s3864_s3 = inlined_call_operand.vmem [shape: f32[3,24,16], index: 3, kind: input, shape index: {}]   ;;  %s3865_s4 = inlined_call_operand.vmem [shape: f32[2,16,16,16], index: 4, kind: output, shape index: {0}]   ;;  %s3866_s5 = inlined_call_operand.vmem [shape: f32[2,1,16], index: 5, kind: output, shape index: {1}]   ;;  %s3867_s6 = inlined_call_operand.vmem [shape: f32[2,1,16], index: 6, kind: output, shape index: {2}]  }
   0x1   :  { %s2807_s23 = smov 0  }
   0x2 LB: > { %s29_s24 = sadd.s32 1, %s2759_s22  ;;  %p2249_p0 = scmp.ge.s32.totalorder %s2763_s23, 1  ;;  %s2763_s23 = sphi %s2807_s23, %s17_s23   ;;  %s2759_s22 = sphi %s2805_s22, %s3903_s22   ;;  %s2755_s21 = sphi %s2803_s21, %s3902_s21  }
   0x3   : > { %p31_p1 = scmp.ge.s32.totalorder %s29_s24, 2  ;;  %p297_p2 = scmp.lt.s32.totalorder %s2763_s23, 3 }
   0x5   : > { %s3905_s24 = smov (%p31_p1, %s29_s24), 0  ;;  %p298_p3 = pnand %p2249_p0, %p297_p2 }
   0x6   : > { %p376_p4 = scmp.lt.s32.totalorder (!%p298_p3), %s2755_s21, 1  ;;  %v2255_v0 = vld [vmem:[%s3864_s3 + $0x18] sm:$0xff] (!%p298_p3)  ;;  %v2256_v1 = vld [vmem:[%s3864_s3 + $0x20] sm:$0xff] (!%p298_p3)  ;;  %v957_v4 = vld [vmem:[%s3864_s3 + $0x8] sm:$0xff] (!%p298_p3)  ;;  %vm536_vm0 = vcmask (!%p298_p3), 1046528   ;;  %s2765_s13 = smov (!%p298_p3), 8  }
   0x7   : > { %301 = sbr.rel (%p298_p3) target bundleno = 540 (0x21c), region = 36  ;;  %v956_v2 = vld [vmem:[%s3864_s3] sm:$0xff] (!%p298_p3)  ;;  %v2631_v3 = vpack.c.bf16 (!%p298_p3), %v2256_v1, %v2255_v0  ;;  %vm713_vm1 = vcmask (!%p298_p3), 1045504   ;;  %s2766_s14 = smov (!%p298_p3), 16   ;;  %v2257_v49 = vld [vmem:[%s3864_s3 + $0x28] sm:$0xff] (!%p298_p3)  ;;  %v2921_v50 = vld [vmem:[%s3864_s3 + $0x10] sm:$0xff] (!%p298_p3) }
   0x8   : > { %v2838_v5 = vpack.c.bf16 (!%p298_p3), %v957_v4, %v956_v2  ;;  %vm890_vm2 = vcmask (!%p298_p3), 64512   ;;  %vm923_vm3 = vcmask (!%p298_p3), 130048   ;;  %vm992_vm4 = vcmask (!%p298_p3), 195584  }
   0x9   : > { %2632 = vmatprep.subr.bf16.mxu1 (!%p298_p3), %v2631_v3  ;;  %vm1877_vm5 = vcmask (!%p298_p3), 122880  }
   0xa   : > { %2636 = vmatprep.subr.bf16.mxu0 (!%p298_p3), %v2838_v5  ;;  %2634 = vmatpush3.bf16.msra.mxu1 (!%p298_p3), %v2631_v3 }
   0xb   : > { %2638 = vmatpush3.bf16.msra.mxu0 (!%p298_p3), %v2838_v5  ;;  %2473 = vmatprep.subr.mxu1 (!%p298_p3), %v2257_v49 }
   0xc   : > { %2527 = vmatprep.subr.mxu0 (!%p298_p3), %v2921_v50 }
   0xe   : > { %s3907_s21 = smov (!%p376_p4, %s2755_s21), 1  ;;  %2474 = vmatpush3.msra.mxu1 %v2257_v49 }
   0xf   : > { %s2836_s9 = smul.u32 432, %s3907_s21  ;;  %2528 = vmatpush3.msra.mxu0 %v2921_v50  ;;  %2643 = vmatprep.subr.bf16.mxu1 %v2838_v5  ;;  %s3652_s15 = scalar_lea.vmem %s3866_s5, %s3907_s21 }
  0x10   : > { %s3658_s18 = scalar_lea.vmem %s3867_s6, %s3907_s21 }
  0x11   : > { %s2844_s12 = scalar_lea.vmem %s3861_s0, %s2836_s9  ;;  %s2360_s19 = sadd.s32 384, %s2836_s9 }
  0x12   : > { %v2848_v6 = vld [vmem:[%s2844_s12 + $0x8] sm:$0xff]  ;;  %v436_v7 = vld [vmem:[%s2844_s12 + $0x10] sm:$0x3]  ;;  %v2852_v8 = vld [vmem:[%s2844_s12] sm:$0xff]  ;;  %s3055_s26 = scalar_lea.vmem %s3862_s1, %s2360_s19  ;;  %s2362_s27 = sadd.s32 408, %s2836_s9 }
  0x13   : > { %v538_v9 = vrot.slane %v2848_v6, 1  ;;  %v540_v10 = vrot.slane %v436_v7, 1  ;;  %v537_v11 = vrot.slane %v2852_v8, 1  ;;  %v2858_v12 = vld [vmem:[%s2844_s12 + $0x20] sm:$0xff]  ;;  %v439_v13 = vld [vmem:[%s2844_s12 + $0x28] sm:$0x3]  ;;  %s3085_s30 = scalar_lea.vmem %s3863_s2, %s2362_s27 }
  0x14   : > { %v543_v14 = vrot.slane %v2858_v12, 1  ;;  %v545_v15 = vrot.slane %v439_v13, 1  ;;  %v2863_v16 = vld [vmem:[%s2844_s12 + $0x18] sm:$0xff]  ;;  %v720_v20 = vrot.slane %v2858_v12, 2  ;;  %v714_v21 = vrot.slane %v2852_v8, 2  ;;  %v2885_v32 = vld [vmem:[%s2844_s12 + $0x30] sm:$0xff] }
  0x15   : > { %v541_v17 = vsel %vm536_vm0, %v538_v9, %v540_v10  ;;  %v539_v18 = vsel %vm536_vm0, %v537_v11, %v538_v9  ;;  %v542_v19 = vrot.slane %v2863_v16, 1  ;;  %v719_v24 = vrot.slane %v2863_v16, 2  ;;  %v2881_v30 = vld [vmem:[%s2844_s12 + $0x38] sm:$0xff]  ;;  %v442_v31 = vld [vmem:[%s2844_s12 + $0x40] sm:$0x3]  ;;  %v2897_v39 = vld [vmem:[%s2844_s12 + $0x50] sm:$0xff] }
  0x16   : > { %619 = vrot.lane.b32.xlu1 %v541_v17, %s2765_s13  ;;  %617 = vrot.lane.b32.xlu0 %v539_v18, %s2765_s13  ;;  %v546_v22 = vsel %vm536_vm0, %v543_v14, %v545_v15  ;;  %v715_v25 = vrot.slane %v2848_v6, 2  ;;  %v722_v28 = vrot.slane %v439_v13, 2  ;;  %v717_v29 = vrot.slane %v436_v7, 2  ;;  %v445_v44 = vld [vmem:[%s2844_s12 + $0x58] sm:$0x3]  ;;  %v2904_v45 = vld [vmem:[%s2844_s12 + $0xc8] sm:$0xff] }
  0x17   : > { %v544_v23 = vsel %vm536_vm0, %v542_v19, %v543_v14  ;;  %v721_v26 = vsel %vm713_vm1, %v719_v24, %v720_v20  ;;  %v548_v33 = vrot.slane %v2881_v30, 1  ;;  %v550_v34 = vrot.slane %v442_v31, 1  ;;  %v2907_v46 = vld [vmem:[%s2844_s12 + $0x48] sm:$0xff]  ;;  %v2910_v47 = vld [vmem:[%s2844_s12 + $0xd0] sm:$0x3]  ;;  %v2913_v48 = vld [vmem:[%s2844_s12 + $0xe0] sm:$0xff] }
  0x18   : > { %v716_v27 = vsel %vm713_vm1, %v714_v21, %v715_v25  ;;  %v723_v35 = vsel %vm713_vm1, %v720_v20, %v722_v28  ;;  %v718_v36 = vsel %vm713_vm1, %v715_v25, %v717_v29  ;;  %v547_v37 = vrot.slane %v2885_v32, 1  ;;  %v463_v54 = vld [vmem:[%s2844_s12 + $0xe8] sm:$0x3]  ;;  %v2935_v60 = vld [vmem:[%s2844_s12 + $0xf8] sm:$0xff]  ;;  %v466_v2 = vld [vmem:[%s2844_s12 + $0x100] sm:$0x3] }
  0x19   : > { %v551_v38 = vsel %vm536_vm0, %v548_v33, %v550_v34  ;;  %v725_v41 = vrot.slane %v2881_v30, 2  ;;  %v727_v42 = vrot.slane %v442_v31, 2  ;;  %v724_v43 = vrot.slane %v2885_v32, 2  ;;  %v2940_v63 = vld [vmem:[%s2844_s12 + $0x68] sm:$0xff]  ;;  %v2953_v4 = vld [vmem:[%s2844_s12 + $0x70] sm:$0x3] }
  0x1a   : > { %623 = vrot.lane.b32.xlu1 %v546_v22, %s2765_s13  ;;  %621 = vrot.lane.b32.xlu0 %v544_v23, %s2765_s13  ;;  %v549_v40 = vsel %vm536_vm0, %v547_v37, %v548_v33  ;;  %v553_v51 = vrot.slane %v2897_v39, 1  ;;  %v555_v52 = vrot.slane %v445_v44, 1  ;;  %v578_v53 = vrot.slane %v2904_v45, 1  ;;  %v2957_v10 = vld [vmem:[%s2844_s12 + $0x110] sm:$0xff]  ;;  %v2962_v14 = vld [vmem:[%s2844_s12 + $0x60] sm:$0xff]  ;;  %s2363_s19 = sshll.u32 %s3907_s21, 8 }
  0x1b   : > { %v728_v55 = vsel %vm713_vm1, %v725_v41, %v727_v42  ;;  %v726_v56 = vsel %vm713_vm1, %v724_v43, %v725_v41  ;;  %v552_v57 = vrot.slane %v2907_v46, 1  ;;  %v580_v58 = vrot.slane %v2910_v47, 1  ;;  %v469_v18 = vld [vmem:[%s2844_s12 + $0x118] sm:$0x3]  ;;  %v472_v33 = vld [vmem:[%s2844_s12 + $0x130] sm:$0x3] }
  0x1c   : > { %v583_v59 = vrot.slane %v2913_v48, 1  ;;  %v730_v61 = vrot.slane %v2897_v39, 2  ;;  %v732_v62 = vrot.slane %v445_v44, 2  ;;  %v585_v1 = vrot.slane %v463_v54, 1  ;;  %v475_v42 = vld [vmem:[%s2844_s12 + $0x148] sm:$0x3] }
  0x1d   : > { %v2945_v0 = vsel %vm536_vm0, %v578_v53, %v580_v58  ;;  %v556_v3 = vsel %vm536_vm0, %v553_v51, %v555_v52  ;;  %v3884_v7 = vrot.slane %v2913_v48, 2  ;;  %v762_v9 = vrot.slane %v463_v54, 2  ;;  %v3012_v44 = vld [vmem:[%s2844_s12 + $0x88] sm:$0x3] }
  0x1e   : > { %798 = vrot.lane.b32.xlu1 %v721_v26, %s2766_s14  ;;  %794 = vrot.lane.b32.xlu0 %v716_v27, %s2766_s14  ;;  %v554_v11 = vsel %vm536_vm0, %v552_v57, %v553_v51  ;;  %v729_v13 = vrot.slane %v2907_v46, 2  ;;  %v2967_v15 = vsel %vm536_vm0, %v583_v59, %v585_v1  ;;  %v3879_v17 = vrot.slane %v2935_v60, 1  ;;  %v2981_v26 = vld [vmem:[%s2844_s12 + $0x128] sm:$0xff] }
  0x1f   : > { %v2974_v19 = vsel %vm713_vm1, %v3884_v7, %v762_v9  ;;  %v590_v20 = vrot.slane %v466_v2, 1  ;;  %v3877_v21 = vrot.slane %v2935_v60, 2  ;;  %v733_v22 = vsel %vm713_vm1, %v730_v61, %v732_v62  ;;  %v478_v9 = vld [vmem:[%s2844_s12 + $0x160] sm:$0x3] }
  0x20   : > { %v558_v23 = vrot.slane %v2940_v63, 1  ;;  %v767_v24 = vrot.slane %v466_v2, 2  ;;  %v3876_v25 = vrot.slane %v2957_v10, 1  ;;  %v560_v27 = vrot.slane %v2953_v4, 1  ;;  %v3035_v2 = vld [vmem:[%s2844_s12 + $0x78] sm:$0xff] }
  0x21   : > { %v557_v28 = vrot.slane %v2962_v14, 1  ;;  %v2990_v29 = vsel %vm536_vm0, %v3879_v17, %v590_v20  ;;  %v595_v31 = vrot.slane %v469_v18, 1  ;;  %v731_v34 = vsel %vm713_vm1, %v729_v13, %v730_v61  ;;  %v3030_v61 = vld [vmem:[%s2844_s12 + $0x158] sm:$0xff]  ;;  %v3050_v20 = vld [vmem:[%s2844_s12 + $0x170] sm:$0xff] }
  0x22   : > { %800 = vrot.lane.b32.xlu1 %v723_v35, %s2766_s14  ;;  %796 = vrot.lane.b32.xlu0 %v718_v36, %s2766_s14  ;;  %v2997_v35 = vsel %vm713_vm1, %v3877_v21, %v767_v24  ;;  %v3874_v36 = vrot.slane %v2957_v10, 2  ;;  %v772_v37 = vrot.slane %v469_v18, 2  ;;  %v3873_v41 = vrot.slane %v2981_v26, 1 }
  0x23   : > { %v735_v43 = vrot.slane %v2940_v63, 2  ;;  %v600_v51 = vrot.slane %v472_v33, 1  ;;  %v3870_v52 = vrot.slane %v2981_v26, 2  ;;  %v737_v54 = vrot.slane %v2953_v4, 2 }
  0x24   : > { %v3017_v49 = vsel %vm713_vm1, %v3874_v36, %v772_v37  ;;  %v777_v57 = vrot.slane %v472_v33, 2  ;;  %v561_v62 = vsel %vm536_vm0, %v558_v23, %v560_v27  ;;  %v559_v1 = vsel %vm536_vm0, %v557_v28, %v558_v23  ;;  %v481_v28 = vld [vmem:[%s2844_s12 + $0x178] sm:$0x3]  ;;  %v454_v36 = vld [vmem:[%s2844_s12 + $0xa0] sm:$0x3] }
  0x25   : > { %v605_v4 = vrot.slane %v475_v42, 1  ;;  %v782_v18 = vrot.slane %v475_v42, 2  ;;  %v565_v23 = vrot.slane %v3012_v44, 1  ;;  %v3871_v27 = vrot.slane %v3030_v61, 1 }
  0x26   : > { %627 = vrot.lane.b32.xlu1 %v551_v38, %s2765_s13  ;;  %625 = vrot.lane.b32.xlu0 %v549_v40, %s2765_s13  ;;  %v3001_v38 = vld [vmem:[%s2844_s12 + $0x140] sm:$0xff]  ;;  %v3006_v40 = vsel %vm536_vm0, %v3876_v25, %v595_v31  ;;  %v562_v31 = vrot.slane %v3035_v2, 1  ;;  %v3872_v37 = vrot.slane %v3030_v61, 2  ;;  %v738_v42 = vsel %vm713_vm1, %v735_v43, %v737_v54 }
  0x27   : > { %v3869_v58 = vrot.slane %v3001_v38, 1  ;;  %v3868_v13 = vrot.slane %v3001_v38, 2 }
  0x29   : > { %v3063_v24 = vsel %vm536_vm0, %v3869_v58, %v605_v4  ;;  %v3073_v33 = vsel %vm713_vm1, %v3868_v13, %v782_v18  ;;  %v3080_v4 = vld [vmem:[%s3055_s26 + $0x8] sm:$0xff]  ;;  %v3096_v18 = vld [vmem:[%s2844_s12 + $0x98] sm:$0xff]  ;;  %v3878_v58 = vrot.slane %v3050_v20, 2 }
  0x2a   : > { %804 = vrot.lane.b32.xlu1 %v728_v55, %s2766_s14  ;;  %802 = vrot.lane.b32.xlu0 %v726_v56, %s2766_s14  ;;  %v734_v55 = vrot.slane %v2962_v14, 2  ;;  %v3026_v56 = vld [vmem:[%s2844_s12 + $0x80] sm:$0xff] }
  0x2e   : > { %631 = vrot.lane.b32.xlu1 %v556_v3, %s2765_s13  ;;  %629 = vrot.lane.b32.xlu0 %v554_v11, %s2765_s13  ;;  %v3040_v3 = vsel %vm536_vm0, %v3873_v41, %v600_v51  ;;  %v3046_v11 = vsel %vm713_vm1, %v3870_v52, %v777_v57  ;;  %v736_v51 = vsel %vm713_vm1, %v734_v55, %v735_v43  ;;  %v787_v57 = vrot.slane %v478_v9, 2  ;;  %v484_v55 = vld [vmem:[%s3055_s26 + $0x10] sm:$0x3] }
  0x2f   : > { %v615_v43 = vrot.slane %v481_v28, 1  ;;  %v792_v52 = vrot.slane %v481_v28, 2  ;;  %v487_v41 = vld [vmem:[%s3085_s30 + $0x10] sm:$0x3]  ;;  %v739_v28 = vrot.slane %v3035_v2, 2 }
  0x30   : > { %v3101_v13 = vsel %vm713_vm1, %v3872_v37, %v787_v57  ;;  %v3880_v57 = vrot.slane %v3080_v4, 1  ;;  %v3115_v37 = vld [vmem:[%s3085_s30 + $0x8] sm:$0xff]  ;;  %v1551_v21 = vrot.slane %v487_v41, 1 }
  0x31   : > { %v3882_v25 = vrot.slane %v3115_v37, 1  ;;  %v3883_v17 = vrot.slane %v3115_v37, 2 }
  0x32   : > { %808 = vrot.lane.b32.xlu1 %v733_v22, %s2766_s14  ;;  %806 = vrot.lane.b32.xlu0 %v731_v34, %s2766_s14  ;;  %v563_v22 = vrot.slane %v3026_v56, 1  ;;  %v610_v34 = vrot.slane %v478_v9, 1  ;;  %v742_v9 = vrot.slane %v3012_v44, 2 }
  0x34   : > { %v3091_v54 = vsel %vm536_vm0, %v3871_v27, %v610_v34  ;;  %v566_v34 = vsel %vm536_vm0, %v563_v22, %v565_v23  ;;  %v564_v27 = vsel %vm536_vm0, %v562_v31, %v563_v22  ;;  %v965_v23 = vrot.slane %v484_v55, 1  ;;  %v3127_v31 = vld [vmem:[%s2844_s12 + $0x90] sm:$0xff] }
  0x35   : > { %v3881_v22 = vrot.slane %v3080_v4, 2 }
  0x36   : > { %635 = vrot.lane.b32.xlu1 %v561_v62, %s2765_s13  ;;  %633 = vrot.lane.b32.xlu0 %v559_v1, %s2765_s13  ;;  %v3875_v62 = vrot.slane %v3050_v20, 1  ;;  %v740_v1 = vrot.slane %v3026_v56, 2 }
  0x38   : > { %v3111_v44 = vsel %vm536_vm0, %v3875_v62, %v615_v43  ;;  %v568_v43 = vrot.slane %v3096_v18, 1  ;;  %v3133_v62 = vsel %vm536_vm0, %v3880_v57, %v965_v23  ;;  %v741_v23 = vsel %vm713_vm1, %v739_v28, %v740_v1 }
  0x39   : > { %v567_v57 = vrot.slane %v3127_v31, 1 }
  0x3a   : > { %812 = vrot.lane.b32.xlu1 %v738_v42, %s2766_s14  ;;  %810 = vrot.lane.b32.xlu0 %v736_v51, %s2766_s14  ;;  %v3123_v42 = vsel %vm713_vm1, %v3878_v58, %v792_v52  ;;  %v976_v51 = vrot.slane %v484_v55, 2  ;;  %v743_v52 = vsel %vm713_vm1, %v740_v1, %v742_v9  ;;  %v570_v58 = vrot.slane %v454_v36, 1 }
  0x3b   : > { %v1562_v9 = vrot.slane %v487_v41, 2  ;;  %v745_v1 = vrot.slane %v3096_v18, 2  ;;  %v2322_v41 = vld [vmem:[%s3864_s3 + $0x30] sm:$0xff] }
  0x3c   : > { %v3142_v55 = vsel %vm713_vm1, %v3881_v22, %v976_v51  ;;  %v571_v28 = vsel %vm536_vm0, %v568_v43, %v570_v58  ;;  %v569_v51 = vsel %vm536_vm0, %v567_v57, %v568_v43  ;;  %v747_v22 = vrot.slane %v454_v36, 2 }
  0x3e   : > { %639 = vrot.lane.b32.xlu1 %v566_v34, %s2765_s13  ;;  %637 = vrot.lane.b32.xlu0 %v564_v27, %s2765_s13  ;;  %v3150_v27 = vsel %vm536_vm0, %v3882_v25, %v1551_v21  ;;  %v3155_v34 = vsel %vm713_vm1, %v3883_v17, %v1562_v9  ;;  %v744_v21 = vrot.slane %v3127_v31, 2  ;;  %v3164_v25 = vld [vmem:[%s2844_s12 + $0xb0] sm:$0xff]  ;;  %v3174_v9 = vld [vmem:[%s2844_s12 + $0xa8] sm:$0xff]  ;;  %v748_v58 = vsel %vm713_vm1, %v745_v1, %v747_v22 }
  0x3f   : > { %v573_v36 = vrot.slane %v3164_v25, 1  ;;  %v572_v7 = vrot.slane %v3174_v9, 1  ;;  %v749_v22 = vrot.slane %v3174_v9, 2 }
  0x40   : > { %v746_v57 = vsel %vm713_vm1, %v744_v21, %v745_v1  ;;  %v3192_v1 = vld [vmem:[%s2844_s12 + $0xc0] sm:$0xff] }
  0x42   : > { %816 = vrot.lane.b32.xlu1 %v743_v52, %s2766_s14  ;;  %814 = vrot.lane.b32.xlu0 %v741_v23, %s2766_s14  ;;  %v2323_v52 = vld [vmem:[%s3864_s3 + $0x38] sm:$0xff] }
  0x43   : > { %v457_v23 = vld [vmem:[%s2844_s12 + $0xb8] sm:$0x3]  ;;  %v3176_v17 = vpack.c.bf16 %v2323_v52, %v2322_v41  ;;  %v750_v41 = vrot.slane %v3164_v25, 2 }
  0x44   : > { %v575_v43 = vrot.slane %v457_v23, 1  ;;  %v752_v52 = vrot.slane %v457_v23, 2  ;;  %v755_v23 = vrot.slane %v2904_v45, 2 }
  0x45   : > { %2640 = vmatprep.subr.bf16.mxu0 %v3176_v17 }
  0x46   : > { %643 = vrot.lane.b32.xlu1 %v571_v28, %s2765_s13  ;;  %641 = vrot.lane.b32.xlu0 %v569_v51, %s2765_s13  ;;  %v576_v28 = vsel %vm536_vm0, %v573_v36, %v575_v43  ;;  %v574_v51 = vsel %vm536_vm0, %v572_v7, %v573_v36  ;;  %v753_v21 = vsel %vm713_vm1, %v750_v41, %v752_v52  ;;  %v757_v36 = vrot.slane %v2910_v47, 2 }
  0x47   : > { %v754_v43 = vrot.slane %v3192_v1, 2 }
  0x4a   : > { %820 = vrot.lane.b32.xlu1 %v748_v58, %s2766_s14  ;;  %818 = vrot.lane.b32.xlu0 %v746_v57, %s2766_s14  ;;  %v751_v58 = vsel %vm713_vm1, %v749_v22, %v750_v41  ;;  %v577_v57 = vrot.slane %v3192_v1, 1  ;;  %v758_v41 = vsel %vm713_vm1, %v755_v23, %v757_v36  ;;  %v3885_v22 = vrot.slane %v2913_v48, 2 }
  0x4c   : > { %v579_v7 = vsel %vm536_vm0, %v577_v57, %v578_v53 }
  0x4e   : > { %647 = vrot.lane.b32.xlu1 %v576_v28, %s2765_s13  ;;  %645 = vrot.lane.b32.xlu0 %v574_v51, %s2765_s13  ;;  %v3208_v28 = vld [vmem:[%s2844_s12 + $0xd8] sm:$0xff]  ;;  %v756_v51 = vsel %vm713_vm1, %v754_v43, %v755_v23  ;;  %v3887_v23 = vrot.slane %v2935_v60, 2  ;;  %v3888_v43 = vrot.slane %v2957_v10, 1 }
  0x4f   : > { %v582_v53 = vrot.slane %v3208_v28, 1  ;;  %v759_v52 = vrot.slane %v3208_v28, 2 }
  0x51   : > { %v584_v47 = vsel %vm536_vm0, %v582_v53, %v583_v59  ;;  %v3886_v59 = vrot.slane %v2935_v60, 1  ;;  %v3889_v53 = vrot.slane %v2957_v10, 2 }
  0x52   : > { %824 = vrot.lane.b32.xlu1 %v753_v21, %s2766_s14  ;;  %822 = vrot.lane.b32.xlu0 %v751_v58, %s2766_s14  ;;  %v761_v21 = vsel %vm713_vm1, %v759_v52, %v3885_v22  ;;  %v3890_v52 = vrot.slane %v2981_v26, 1 }
  0x56   : > { %651 = vrot.lane.b32.xlu1 %v2945_v0, %s2765_s13  ;;  %649 = vrot.lane.b32.xlu0 %v579_v7, %s2765_s13  ;;  %v3223_v0 = vld [vmem:[%s2844_s12 + $0xf0] sm:$0xff]  ;;  %v3240_v7 = vld [vmem:[%s2844_s12 + $0x108] sm:$0xff] }
  0x57   : > { %v587_v58 = vrot.slane %v3223_v0, 1  ;;  %v592_v36 = vrot.slane %v3240_v7, 1 }
  0x59   : > { %v589_v57 = vsel %vm536_vm0, %v587_v58, %v3886_v59  ;;  %v3891_v58 = vrot.slane %v2981_v26, 2 }
  0x5a   : > { %828 = vrot.lane.b32.xlu1 %v758_v41, %s2766_s14  ;;  %826 = vrot.lane.b32.xlu0 %v756_v51, %s2766_s14  ;;  %v594_v41 = vsel %vm536_vm0, %v592_v36, %v3888_v43  ;;  %v3257_v51 = vld [vmem:[%s2844_s12 + $0x120] sm:$0xff]  ;;  %v3894_v43 = vrot.slane %v3030_v61, 1 }
  0x5e   : > { %655 = vrot.lane.b32.xlu1 %v2967_v15, %s2765_s13  ;;  %653 = vrot.lane.b32.xlu0 %v584_v47, %s2765_s13  ;;  %v764_v15 = vrot.slane %v3223_v0, 2  ;;  %v597_v47 = vrot.slane %v3257_v51, 1 }
  0x60   : > { %v599_v22 = vsel %vm536_vm0, %v597_v47, %v3890_v52 }
  0x62   : > { %832 = vrot.lane.b32.xlu1 %v2974_v19, %s2766_s14  ;;  %830 = vrot.lane.b32.xlu0 %v761_v21, %s2766_s14  ;;  %v766_v19 = vsel %vm713_vm1, %v764_v15, %v3887_v23  ;;  %v3274_v21 = vld [vmem:[%s2844_s12 + $0x138] sm:$0xff]  ;;  %v3291_v23 = vld [vmem:[%s2844_s12 + $0x150] sm:$0xff] }
  0x63   : > { %v602_v59 = vrot.slane %v3274_v21, 1 }
  0x66   : > { %659 = vrot.lane.b32.xlu1 %v2990_v29, %s2765_s13  ;;  %657 = vrot.lane.b32.xlu0 %v589_v57, %s2765_s13  ;;  %v769_v29 = vrot.slane %v3240_v7, 2  ;;  %v3892_v57 = vrot.slane %v3001_v38, 1 }
  0x68   : > { %v604_v15 = vsel %vm536_vm0, %v602_v59, %v3892_v57  ;;  %v3325_v59 = vld [vmem:[%s3055_s26] sm:$0xff]  ;;  %s3680_s26 = scalar_lea.vmem %s3865_s4, %s2363_s19 }
  0x6a   : > { %836 = vrot.lane.b32.xlu1 %v2997_v35, %s2766_s14  ;;  %834 = vrot.lane.b32.xlu0 %v766_v19, %s2766_s14  ;;  %v771_v35 = vsel %vm713_vm1, %v769_v29, %v3889_v53  ;;  %v3893_v19 = vrot.slane %v3001_v38, 2  ;;  %v3308_v29 = vld [vmem:[%s2844_s12 + $0x168] sm:$0xff]  ;;  %v3895_v53 = vrot.slane %v3030_v61, 2 }
  0x6e   : > { %663 = vrot.lane.b32.xlu1 %v3006_v40, %s2765_s13  ;;  %661 = vrot.lane.b32.xlu0 %v594_v41, %s2765_s13  ;;  %v774_v40 = vrot.slane %v3257_v51, 2 }
  0x72   : > { %840 = vrot.lane.b32.xlu1 %v3017_v49, %s2766_s14  ;;  %838 = vrot.lane.b32.xlu0 %v771_v35, %s2766_s14  ;;  %v776_v49 = vsel %vm713_vm1, %v774_v40, %v3891_v58  ;;  %v612_v35 = vrot.slane %v3308_v29, 1 }
  0x76   : > { %667 = vrot.lane.b32.xlu1 %v3040_v3, %s2765_s13  ;;  %665 = vrot.lane.b32.xlu0 %v599_v22, %s2765_s13  ;;  %v779_v3 = vrot.slane %v3274_v21, 2  ;;  %v3896_v22 = vrot.slane %v3050_v20, 1 }
  0x78   : > { %v781_v36 = vsel %vm713_vm1, %v779_v3, %v3893_v19  ;;  %v614_v40 = vsel %vm536_vm0, %v612_v35, %v3896_v22  ;;  %v3359_v22 = vld [vmem:[%s3085_s30] sm:$0xff] }
  0x7a   : > { %844 = vrot.lane.b32.xlu1 %v3046_v11, %s2766_s14  ;;  %842 = vrot.lane.b32.xlu0 %v776_v49, %s2766_s14  ;;  %v607_v11 = vrot.slane %v3291_v23, 1 }
  0x7c   : > { %v609_v41 = vsel %vm536_vm0, %v607_v11, %v3894_v43 }
  0x7e   : > { %671 = vrot.lane.b32.xlu1 %v3063_v24, %s2765_s13  ;;  %669 = vrot.lane.b32.xlu0 %v604_v15, %s2765_s13  ;;  %v784_v24 = vrot.slane %v3291_v23, 2  ;;  %v962_v15 = vrot.slane %v3325_v59, 1 }
  0x82   : > { %848 = vrot.lane.b32.xlu1 %v3073_v33, %s2766_s14  ;;  %846 = vrot.lane.b32.xlu0 %v781_v36, %s2766_s14  ;;  %v786_v33 = vsel %vm713_vm1, %v784_v24, %v3895_v53 }
  0x86   : > { %675 = vrot.lane.b32.xlu1 %v3091_v54, %s2765_s13  ;;  %673 = vrot.lane.b32.xlu0 %v609_v41, %s2765_s13  ;;  %v789_v54 = vrot.slane %v3308_v29, 2  ;;  %v973_v41 = vrot.slane %v3325_v59, 2 }
  0x88   : > { %v620_v47 = vpop.permute.xlu1 %619  ;;  %v618_v52 = vpop.permute.xlu0 %617 }
  0x89   : > { %v891_v3 = vsel %vm890_vm2, %v2852_v8, %v618_v52  ;;  %v3898_v8 = vrot.slane %v3080_v4, 1  ;;  %v892_v24 = vsel %vm890_vm2, %v2848_v6, %v620_v47  ;;  %v2324_v6 = vld [vmem:[%s3864_s3 + $0x40] sm:$0xff] }
  0x8a   : > { %852 = vrot.lane.b32.xlu1 %v3101_v13, %s2766_s14  ;;  %850 = vrot.lane.b32.xlu0 %v786_v33, %s2766_s14  ;;  %v3897_v13 = vrot.slane %v3050_v20, 2 }
  0x8c   : > { %v624_v58 = vpop.permute.xlu1 %623  ;;  %v622_v49 = vpop.permute.xlu0 %621  ;;  %v791_v57 = vsel %vm713_vm1, %v789_v54, %v3897_v13  ;;  %v1548_v54 = vrot.slane %v3359_v22, 1 }
  0x8d   : > { %v893_v19 = vsel %vm890_vm2, %v2863_v16, %v622_v49  ;;  %v964_v16 = vsel %vm536_vm0, %v962_v15, %v3898_v8  ;;  %v894_v53 = vsel %vm890_vm2, %v2858_v12, %v624_v58  ;;  %v3899_v12 = vrot.slane %v3080_v4, 2 }
  0x8e   : > { %679 = vrot.lane.b32.xlu1 %v3111_v44, %s2765_s13  ;;  %677 = vrot.lane.b32.xlu0 %v614_v40, %s2765_s13 }
  0x8f   : > { %v975_v47 = vsel %vm713_vm1, %v973_v41, %v3899_v12 }
  0x90   : > { %v799_v36 = vpop.permute.xlu1 %798  ;;  %v795_v11 = vpop.permute.xlu0 %794 }
  0x91   : > { %v926_v44 = vsel %vm923_vm3, %v893_v19, %v799_v36  ;;  %v924_v43 = vsel %vm923_vm3, %v891_v3, %v795_v11  ;;  %v1559_v3 = vrot.slane %v3359_v22, 2 }
  0x92   : > { %856 = vrot.lane.b32.xlu1 %v3123_v42, %s2766_s14  ;;  %854 = vrot.lane.b32.xlu0 %v791_v57, %s2766_s14  ;;  %v3900_v57 = vrot.slane %v3115_v37, 1 }
  0x93   : > { %2475 = vmatprep.mubr.msk.f32.mxu1 %vm992_vm4, %v926_v44  ;;  %2529 = vmatprep.mubr.msk.f32.mxu0 %vm992_vm4, %v924_v43 }
  0x94   : > { %v801_v33 = vpop.permute.xlu1 %800  ;;  %v797_v42 = vpop.permute.xlu0 %796  ;;  %v1550_v15 = vsel %vm536_vm0, %v1548_v54, %v3900_v57 }
  0x95   : > { %v927_v35 = vsel %vm923_vm3, %v894_v53, %v801_v33  ;;  %v925_v52 = vsel %vm923_vm3, %v892_v24, %v797_v42 }
  0x96   : > { %969 = vrot.lane.b32.xlu1 %v3133_v62, %s2765_s13  ;;  %967 = vrot.lane.b32.xlu0 %v964_v16, %s2765_s13 }
  0x97   : > { %2476 = vmatmul.mubr.msk.f32.vlgmr.msra.gmra.mrb[0].mxu1 %vm992_vm4, %v927_v35  ;;  %2530 = vmatmul.mubr.msk.f32.vlgmr.msra.gmra.mrb[0].mxu0 %vm992_vm4, %v925_v52 }
  0x98   : > { %2532 = vmatprep.mubr.msk.f32.mxu0 %vm992_vm4, %v926_v44  ;;  %v628_v40 = vpop.permute.xlu1 %627  ;;  %v626_v62 = vpop.permute.xlu0 %625  ;;  %2642 = vmatpush3.bf16.msra.mxu0 %v3176_v17 }
  0x99   : > { %2581 = vmatprep.subr.mxu0 %v2324_v6  ;;  %2645 = vmatpush3.bf16.msra.mxu1 %v2838_v5  ;;  %v896_v58 = vsel %vm890_vm2, %v2881_v30, %v628_v40  ;;  %v895_v17 = vsel %vm890_vm2, %v2885_v32, %v626_v62 }
  0x9a   : > { %980 = vrot.lane.b32.xlu1 %v3142_v55, %s2766_s14  ;;  %978 = vrot.lane.b32.xlu0 %v975_v47, %s2766_s14 }
  0x9b   : > { %2533 = vmatmul.mubr.msk.f32.gmra.mrb[2].mxu0 %vm992_vm4, %v927_v35  ;;  %2644 = vmatprep.subr.mxu1 %v2921_v50 }
  0x9c   : > { %v805_v49 = vpop.permute.xlu1 %804  ;;  %v803_v13 = vpop.permute.xlu0 %802  ;;  %2582 = vmatpush3.msra.mxu0 %v2324_v6 }
  0x9d   : > { %v3383_v5 = vsel %vm923_vm3, %v896_v58, %v805_v49  ;;  %v3386_v55 = vsel %vm923_vm3, %v895_v17, %v803_v13  ;;  %2646 = vmatpush3.msra.mxu1 %v2921_v50  ;;  %v3901_v50 = vrot.slane %v3115_v37, 2 }
  0x9e   : > { %2478 = vmatprep.mubr.msk.f32.mxu1 %vm992_vm4, %v3386_v55  ;;  %2535 = vmatprep.mubr.msk.f32.mxu0 %vm992_vm4, %v3386_v55 }
  0x9f   : > { %2479 = vmatmul.mubr.msk.f32.gmra.mrb[2].mxu1 %vm992_vm4, %v3383_v5  ;;  %2536 = vmatmul.mubr.msk.f32.gmra.mrb[4].mxu0 %vm992_vm4, %v3383_v5  ;;  %v1561_v19 = vsel %vm713_vm1, %v1559_v3, %v3901_v50 }
  0xa0   : > { %v632_v30 = vpop.permute.xlu1 %631  ;;  %v630_v32 = vpop.permute.xlu0 %629  ;;  %1553 = vrot.lane.b32.xlu0 %v1550_v15, %s2765_s13  ;;  %1555 = vrot.lane.b32.xlu1 %v3150_v27, %s2765_s13 }
  0xa1   : > { %v898_v36 = vsel %vm890_vm2, %v2897_v39, %v632_v30  ;;  %v897_v11 = vsel %vm890_vm2, %v2907_v46, %v630_v32 }
  0xa4   : > { %v809_v44 = vpop.permute.xlu1 %808  ;;  %v807_v43 = vpop.permute.xlu0 %806  ;;  %1564 = vrot.lane.b32.xlu0 %v1561_v19, %s2766_s14  ;;  %1566 = vrot.lane.b32.xlu1 %v3155_v34, %s2766_s14 }
  0xa5   : > { %v3415_v8 = vsel %vm923_vm3, %v898_v36, %v809_v44  ;;  %v930_v27 = vsel %vm923_vm3, %v897_v11, %v807_v43 }
  0xa6   : > { %2481 = vmatprep.mubr.msk.f32.mxu1 %vm992_vm4, %v930_v27  ;;  %2538 = vmatprep.mubr.msk.f32.mxu0 %vm992_vm4, %v930_v27 }
  0xa7   : > { %2482 = vmatmul.mubr.msk.f32.gmra.mrb[4].mxu1 %vm992_vm4, %v3415_v8  ;;  %2539 = vmatmul.mubr.msk.f32.gmra.mrb[6].mxu0 %vm992_vm4, %v3415_v8 }
  0xa8   : > { %v636_v39 = vpop.permute.xlu1 %635  ;;  %v634_v46 = vpop.permute.xlu0 %633 }
  0xa9   : > { %v900_v34 = vsel %vm890_vm2, %v2940_v63, %v636_v39  ;;  %v899_v16 = vsel %vm890_vm2, %v2962_v14, %v634_v46 }
  0xac   : > { %v813_v41 = vpop.permute.xlu1 %812  ;;  %v811_v24 = vpop.permute.xlu0 %810 }
  0xad   : > { %v933_v53 = vsel %vm923_vm3, %v900_v34, %v813_v41  ;;  %v932_v33 = vsel %vm923_vm3, %v899_v16, %v811_v24 }
  0xae   : > { %2484 = vmatprep.mubr.msk.f32.mxu1 %vm992_vm4, %v932_v33  ;;  %2541 = vmatprep.mubr.msk.f32.mxu0 %vm992_vm4, %v932_v33 }
  0xaf   : > { %2485 = vmatmul.mubr.msk.f32.gmra.mrb[6].mxu1 %vm992_vm4, %v933_v53  ;;  %2542 = vmatmul.mubr.msk.f32.gmra.mrb[8].mxu0 %vm992_vm4, %v933_v53 }
  0xb0   : > { %v640_v42 = vpop.permute.xlu1 %639  ;;  %v638_v35 = vpop.permute.xlu0 %637 }
  0xb1   : > { %v902_v63 = vsel %vm890_vm2, %v3026_v56, %v640_v42  ;;  %v901_v14 = vsel %vm890_vm2, %v3035_v2, %v638_v35 }
  0xb4   : > { %v817_v52 = vpop.permute.xlu1 %816  ;;  %v815_v6 = vpop.permute.xlu0 %814 }
  0xb5   : > { %v935_v12 = vsel %vm923_vm3, %v902_v63, %v817_v52  ;;  %v934_v47 = vsel %vm923_vm3, %v901_v14, %v815_v6 }
  0xb6   : > { %2487 = vmatprep.mubr.msk.f32.mxu1 %vm992_vm4, %v934_v47  ;;  %2544 = vmatprep.mubr.msk.f32.mxu0 %vm992_vm4, %v934_v47 }
  0xb7   : > { %2488 = vmatmul.mubr.msk.f32.gmra.mrb[8].mxu1 %vm992_vm4, %v935_v12  ;;  %2545 = vmatmul.mubr.msk.f32.gmra.mrb[10].mxu0 %vm992_vm4, %v935_v12 }
  0xb8   : > { %v644_v40 = vpop.permute.xlu1 %643  ;;  %v642_v62 = vpop.permute.xlu0 %641 }
  0xb9   : > { %v904_v56 = vsel %vm890_vm2, %v3096_v18, %v644_v40  ;;  %v903_v2 = vsel %vm890_vm2, %v3127_v31, %v642_v62 }
  0xbc   : > { %v821_v54 = vpop.permute.xlu1 %820  ;;  %v819_v58 = vpop.permute.xlu0 %818 }
  0xbd   : > { %v937_v17 = vsel %vm923_vm3, %v904_v56, %v821_v54  ;;  %v936_v49 = vsel %vm923_vm3, %v903_v2, %v819_v58 }
  0xbe   : > { %2490 = vmatprep.mubr.msk.f32.mxu1 %vm992_vm4, %v936_v49  ;;  %2547 = vmatprep.mubr.msk.f32.mxu0 %vm992_vm4, %v936_v49 }
  0xbf   : > { %2491 = vmatmul.mubr.msk.f32.gmra.mrb[10].mxu1 %vm992_vm4, %v937_v17  ;;  %2548 = vmatmul.mubr.msk.f32.gmra.mrb[12].mxu0 %vm992_vm4, %v937_v17 }
  0xc0   : > { %v648_v13 = vpop.permute.xlu1 %647  ;;  %v646_v57 = vpop.permute.xlu0 %645 }
  0xc1   : > { %v906_v18 = vsel %vm890_vm2, %v3164_v25, %v648_v13  ;;  %v905_v31 = vsel %vm890_vm2, %v3174_v9, %v646_v57 }
  0xc4   : > { %v825_v15 = vpop.permute.xlu1 %824  ;;  %v823_v3 = vpop.permute.xlu0 %822 }
  0xc5   : > { %v939_v30 = vsel %vm923_vm3, %v906_v18, %v825_v15  ;;  %v938_v32 = vsel %vm923_vm3, %v905_v31, %v823_v3 }
  0xc6   : > { %2493 = vmatprep.mubr.msk.f32.mxu1 %vm992_vm4, %v938_v32  ;;  %2550 = vmatprep.mubr.msk.f32.mxu0 %vm992_vm4, %v938_v32 }
  0xc7   : > { %2494 = vmatmul.mubr.msk.f32.gmra.mrb[12].mxu1 %vm992_vm4, %v939_v30  ;;  %2551 = vmatmul.mubr.msk.f32.gmra.mrb[14].mxu0 %vm992_vm4, %v939_v30 }
  0xc8   : > { %v652_v50 = vpop.permute.xlu1 %651  ;;  %2583 = vmatprep.mubr.msk.f32.mxu0 %vm992_vm4, %v3386_v55  ;;  %v650_v25 = vpop.permute.xlu0 %649 }
  0xc9   : > { %v908_v9 = vsel %vm890_vm2, %v2904_v45, %v652_v50  ;;  %v907_v19 = vsel %vm890_vm2, %v3192_v1, %v650_v25 }
  0xcb   : > { %2584 = vmatmul.mubr.msk.f32.vlgmr.msra.gmra.mrb[0].mxu0 %vm992_vm4, %v3383_v5 }
  0xcc   : > { %v829_v36 = vpop.permute.xlu1 %828  ;;  %2586 = vmatprep.mubr.msk.f32.mxu0 %vm992_vm4, %v930_v27  ;;  %v827_v11 = vpop.permute.xlu0 %826 }
  0xcd   : > { %v3474_v44 = vsel %vm923_vm3, %v908_v9, %v829_v36  ;;  %v3477_v43 = vsel %vm923_vm3, %v907_v19, %v827_v11 }
  0xce   : > { %2496 = vmatprep.mubr.msk.f32.mxu1 %vm992_vm4, %v3477_v43 }
  0xcf   : > { %2497 = vmatmul.mubr.msk.f32.gmra.mrb[14].mxu1 %vm992_vm4, %v3474_v44  ;;  %2587 = vmatmul.mubr.msk.f32.gmra.mrb[2].mxu0 %vm992_vm4, %v3415_v8 }
  0xd0   : > { %v656_v45 = vpop.permute.xlu1 %655  ;;  %2589 = vmatprep.mubr.msk.f32.mxu0 %vm992_vm4, %v932_v33  ;;  %v654_v1 = vpop.permute.xlu0 %653 }
  0xd1   : > { %v910_v5 = vsel %vm890_vm2, %v2913_v48, %v656_v45  ;;  %v909_v55 = vsel %vm890_vm2, %v3208_v28, %v654_v1 }
  0xd3   : > { %2590 = vmatmul.mubr.msk.f32.gmra.mrb[4].mxu0 %vm992_vm4, %v933_v53 }
  0xd4   : > { %v833_v27 = vpop.permute.xlu1 %832  ;;  %2592 = vmatprep.mubr.msk.f32.mxu0 %vm992_vm4, %v934_v47  ;;  %v831_v39 = vpop.permute.xlu0 %830 }
  0xd5   : > { %v3493_v46 = vsel %vm923_vm3, %v910_v5, %v833_v27  ;;  %v3496_v8 = vsel %vm923_vm3, %v909_v55, %v831_v39 }
  0xd6   : > { %2499 = vmatprep.mubr.msk.f32.mxu1 %vm992_vm4, %v3496_v8 }
  0xd7   : > { %2500 = vmatmul.mubr.msk.f32.gmra.mrb[16].mxu1 %vm992_vm4, %v3493_v46  ;;  %2593 = vmatmul.mubr.msk.f32.gmra.mrb[6].mxu0 %vm992_vm4, %v935_v12 }
  0xd8   : > { %v660_v48 = vpop.permute.xlu1 %659  ;;  %2595 = vmatprep.mubr.msk.f32.mxu0 %vm992_vm4, %v936_v49  ;;  %v658_v28 = vpop.permute.xlu0 %657 }
  0xd9   : > { %v912_v34 = vsel %vm890_vm2, %v2935_v60, %v660_v48  ;;  %v911_v16 = vsel %vm890_vm2, %v3223_v0, %v658_v28 }
  0xdb   : > { %2596 = vmatmul.mubr.msk.f32.gmra.mrb[8].mxu0 %vm992_vm4, %v937_v17 }
  0xdc   : > { %v837_v41 = vpop.permute.xlu1 %836  ;;  %2598 = vmatprep.mubr.msk.f32.mxu0 %vm992_vm4, %v938_v32  ;;  %v835_v24 = vpop.permute.xlu0 %834 }
  0xdd   : > { %v3511_v53 = vsel %vm923_vm3, %v912_v34, %v837_v41  ;;  %v3514_v33 = vsel %vm923_vm3, %v911_v16, %v835_v24 }
  0xde   : > { %2502 = vmatprep.mubr.msk.f32.mxu1 %vm992_vm4, %v3514_v33 }
  0xdf   : > { %2503 = vmatmul.mubr.msk.f32.gmra.mrb[18].mxu1 %vm992_vm4, %v3511_v53  ;;  %2599 = vmatmul.mubr.msk.f32.gmra.mrb[10].mxu0 %vm992_vm4, %v939_v30 }
  0xe0   : > { %v664_v60 = vpop.permute.xlu1 %663  ;;  %2601 = vmatprep.mubr.msk.f32.mxu0 %vm992_vm4, %v3477_v43  ;;  %v662_v0 = vpop.permute.xlu0 %661 }
  0xe1   : > { %v914_v42 = vsel %vm890_vm2, %v2957_v10, %v664_v60  ;;  %v913_v35 = vsel %vm890_vm2, %v3240_v7, %v662_v0  ;;  %v2767_v60 = vmov 0.0  }
  0xe2   : > { %1878 = vst.msk [vmem:[%s3652_s15] sm:$0x1] %vm1877_vm5, %v2767_v60  ;;  %1879 = vst.msk [vmem:[%s3658_s18] sm:$0x1] %vm1877_vm5, %v2767_v60 }
  0xe3   : > { %2602 = vmatmul.mubr.msk.f32.gmra.mrb[12].mxu0 %vm992_vm4, %v3474_v44 }
  0xe4   : > { %v841_v63 = vpop.permute.xlu1 %840  ;;  %2604 = vmatprep.mubr.msk.f32.mxu0 %vm992_vm4, %v3496_v8  ;;  %v839_v14 = vpop.permute.xlu0 %838 }
  0xe5   : > { %v3532_v52 = vsel %vm923_vm3, %v914_v42, %v841_v63  ;;  %v3535_v6 = vsel %vm923_vm3, %v913_v35, %v839_v14 }
  0xe6   : > { %2505 = vmatprep.mubr.msk.f32.mxu1 %vm992_vm4, %v3535_v6 }
  0xe7   : > { %2506 = vmatmul.mubr.msk.f32.gmra.mrb[20].mxu1 %vm992_vm4, %v3532_v52  ;;  %2605 = vmatmul.mubr.msk.f32.gmra.mrb[14].mxu0 %vm992_vm4, %v3493_v46 }
  0xe8   : > { %v668_v10 = vpop.permute.xlu1 %667  ;;  %2607 = vmatprep.mubr.msk.f32.mxu0 %vm992_vm4, %v3514_v33  ;;  %v666_v7 = vpop.permute.xlu0 %665 }
  0xe9   : > { %v916_v12 = vsel %vm890_vm2, %v2981_v26, %v668_v10  ;;  %v915_v47 = vsel %vm890_vm2, %v3257_v51, %v666_v7 }
  0xeb   : > { %2608 = vmatmul.mubr.msk.f32.gmra.mrb[16].mxu0 %vm992_vm4, %v3511_v53 }
  0xec   : > { %v845_v40 = vpop.permute.xlu1 %844  ;;  %2610 = vmatprep.mubr.msk.f32.mxu0 %vm992_vm4, %v3535_v6  ;;  %v843_v62 = vpop.permute.xlu0 %842 }
  0xed   : > { %v3554_v56 = vsel %vm923_vm3, %v916_v12, %v845_v40  ;;  %v3557_v2 = vsel %vm923_vm3, %v915_v47, %v843_v62 }
  0xee   : > { %2508 = vmatprep.mubr.msk.f32.mxu1 %vm992_vm4, %v3557_v2 }
  0xef   : > { %2509 = vmatmul.mubr.msk.f32.gmra.mrb[22].mxu1 %vm992_vm4, %v3554_v56  ;;  %2611 = vmatmul.mubr.msk.f32.gmra.mrb[18].mxu0 %vm992_vm4, %v3532_v52 }
  0xf0   : > { %v672_v26 = vpop.permute.xlu1 %671  ;;  %2613 = vmatprep.mubr.msk.f32.mxu0 %vm992_vm4, %v3557_v2  ;;  %v670_v51 = vpop.permute.xlu0 %669 }
  0xf1   : > { %v918_v54 = vsel %vm890_vm2, %v3001_v38, %v672_v26  ;;  %v917_v58 = vsel %vm890_vm2, %v3274_v21, %v670_v51 }
  0xf3   : > { %2614 = vmatmul.mubr.msk.f32.gmra.mrb[20].mxu0 %vm992_vm4, %v3554_v56 }
  0xf4   : > { %v849_v17 = vpop.permute.xlu1 %848  ;;  %v847_v49 = vpop.permute.xlu0 %846 }
  0xf5   : > { %v3574_v13 = vsel %vm923_vm3, %v918_v54, %v849_v17  ;;  %v950_v57 = vsel %vm923_vm3, %v917_v58, %v847_v49 }
  0xf6   : > { %2511 = vmatprep.mubr.msk.f32.mxu1 %vm992_vm4, %v950_v57  ;;  %2616 = vmatprep.mubr.msk.f32.mxu0 %vm992_vm4, %v950_v57 }
  0xf7   : > { %2512 = vmatmul.mubr.msk.f32.gmra.mrb[24].mxu1 %vm992_vm4, %v3574_v13  ;;  %2617 = vmatmul.mubr.msk.f32.gmra.mrb[22].mxu0 %vm992_vm4, %v3574_v13 }
  0xf8   : > { %v676_v38 = vpop.permute.xlu1 %675  ;;  %v674_v18 = vpop.permute.xlu0 %673 }
  0xf9   : > { %v920_v21 = vsel %vm890_vm2, %v3030_v61, %v676_v38  ;;  %v919_v31 = vsel %vm890_vm2, %v3291_v23, %v674_v18 }
  0xfc   : > { %v853_v15 = vpop.permute.xlu1 %852  ;;  %v851_v3 = vpop.permute.xlu0 %850 }
  0xfd   : > { %v953_v30 = vsel %vm923_vm3, %v920_v21, %v853_v15  ;;  %v952_v32 = vsel %vm923_vm3, %v919_v31, %v851_v3 }
  0xfe   : > { %2514 = vmatprep.mubr.msk.f32.mxu1 %vm992_vm4, %v952_v32  ;;  %2619 = vmatprep.mubr.msk.f32.mxu0 %vm992_vm4, %v952_v32 }
  0xff   : > { %2515 = vmatmul.mubr.msk.f32.gmra.mrb[26].mxu1 %vm992_vm4, %v953_v30  ;;  %2620 = vmatmul.mubr.msk.f32.gmra.mrb[24].mxu0 %vm992_vm4, %v953_v30 }
 0x100   : > { %v680_v50 = vpop.permute.xlu1 %679  ;;  %v678_v25 = vpop.permute.xlu0 %677 }
 0x101   : > { %v922_v61 = vsel %vm890_vm2, %v3050_v20, %v680_v50  ;;  %v921_v23 = vsel %vm890_vm2, %v3308_v29, %v678_v25 }
 0x104   : > { %v857_v9 = vpop.permute.xlu1 %856  ;;  %v855_v19 = vpop.permute.xlu0 %854 }
 0x105   : > { %v955_v36 = vsel %vm923_vm3, %v922_v61, %v857_v9  ;;  %v954_v11 = vsel %vm923_vm3, %v921_v23, %v855_v19 }
 0x106   : > { %2517 = vmatprep.mubr.msk.f32.mxu1 %vm992_vm4, %v954_v11  ;;  %2622 = vmatprep.mubr.msk.f32.mxu0 %vm992_vm4, %v954_v11 }
 0x107   : > { %2518 = vmatmul.mubr.msk.f32.gmra.mrb[28].mxu1 %vm992_vm4, %v955_v36  ;;  %2623 = vmatmul.mubr.msk.f32.gmra.mrb[26].mxu0 %vm992_vm4, %v955_v36 }
 0x108   : > { %v970_v45 = vpop.permute.xlu1 %969  ;;  %v968_v1 = vpop.permute.xlu0 %967 }
 0x109   : > { %v985_v20 = vsel %vm890_vm2, %v3080_v4, %v970_v45  ;;  %v984_v29 = vsel %vm890_vm2, %v3325_v59, %v968_v1 }
 0x10c   : > { %v981_v5 = vpop.permute.xlu1 %980  ;;  %v979_v55 = vpop.permute.xlu0 %978 }
 0x10d   : > { %v987_v27 = vsel %vm923_vm3, %v985_v20, %v981_v5  ;;  %v986_v39 = vsel %vm923_vm3, %v984_v29, %v979_v55 }
 0x10e   : > { %2520 = vmatprep.mubr.msk.f32.mxu1 %vm992_vm4, %v986_v39  ;;  %2625 = vmatprep.mubr.msk.f32.mxu0 %vm992_vm4, %v986_v39 }
 0x10f   : > { %2521 = vmatmul.mubr.msk.f32.gmra.mrb[30].mxu1 %vm992_vm4, %v987_v27  ;;  %2626 = vmatmul.mubr.msk.f32.gmra.mrb[28].mxu0 %vm992_vm4, %v987_v27 }
 0x110   : > { %2553 = vmatprep.mubr.msk.f32.mxu1 %vm992_vm4, %v3477_v43 }
 0x112   : > { %v1554_v4 = vpop.permute.xlu0 %1553  ;;  %v1556_v48 = vpop.permute.xlu1 %1555 }
 0x113   : > { %2554 = vmatmul.mubr.msk.f32.vlgmr.msra.gmra.mrb[16].mxu1 %vm992_vm4, %v3474_v44  ;;  %v1570_v59 = vsel %vm890_vm2, %v3359_v22, %v1554_v4  ;;  %v1571_v28 = vsel %vm890_vm2, %v3115_v37, %v1556_v48 }
 0x114   : > { %2556 = vmatprep.mubr.msk.f32.mxu1 %vm992_vm4, %v3496_v8 }
 0x116   : > { %v1565_v34 = vpop.permute.xlu0 %1564  ;;  %v1567_v16 = vpop.permute.xlu1 %1566 }
 0x117   : > { %2557 = vmatmul.mubr.msk.f32.gmra.mrb[18].mxu1 %vm992_vm4, %v3493_v46  ;;  %v1572_v43 = vsel %vm923_vm3, %v1570_v59, %v1565_v34  ;;  %v1573_v41 = vsel %vm923_vm3, %v1571_v28, %v1567_v16 }
 0x118   : > { %2559 = vmatprep.mubr.msk.f32.mxu1 %vm992_vm4, %v3514_v33  ;;  %2628 = vmatprep.mubr.msk.f32.mxu0 %vm992_vm4, %v1572_v43 }
 0x119   : > { %2629 = vmatmul.mubr.msk.f32.gmra.mrb[30].mxu0 %vm992_vm4, %v1573_v41 }
 0x11b   : > { %2560 = vmatmul.mubr.msk.f32.gmra.mrb[20].mxu1 %vm992_vm4, %v3511_v53 }
 0x11c   : > { %2562 = vmatprep.mubr.msk.f32.mxu1 %vm992_vm4, %v3535_v6 }
 0x11f   : > { %2563 = vmatmul.mubr.msk.f32.gmra.mrb[22].mxu1 %vm992_vm4, %v3532_v52 }
 0x120   : > { %2565 = vmatprep.mubr.msk.f32.mxu1 %vm992_vm4, %v3557_v2 }
 0x123   : > { %2566 = vmatmul.mubr.msk.f32.gmra.mrb[24].mxu1 %vm992_vm4, %v3554_v56 }
 0x124   : > { %2568 = vmatprep.mubr.msk.f32.mxu1 %vm992_vm4, %v950_v57 }
 0x127   : > { %2569 = vmatmul.mubr.msk.f32.gmra.mrb[26].mxu1 %vm992_vm4, %v3574_v13 }
 0x128   : > { %2571 = vmatprep.mubr.msk.f32.mxu1 %vm992_vm4, %v952_v32 }
 0x12b   : > { %2572 = vmatmul.mubr.msk.f32.gmra.mrb[28].mxu1 %vm992_vm4, %v953_v30 }
 0x12c   : > { %2574 = vmatprep.mubr.msk.f32.mxu1 %vm992_vm4, %v954_v11 }
 0x12f   : > { %2575 = vmatmul.mubr.msk.f32.gmra.mrb[30].mxu1 %vm992_vm4, %v955_v36 }
 0x16a   : > { %v2477_v37 = vpop.f32.mrb[0].mxu1 }
 0x16b   : > { %v1155_v22 = vpop.f32.mrb[1].mxu1 }
 0x172   : > { %v2480_v44 = vpop.f32.mrb[2].mxu1 }
 0x173   : > { %v1165_v46 = vpop.f32.mrb[3].mxu1 }
 0x17a   : > { %v2483_v8 = vpop.f32.mrb[4].mxu1 }
 0x17b   : > { %v1175_v24 = vpop.f32.mrb[5].mxu1 }
 0x182   : > { %v2486_v53 = vpop.f32.mrb[6].mxu1 }
 0x183   : > { %v1185_v33 = vpop.f32.mrb[7].mxu1 }
 0x18a   : > { %v3664_v0 = vpop.f32.mrb[8].mxu1 }
 0x18b   : > { %v3666_v42 = vpop.f32.mrb[9].mxu1 }
 0x192   : > { %v3668_v35 = vpop.f32.mrb[10].mxu1 }
 0x193   : > { %v3670_v63 = vpop.f32.mrb[11].mxu1 }
 0x19a   : > { %v3672_v14 = vpop.f32.mrb[12].mxu1 }
 0x19b   : > { %v3674_v52 = vpop.f32.mrb[13].mxu1 }
 0x19e   : > { %v2585_v6 = vpop.f32.mrb[0].mxu0 }
 0x19f   : > { %v2647_v10 = vadd.f32 %v2585_v6, %v2477_v37  ;;  %v1650_v7 = vpop.f32.mrb[1].mxu0 }
 0x1a0   : > { %v2648_v12 = vadd.f32 %v1650_v7, %v1155_v22 }
 0x1a1   : > { %1842 = vst.msk [vmem:[%s3680_s26 + $0x8] sm:$0xff] %vm923_vm3, %v2647_v10  ;;  %v1881_v47 = vsel %vm923_vm3, %v2647_v10, 0.0  ;;  %v1950_v40 = vmul.f32 %v2647_v10, %v2647_v10 }
 0x1a2   : > { %1841 = vst.msk [vmem:[%s3680_s26] sm:$0xff] %vm923_vm3, %v2648_v12  ;;  %v1880_v62 = vsel %vm923_vm3, %v2648_v12, 0.0  ;;  %v1949_v56 = vmul.f32 %v2648_v12, %v2648_v12  ;;  %v3688_v2 = vpop.f32.mrb[14].mxu1  ;;  %v2588_v26 = vpop.f32.mrb[2].mxu0 }
 0x1a3   : > { %v1982_v51 = vsel %vm923_vm3, %v1950_v40, 0.0  ;;  %v1882_v54 = vadd.f32 %v1881_v47, %v1880_v62  ;;  %v2649_v58 = vadd.f32 %v2588_v26, %v2480_v44  ;;  %v3691_v17 = vpop.f32.mrb[15].mxu1  ;;  %v1660_v49 = vpop.f32.mrb[3].mxu0 }
 0x1a4   : > { %v1981_v13 = vsel %vm923_vm3, %v1949_v56, 0.0  ;;  %v2650_v57 = vadd.f32 %v1660_v49, %v1165_v46 }
 0x1a5   : > { %v1983_v38 = vadd.f32 %v1982_v51, %v1981_v13  ;;  %1844 = vst.msk [vmem:[%s3680_s26 + $0x18] sm:$0xff] %vm923_vm3, %v2649_v58  ;;  %v1952_v18 = vmul.f32 %v2649_v58, %v2649_v58  ;;  %v1885_v50 = vsel %vm923_vm3, %v2649_v58, 0.0 }
 0x1a6   : > { %1843 = vst.msk [vmem:[%s3680_s26 + $0x10] sm:$0xff] %vm923_vm3, %v2650_v57  ;;  %v1883_v21 = vsel %vm923_vm3, %v2650_v57, 0.0  ;;  %v1951_v31 = vmul.f32 %v2650_v57, %v2650_v57  ;;  %v2591_v15 = vpop.f32.mrb[4].mxu0 }
 0x1a7   : > { %v1884_v3 = vadd.f32 %v1883_v21, %v1882_v54  ;;  %v2651_v30 = vadd.f32 %v2591_v15, %v2483_v8  ;;  %v1670_v32 = vpop.f32.mrb[5].mxu0  ;;  %v1986_v19 = vsel %vm923_vm3, %v1952_v18, 0.0 }
 0x1a8   : > { %v1984_v25 = vsel %vm923_vm3, %v1951_v31, 0.0  ;;  %v2652_v61 = vadd.f32 %v1670_v32, %v1175_v24 }
 0x1a9   : > { %v1985_v23 = vadd.f32 %v1984_v25, %v1983_v38  ;;  %1846 = vst.msk [vmem:[%s3680_s26 + $0x28] sm:$0xff] %vm923_vm3, %v2651_v30  ;;  %v1886_v9 = vadd.f32 %v1885_v50, %v1884_v3  ;;  %v1954_v36 = vmul.f32 %v2651_v30, %v2651_v30  ;;  %v1889_v27 = vsel %vm923_vm3, %v2651_v30, 0.0 }
 0x1aa   : > { %1845 = vst.msk [vmem:[%s3680_s26 + $0x20] sm:$0xff] %vm923_vm3, %v2652_v61  ;;  %v1887_v11 = vsel %vm923_vm3, %v2652_v61, 0.0  ;;  %v1953_v45 = vmul.f32 %v2652_v61, %v2652_v61  ;;  %v2594_v1 = vpop.f32.mrb[6].mxu0 }
 0x1ab   : > { %v1888_v20 = vadd.f32 %v1887_v11, %v1886_v9  ;;  %v1987_v29 = vadd.f32 %v1986_v19, %v1985_v23  ;;  %v2653_v5 = vadd.f32 %v2594_v1, %v2486_v53  ;;  %v1680_v55 = vpop.f32.mrb[7].mxu0  ;;  %v1990_v28 = vsel %vm923_vm3, %v1954_v36, 0.0 }
 0x1ac   : > { %v1988_v39 = vsel %vm923_vm3, %v1953_v45, 0.0  ;;  %v2654_v4 = vadd.f32 %v1680_v55, %v1185_v33 }
 0x1ad   : > { %v1989_v48 = vadd.f32 %v1988_v39, %v1987_v29  ;;  %1848 = vst.msk [vmem:[%s3680_s26 + $0x38] sm:$0xff] %vm923_vm3, %v2653_v5  ;;  %v1890_v59 = vadd.f32 %v1889_v27, %v1888_v20  ;;  %v1956_v34 = vmul.f32 %v2653_v5, %v2653_v5  ;;  %v1893_v8 = vsel %vm923_vm3, %v2653_v5, 0.0 }
 0x1ae   : > { %1847 = vst.msk [vmem:[%s3680_s26 + $0x30] sm:$0xff] %vm923_vm3, %v2654_v4  ;;  %v1891_v16 = vsel %vm923_vm3, %v2654_v4, 0.0  ;;  %v1955_v43 = vmul.f32 %v2654_v4, %v2654_v4  ;;  %v2597_v41 = vpop.f32.mrb[8].mxu0 }
 0x1af   : > { %v1892_v37 = vadd.f32 %v1891_v16, %v1890_v59  ;;  %v1991_v22 = vadd.f32 %v1990_v28, %v1989_v48  ;;  %v2655_v44 = vadd.f32 %v2597_v41, %v3664_v0  ;;  %v1690_v46 = vpop.f32.mrb[9].mxu0  ;;  %v1994_v6 = vsel %vm923_vm3, %v1956_v34, 0.0 }
 0x1b0   : > { %v1992_v24 = vsel %vm923_vm3, %v1955_v43, 0.0  ;;  %v2656_v53 = vadd.f32 %v1690_v46, %v3666_v42 }
 0x1b1   : > { %v1993_v33 = vadd.f32 %v1992_v24, %v1991_v22  ;;  %1850 = vst.msk [vmem:[%s3680_s26 + $0x48] sm:$0xff] %vm923_vm3, %v2655_v44  ;;  %v1894_v60 = vadd.f32 %v1893_v8, %v1892_v37  ;;  %v1958_v10 = vmul.f32 %v2655_v44, %v2655_v44  ;;  %v1897_v56 = vsel %vm923_vm3, %v2655_v44, 0.0 }
 0x1b2   : > { %1849 = vst.msk [vmem:[%s3680_s26 + $0x40] sm:$0xff] %vm923_vm3, %v2656_v53  ;;  %v1895_v0 = vsel %vm923_vm3, %v2656_v53, 0.0  ;;  %v1957_v7 = vmul.f32 %v2656_v53, %v2656_v53  ;;  %v2600_v12 = vpop.f32.mrb[10].mxu0 }
 0x1b3   : > { %v1896_v47 = vadd.f32 %v1895_v0, %v1894_v60  ;;  %v1995_v40 = vadd.f32 %v1994_v6, %v1993_v33  ;;  %v2657_v62 = vadd.f32 %v2600_v12, %v3668_v35  ;;  %v1700_v42 = vpop.f32.mrb[11].mxu0  ;;  %v1998_v49 = vsel %vm923_vm3, %v1958_v10, 0.0 }
 0x1b4   : > { %v1996_v26 = vsel %vm923_vm3, %v1957_v7, 0.0  ;;  %v2658_v51 = vadd.f32 %v1700_v42, %v3670_v63 }
 0x1b5   : > { %v1997_v54 = vadd.f32 %v1996_v26, %v1995_v40  ;;  %1852 = vst.msk [vmem:[%s3680_s26 + $0x58] sm:$0xff] %vm923_vm3, %v2657_v62  ;;  %v1898_v58 = vadd.f32 %v1897_v56, %v1896_v47  ;;  %v1960_v13 = vmul.f32 %v2657_v62, %v2657_v62  ;;  %v1901_v15 = vsel %vm923_vm3, %v2657_v62, 0.0 }
 0x1b6   : > { %1851 = vst.msk [vmem:[%s3680_s26 + $0x50] sm:$0xff] %vm923_vm3, %v2658_v51  ;;  %v1899_v35 = vsel %vm923_vm3, %v2658_v51, 0.0  ;;  %v1959_v57 = vmul.f32 %v2658_v51, %v2658_v51  ;;  %v2603_v38 = vpop.f32.mrb[12].mxu0 }
 0x1b7   : > { %v1900_v18 = vadd.f32 %v1899_v35, %v1898_v58  ;;  %v1999_v21 = vadd.f32 %v1998_v49, %v1997_v54  ;;  %v2659_v31 = vadd.f32 %v2603_v38, %v3672_v14  ;;  %v1710_v63 = vpop.f32.mrb[13].mxu0  ;;  %v2002_v25 = vsel %vm923_vm3, %v1960_v13, 0.0 }
 0x1b8   : > { %v2000_v3 = vsel %vm923_vm3, %v1959_v57, 0.0  ;;  %v2660_v30 = vadd.f32 %v1710_v63, %v3674_v52 }
 0x1b9   : > { %v2001_v32 = vadd.f32 %v2000_v3, %v1999_v21  ;;  %1854 = vst.msk [vmem:[%s3680_s26 + $0x68] sm:$0xff] %vm923_vm3, %v2659_v31  ;;  %v1902_v50 = vadd.f32 %v1901_v15, %v1900_v18  ;;  %v1962_v61 = vmul.f32 %v2659_v31, %v2659_v31  ;;  %v1905_v45 = vsel %vm923_vm3, %v2659_v31, 0.0 }
 0x1ba   : > { %1853 = vst.msk [vmem:[%s3680_s26 + $0x60] sm:$0xff] %vm923_vm3, %v2660_v30  ;;  %v1903_v14 = vsel %vm923_vm3, %v2660_v30, 0.0  ;;  %v1961_v23 = vmul.f32 %v2660_v30, %v2660_v30  ;;  %v2606_v9 = vpop.f32.mrb[14].mxu0 }
 0x1bb   : > { %v1904_v19 = vadd.f32 %v1903_v14, %v1902_v50  ;;  %v2003_v36 = vadd.f32 %v2002_v25, %v2001_v32  ;;  %v2661_v11 = vadd.f32 %v2606_v9, %v3688_v2  ;;  %v1720_v52 = vpop.f32.mrb[15].mxu0  ;;  %v2006_v55 = vsel %vm923_vm3, %v1962_v61, 0.0 }
 0x1bc   : > { %v2004_v1 = vsel %vm923_vm3, %v1961_v23, 0.0  ;;  %v2662_v20 = vadd.f32 %v1720_v52, %v3691_v17 }
 0x1bd   : > { %v2005_v29 = vadd.f32 %v2004_v1, %v2003_v36  ;;  %1856 = vst.msk [vmem:[%s3680_s26 + $0x78] sm:$0xff] %vm923_vm3, %v2661_v11  ;;  %v1906_v5 = vadd.f32 %v1905_v45, %v1904_v19  ;;  %v1964_v27 = vmul.f32 %v2661_v11, %v2661_v11  ;;  %v1909_v34 = vsel %vm923_vm3, %v2661_v11, 0.0 }
 0x1be   : > { %1855 = vst.msk [vmem:[%s3680_s26 + $0x70] sm:$0xff] %vm923_vm3, %v2662_v20  ;;  %v1907_v39 = vsel %vm923_vm3, %v2662_v20, 0.0  ;;  %v1963_v4 = vmul.f32 %v2662_v20, %v2662_v20  ;;  %v2609_v2 = vpop.f32.mrb[16].mxu0 }
 0x1bf   : > { %v1908_v48 = vadd.f32 %v1907_v39, %v1906_v5  ;;  %v2007_v59 = vadd.f32 %v2006_v55, %v2005_v29  ;;  %v1730_v28 = vpop.f32.mrb[17].mxu0  ;;  %v2010_v41 = vsel %vm923_vm3, %v1964_v27, 0.0 }
 0x1c0   : > { %v2008_v17 = vsel %vm923_vm3, %v1963_v4, 0.0 }
 0x1c1   : > { %v2009_v16 = vadd.f32 %v2008_v17, %v2007_v59  ;;  %v1910_v43 = vadd.f32 %v1909_v34, %v1908_v48 }
 0x1c2   : > { %v2612_v37 = vpop.f32.mrb[18].mxu0 }
 0x1c3   : > { %v1740_v22 = vpop.f32.mrb[19].mxu0  ;;  %v2011_v44 = vadd.f32 %v2010_v41, %v2009_v16 }
 0x1c6   : > { %v2615_v46 = vpop.f32.mrb[20].mxu0 }
 0x1c7   : > { %v1750_v8 = vpop.f32.mrb[21].mxu0 }
 0x1ca   : > { %v2618_v24 = vpop.f32.mrb[22].mxu0 }
 0x1cb   : > { %v1760_v53 = vpop.f32.mrb[23].mxu0 }
 0x1d2   : > { %v3758_v33 = vpop.f32.mrb[24].mxu0 }
 0x1d3   : > { %v3760_v60 = vpop.f32.mrb[25].mxu0 }
 0x1da   : > { %v3762_v6 = vpop.f32.mrb[26].mxu0 }
 0x1db   : > { %v3764_v10 = vpop.f32.mrb[27].mxu0 }
 0x1e2   : > { %v3766_v0 = vpop.f32.mrb[28].mxu0 }
 0x1e3   : > { %v3768_v7 = vpop.f32.mrb[29].mxu0 }
 0x1e6   : > { %v2555_v12 = vpop.f32.mrb[16].mxu1 }
 0x1e7   : > { %v2663_v47 = vadd.f32 %v2609_v2, %v2555_v12  ;;  %v1466_v40 = vpop.f32.mrb[17].mxu1 }
 0x1e8   : > { %v2664_v62 = vadd.f32 %v1730_v28, %v1466_v40 }
 0x1e9   : > { %1858 = vst.msk [vmem:[%s3680_s26 + $0x88] sm:$0xff] %vm923_vm3, %v2663_v47  ;;  %v1966_v42 = vmul.f32 %v2663_v47, %v2663_v47  ;;  %v1913_v13 = vsel %vm923_vm3, %v2663_v47, 0.0 }
 0x1ea   : > { %1857 = vst.msk [vmem:[%s3680_s26 + $0x80] sm:$0xff] %vm923_vm3, %v2664_v62  ;;  %v1911_v56 = vsel %vm923_vm3, %v2664_v62, 0.0  ;;  %v1965_v26 = vmul.f32 %v2664_v62, %v2664_v62  ;;  %v2558_v51 = vpop.f32.mrb[18].mxu1 }
 0x1eb   : > { %v1912_v54 = vadd.f32 %v1911_v56, %v1910_v43  ;;  %v2665_v58 = vadd.f32 %v2612_v37, %v2558_v51  ;;  %v1476_v49 = vpop.f32.mrb[19].mxu1  ;;  %v2014_v63 = vsel %vm923_vm3, %v1966_v42, 0.0 }
 0x1ec   : > { %v2012_v35 = vsel %vm923_vm3, %v1965_v26, 0.0  ;;  %v2666_v57 = vadd.f32 %v1740_v22, %v1476_v49  ;;  %v3777_v38 = vpop.f32.mrb[30].mxu0 }
 0x1ed   : > { %v2013_v18 = vadd.f32 %v2012_v35, %v2011_v44  ;;  %1860 = vst.msk [vmem:[%s3680_s26 + $0x98] sm:$0xff] %vm923_vm3, %v2665_v58  ;;  %v1914_v21 = vadd.f32 %v1913_v13, %v1912_v54  ;;  %v3781_v31 = vpop.f32.mrb[31].mxu0  ;;  %v1968_v15 = vmul.f32 %v2665_v58, %v2665_v58  ;;  %v1917_v23 = vsel %vm923_vm3, %v2665_v58, 0.0 }
 0x1ee   : > { %1859 = vst.msk [vmem:[%s3680_s26 + $0x90] sm:$0xff] %vm923_vm3, %v2666_v57  ;;  %v1915_v3 = vsel %vm923_vm3, %v2666_v57, 0.0  ;;  %v1967_v30 = vmul.f32 %v2666_v57, %v2666_v57  ;;  %v2561_v32 = vpop.f32.mrb[20].mxu1 }
 0x1ef   : > { %v1916_v50 = vadd.f32 %v1915_v3, %v1914_v21  ;;  %v2015_v25 = vadd.f32 %v2014_v63, %v2013_v18  ;;  %v2667_v61 = vadd.f32 %v2615_v46, %v2561_v32  ;;  %v1486_v14 = vpop.f32.mrb[21].mxu1  ;;  %v2018_v52 = vsel %vm923_vm3, %v1968_v15, 0.0 }
 0x1f0   : > { %v2016_v9 = vsel %vm923_vm3, %v1967_v30, 0.0  ;;  %v2668_v19 = vadd.f32 %v1750_v8, %v1486_v14 }
 0x1f1   : > { %v2017_v36 = vadd.f32 %v2016_v9, %v2015_v25  ;;  %1862 = vst.msk [vmem:[%s3680_s26 + $0xa8] sm:$0xff] %vm923_vm3, %v2667_v61  ;;  %v1918_v11 = vadd.f32 %v1917_v23, %v1916_v50  ;;  %v1970_v45 = vmul.f32 %v2667_v61, %v2667_v61  ;;  %v1921_v4 = vsel %vm923_vm3, %v2667_v61, 0.0 }
 0x1f2   : > { %1861 = vst.msk [vmem:[%s3680_s26 + $0xa0] sm:$0xff] %vm923_vm3, %v2668_v19  ;;  %v1919_v1 = vsel %vm923_vm3, %v2668_v19, 0.0  ;;  %v1969_v20 = vmul.f32 %v2668_v19, %v2668_v19  ;;  %v2564_v29 = vpop.f32.mrb[22].mxu1 }
 0x1f3   : > { %v1920_v5 = vadd.f32 %v1919_v1, %v1918_v11  ;;  %v2019_v55 = vadd.f32 %v2018_v52, %v2017_v36  ;;  %v2669_v27 = vadd.f32 %v2618_v24, %v2564_v29  ;;  %v1496_v39 = vpop.f32.mrb[23].mxu1  ;;  %v2022_v34 = vsel %vm923_vm3, %v1970_v45, 0.0 }
 0x1f4   : > { %v2020_v2 = vsel %vm923_vm3, %v1969_v20, 0.0  ;;  %v2670_v48 = vadd.f32 %v1760_v53, %v1496_v39 }
 0x1f5   : > { %v2021_v59 = vadd.f32 %v2020_v2, %v2019_v55  ;;  %1864 = vst.msk [vmem:[%s3680_s26 + $0xb8] sm:$0xff] %vm923_vm3, %v2669_v27  ;;  %v1922_v28 = vadd.f32 %v1921_v4, %v1920_v5  ;;  %v1972_v17 = vmul.f32 %v2669_v27, %v2669_v27  ;;  %v1925_v8 = vsel %vm923_vm3, %v2669_v27, 0.0 }
 0x1f6   : > { %1863 = vst.msk [vmem:[%s3680_s26 + $0xb0] sm:$0xff] %vm923_vm3, %v2670_v48  ;;  %v1923_v16 = vsel %vm923_vm3, %v2670_v48, 0.0  ;;  %v1971_v43 = vmul.f32 %v2670_v48, %v2670_v48  ;;  %v2567_v41 = vpop.f32.mrb[24].mxu1 }
 0x1f7   : > { %v1924_v37 = vadd.f32 %v1923_v16, %v1922_v28  ;;  %v2023_v22 = vadd.f32 %v2022_v34, %v2021_v59  ;;  %v2671_v44 = vadd.f32 %v3758_v33, %v2567_v41  ;;  %v1506_v46 = vpop.f32.mrb[25].mxu1  ;;  %v2026_v40 = vsel %vm923_vm3, %v1972_v17, 0.0 }
 0x1f8   : > { %v2024_v24 = vsel %vm923_vm3, %v1971_v43, 0.0  ;;  %v2672_v53 = vadd.f32 %v3760_v60, %v1506_v46 }
 0x1f9   : > { %v2025_v12 = vadd.f32 %v2024_v24, %v2023_v22  ;;  %1866 = vst.msk [vmem:[%s3680_s26 + $0xc8] sm:$0xff] %vm923_vm3, %v2671_v44  ;;  %v1926_v47 = vadd.f32 %v1925_v8, %v1924_v37  ;;  %v1974_v62 = vmul.f32 %v2671_v44, %v2671_v44  ;;  %v1929_v58 = vsel %vm923_vm3, %v2671_v44, 0.0 }
 0x1fa   : > { %1865 = vst.msk [vmem:[%s3680_s26 + $0xc0] sm:$0xff] %vm923_vm3, %v2672_v53  ;;  %v1927_v33 = vsel %vm923_vm3, %v2672_v53, 0.0  ;;  %v1973_v42 = vmul.f32 %v2672_v53, %v2672_v53  ;;  %v2570_v56 = vpop.f32.mrb[26].mxu1 }
 0x1fb   : > { %v1928_v26 = vadd.f32 %v1927_v33, %v1926_v47  ;;  %v2027_v51 = vadd.f32 %v2026_v40, %v2025_v12  ;;  %v2673_v54 = vadd.f32 %v3762_v6, %v2570_v56  ;;  %v1516_v60 = vpop.f32.mrb[27].mxu1  ;;  %v2030_v18 = vsel %vm923_vm3, %v1974_v62, 0.0  ;;  %v2050_v47 = vld [vmem:[%s3652_s15] sm:$0x1] }
 0x1fc   : > { %v2028_v49 = vsel %vm923_vm3, %v1973_v42, 0.0  ;;  %v2674_v13 = vadd.f32 %v3764_v10, %v1516_v60  ;;  %v2054_v33 = vld [vmem:[%s3658_s18] sm:$0x1] }
 0x1fd   : > { %v2029_v35 = vadd.f32 %v2028_v49, %v2027_v51  ;;  %1868 = vst.msk [vmem:[%s3680_s26 + $0xd8] sm:$0xff] %vm923_vm3, %v2673_v54  ;;  %v1930_v57 = vadd.f32 %v1929_v58, %v1928_v26  ;;  %v1976_v21 = vmul.f32 %v2673_v54, %v2673_v54  ;;  %v1933_v50 = vsel %vm923_vm3, %v2673_v54, 0.0 }
 0x1fe   : > { %1867 = vst.msk [vmem:[%s3680_s26 + $0xd0] sm:$0xff] %vm923_vm3, %v2674_v13  ;;  %v1931_v6 = vsel %vm923_vm3, %v2674_v13, 0.0  ;;  %v1975_v63 = vmul.f32 %v2674_v13, %v2674_v13  ;;  %v2573_v15 = vpop.f32.mrb[28].mxu1 }
 0x1ff   : > { %v1932_v3 = vadd.f32 %v1931_v6, %v1930_v57  ;;  %v2031_v30 = vadd.f32 %v2030_v18, %v2029_v35  ;;  %v2675_v32 = vadd.f32 %v3766_v0, %v2573_v15  ;;  %v1526_v10 = vpop.f32.mrb[29].mxu1  ;;  %v2034_v9 = vsel %vm923_vm3, %v1976_v21, 0.0 }
 0x200   : > { %v2032_v25 = vsel %vm923_vm3, %v1975_v63, 0.0  ;;  %v2676_v61 = vadd.f32 %v3768_v7, %v1526_v10 }
 0x201   : > { %v2033_v14 = vadd.f32 %v2032_v25, %v2031_v30  ;;  %1870 = vst.msk [vmem:[%s3680_s26 + $0xe8] sm:$0xff] %vm923_vm3, %v2675_v32  ;;  %v1934_v23 = vadd.f32 %v1933_v50, %v1932_v3  ;;  %v1978_v19 = vmul.f32 %v2675_v32, %v2675_v32  ;;  %v1937_v20 = vsel %vm923_vm3, %v2675_v32, 0.0 }
 0x202   : > { %1869 = vst.msk [vmem:[%s3680_s26 + $0xe0] sm:$0xff] %vm923_vm3, %v2676_v61  ;;  %v1935_v0 = vsel %vm923_vm3, %v2676_v61, 0.0  ;;  %v1977_v36 = vmul.f32 %v2676_v61, %v2676_v61  ;;  %v2576_v11 = vpop.f32.mrb[30].mxu1 }
 0x203   : > { %v1936_v52 = vadd.f32 %v1935_v0, %v1934_v23  ;;  %v2035_v45 = vadd.f32 %v2034_v9, %v2033_v14  ;;  %v2677_v1 = vadd.f32 %v3777_v38, %v2576_v11  ;;  %v1536_v7 = vpop.f32.mrb[31].mxu1  ;;  %v2038_v39 = vsel %vm923_vm3, %v1978_v19, 0.0 }
 0x204   : > { %v2036_v29 = vsel %vm923_vm3, %v1977_v36, 0.0  ;;  %v2678_v5 = vadd.f32 %v3781_v31, %v1536_v7 }
 0x205   : > { %v2037_v55 = vadd.f32 %v2036_v29, %v2035_v45  ;;  %1872 = vst.msk [vmem:[%s3680_s26 + $0xf8] sm:$0xff] %vm923_vm3, %v2677_v1  ;;  %v1938_v27 = vadd.f32 %v1937_v20, %v1936_v52  ;;  %v1980_v4 = vmul.f32 %v2677_v1, %v2677_v1  ;;  %v1941_v28 = vsel %vm923_vm3, %v2677_v1, 0.0 }
 0x206   : > { %1871 = vst.msk [vmem:[%s3680_s26 + $0xf0] sm:$0xff] %vm923_vm3, %v2678_v5  ;;  %v1939_v2 = vsel %vm923_vm3, %v2678_v5, 0.0  ;;  %v1979_v48 = vmul.f32 %v2678_v5, %v2678_v5 }
 0x207   : > { %v1940_v38 = vadd.f32 %v1939_v2, %v1938_v27  ;;  %v2039_v59 = vadd.f32 %v2038_v39, %v2037_v55  ;;  %v2042_v16 = vsel %vm923_vm3, %v1980_v4, 0.0 }
 0x208   : > { %v2040_v34 = vsel %vm923_vm3, %v1979_v48, 0.0 }
 0x209   : > { %v1942_v31 = vadd.f32 %v1941_v28, %v1940_v38  ;;  %v2041_v17 = vadd.f32 %v2040_v34, %v2039_v59 }
 0x20b   : > { %v1943_v43 = vrot.slane %v1942_v31, 4  ;;  %v2043_v41 = vadd.f32 %v2042_v16, %v2041_v17 }
 0x20d   : > { %v1944_v37 = vadd.f32 %v1943_v43, %v1942_v31  ;;  %v2044_v22 = vrot.slane %v2043_v41, 4 }
 0x20f   : > { %v1945_v44 = vrot.slane %v1944_v37, 2  ;;  %v2045_v46 = vadd.f32 %v2044_v22, %v2043_v41 }
 0x211   : > { %v1946_v8 = vadd.f32 %v1945_v44, %v1944_v37  ;;  %v2046_v24 = vrot.slane %v2045_v46, 2 }
 0x213   : > { %v1947_v53 = vrot.slane %v1946_v8, 1  ;;  %v2047_v12 = vadd.f32 %v2046_v24, %v2045_v46 }
 0x215   : > { %v1948_v40 = vadd.f32 %v1947_v53, %v1946_v8  ;;  %v2048_v62 = vrot.slane %v2047_v12, 1 }
 0x217   : > { %v2049_v42 = vadd.f32 %v2048_v62, %v2047_v12  ;;  %v2051_v56 = vadd.f32 %v2050_v47, %v1948_v40 }
 0x219   : > { %2053 = vst.msk [vmem:[%s3652_s15] sm:$0x1] %vm1877_vm5, %v2051_v56  ;;  %v2055_v26 = vadd.f32 %v2054_v33, %v2049_v42 }
 0x21b   : > { %2056 = vst.msk [vmem:[%s3658_s18] sm:$0x1] %vm1877_vm5, %v2055_v26 }
 0x21c PF: > { %s17_s23 = sadd.s32 1, %s2763_s23   ;;  %s3902_s21 = smov %s2759_s22 }
 0x21d   : > { %p14_p5 = scmp.ge.s32.totalorder %s17_s23, 4   ;;  %s3903_s22 = smov %s3905_s24 }
 0x21f   :  { %16 = sbr.rel (!%p14_p5) target bundleno = 2 (0x2), region = 102 }

// kernel: double_conv.6
= control target key start
LH: loop header
LB: loop body
LE: loop exit
PB: predicated region body
PF: predicated region fallthrough
CT: control target
= control target key end

     0   :  { %s2871_s21 = smov 0   ;;  %s2873_s22 = smov 0   ;;  %s3962_s0 = inlined_call_operand.vmem [shape: f32[2,18,18,16], index: 0, kind: input, shape index: {}, may-alias: {0,1,2}]   ;;  %s3963_s1 = inlined_call_operand.vmem [shape: f32[2,18,18,16], index: 1, kind: input, shape index: {}, may-alias: {0,1,2}]   ;;  %s3964_s2 = inlined_call_operand.vmem [shape: f32[2,18,18,16], index: 2, kind: input, shape index: {}, may-alias: {0,1,2}]   ;;  %s3965_s3 = inlined_call_operand.vmem [shape: f32[3,48,16], index: 3, kind: input, shape index: {}]   ;;  %s3966_s4 = inlined_call_operand.vmem [shape: f32[2,16,16,16], index: 4, kind: output, shape index: {0}]   ;;  %s3967_s5 = inlined_call_operand.vmem [shape: f32[2,1,16], index: 5, kind: output, shape index: {1}]   ;;  %s3968_s6 = inlined_call_operand.vmem [shape: f32[2,1,16], index: 6, kind: output, shape index: {2}]  }
   0x1   :  { %s2875_s23 = smov 0  }
   0x2 LB: > { %s29_s24 = sadd.s32 1, %s2827_s22  ;;  %p2258_p0 = scmp.ge.s32.totalorder %s2831_s23, 1  ;;  %s2831_s23 = sphi %s2875_s23, %s17_s23   ;;  %s2827_s22 = sphi %s2873_s22, %s4009_s22   ;;  %s2823_s21 = sphi %s2871_s21, %s4008_s21  }
   0x3   : > { %p31_p1 = scmp.ge.s32.totalorder %s29_s24, 2  ;;  %p297_p2 = scmp.lt.s32.totalorder %s2831_s23, 3 }
   0x5   : > { %s4011_s24 = smov (%p31_p1, %s29_s24), 0  ;;  %p298_p3 = pnand %p2258_p0, %p297_p2 }
   0x7   : > { %301 = sbr.rel (%p298_p3) target bundleno = 543 (0x21f), region = 36 }
   0xe   : > { %p376_p4 = scmp.lt.s32.totalorder %s2823_s21, 1  ;;  %v2264_v0 = vld [vmem:[%s3965_s3 + $0x30] sm:$0xff]  ;;  %v2265_v1 = vld [vmem:[%s3965_s3 + $0x38] sm:$0xff]  ;;  %v956_v2 = vld [vmem:[%s3965_s3] sm:$0xff]  ;;  %vm536_vm0 = vcmask 1046528   ;;  %s2833_s9 = smov 16  }
   0xf   : > { %v957_v3 = vld [vmem:[%s3965_s3 + $0x8] sm:$0xff]  ;;  %v2673_v4 = vpack.c.bf16 %v2265_v1, %v2264_v0  ;;  %v2266_v6 = vld [vmem:[%s3965_s3 + $0x40] sm:$0xff]  ;;  %v958_v8 = vld [vmem:[%s3965_s3 + $0x10] sm:$0xff]  ;;  %vm713_vm1 = vcmask 1045504   ;;  %s2834_s10 = smov 32   ;;  %vm890_vm2 = vcmask 130048  }
  0x10   : > { %s4013_s21 = smov (!%p376_p4, %s2823_s21), 1  ;;  %v2903_v5 = vpack.c.bf16 %v957_v3, %v956_v2  ;;  %v2267_v7 = vld [vmem:[%s3965_s3 + $0x48] sm:$0xff]  ;;  %v959_v10 = vld [vmem:[%s3965_s3 + $0x18] sm:$0xff]  ;;  %v2268_v12 = vld [vmem:[%s3965_s3 + $0x50] sm:$0xff]  ;;  %vm923_vm3 = vcmask 261120   ;;  %vm998_vm4 = vcmask 392192  }
  0x11   : > { %v2677_v9 = vpack.c.bf16 %v2267_v7, %v2266_v6  ;;  %s2918_s17 = smul.u32 432, %s4013_s21  ;;  %2674 = vmatprep.subr.bf16.mxu1 %v2673_v4  ;;  %v2921_v11 = vpack.c.bf16 %v959_v10, %v958_v8  ;;  %v2269_v13 = vld [vmem:[%s3965_s3 + $0x58] sm:$0xff]  ;;  %v960_v14 = vld [vmem:[%s3965_s3 + $0x20] sm:$0xff]  ;;  %v961_v15 = vld [vmem:[%s3965_s3 + $0x28] sm:$0xff]  ;;  %s3753_s13 = scalar_lea.vmem %s3967_s5, %s4013_s21  ;;  %vm1886_vm5 = vcmask 122880  }
  0x12   : > { %2686 = vmatprep.subr.bf16.mxu0 %v2903_v5  ;;  %2676 = vmatpush3.bf16.msra.mxu1 %v2673_v4  ;;  %v2681_v16 = vpack.c.bf16 %v2269_v13, %v2268_v12  ;;  %v2943_v17 = vpack.c.bf16 %v961_v15, %v960_v14  ;;  %s3759_s16 = scalar_lea.vmem %s3968_s6, %s4013_s21 }
  0x13   : > { %2688 = vmatpush3.bf16.msra.mxu0 %v2903_v5  ;;  %s2940_s8 = scalar_lea.vmem %s3962_s0, %s2918_s17  ;;  %2678 = vmatprep.subr.bf16.mxu1 %v2677_v9  ;;  %s2375_s11 = sadd.s32 384, %s2918_s17 }
  0x14   : > { %2690 = vmatprep.subr.bf16.mxu0 %v2921_v11  ;;  %v2946_v18 = vld [vmem:[%s2940_s8 + $0x8] sm:$0xff]  ;;  %v436_v19 = vld [vmem:[%s2940_s8 + $0x10] sm:$0x3]  ;;  %v2950_v20 = vld [vmem:[%s2940_s8] sm:$0xff]  ;;  %s3145_s14 = scalar_lea.vmem %s3963_s1, %s2375_s11  ;;  %s2377_s15 = sadd.s32 408, %s2918_s17 }
  0x15   : > { %v538_v21 = vrot.slane %v2946_v18, 1  ;;  %v540_v22 = vrot.slane %v436_v19, 1  ;;  %v537_v23 = vrot.slane %v2950_v20, 1  ;;  %v2955_v24 = vld [vmem:[%s2940_s8 + $0x20] sm:$0xff]  ;;  %v439_v25 = vld [vmem:[%s2940_s8 + $0x28] sm:$0x3]  ;;  %s3175_s18 = scalar_lea.vmem %s3964_s2, %s2377_s15 }
  0x16   : > { %v543_v26 = vrot.slane %v2955_v24, 1  ;;  %v545_v27 = vrot.slane %v439_v25, 1  ;;  %v2960_v28 = vld [vmem:[%s2940_s8 + $0x18] sm:$0xff]  ;;  %2680 = vmatpush3.bf16.msra.mxu1 %v2677_v9  ;;  %v720_v32 = vrot.slane %v2955_v24, 2  ;;  %v714_v33 = vrot.slane %v2950_v20, 2  ;;  %v2986_v44 = vld [vmem:[%s2940_s8 + $0x30] sm:$0xff] }
  0x17   : > { %2692 = vmatpush3.bf16.msra.mxu0 %v2921_v11  ;;  %v541_v29 = vsel %vm536_vm0, %v538_v21, %v540_v22  ;;  %v539_v30 = vsel %vm536_vm0, %v537_v23, %v538_v21  ;;  %v542_v31 = vrot.slane %v2960_v28, 1  ;;  %2682 = vmatprep.subr.bf16.mxu1 %v2681_v16  ;;  %v719_v36 = vrot.slane %v2960_v28, 2  ;;  %v2982_v42 = vld [vmem:[%s2940_s8 + $0x38] sm:$0xff]  ;;  %v442_v43 = vld [vmem:[%s2940_s8 + $0x40] sm:$0x3]  ;;  %v2998_v51 = vld [vmem:[%s2940_s8 + $0x50] sm:$0xff] }
  0x18   : > { %2694 = vmatprep.subr.bf16.mxu0 %v2943_v17  ;;  %619 = vrot.lane.b32.xlu1 %v541_v29, %s2833_s9  ;;  %v546_v34 = vsel %vm536_vm0, %v543_v26, %v545_v27  ;;  %v715_v37 = vrot.slane %v2946_v18, 2  ;;  %v722_v40 = vrot.slane %v439_v25, 2  ;;  %v717_v41 = vrot.slane %v436_v19, 2  ;;  %v445_v56 = vld [vmem:[%s2940_s8 + $0x58] sm:$0x3]  ;;  %v3005_v57 = vld [vmem:[%s2940_s8 + $0xc8] sm:$0xff] }
  0x19   : > { %617 = vrot.lane.b32.xlu0 %v539_v30, %s2833_s9  ;;  %v544_v35 = vsel %vm536_vm0, %v542_v31, %v543_v26  ;;  %v721_v38 = vsel %vm713_vm1, %v719_v36, %v720_v32  ;;  %v548_v45 = vrot.slane %v2982_v42, 1  ;;  %v550_v46 = vrot.slane %v442_v43, 1  ;;  %v3008_v58 = vld [vmem:[%s2940_s8 + $0x48] sm:$0xff]  ;;  %v3011_v59 = vld [vmem:[%s2940_s8 + $0xd0] sm:$0x3]  ;;  %v3014_v60 = vld [vmem:[%s2940_s8 + $0xe0] sm:$0xff] }
  0x1a   : > { %2684 = vmatpush3.bf16.msra.mxu1 %v2681_v16  ;;  %v716_v39 = vsel %vm713_vm1, %v714_v33, %v715_v37  ;;  %v723_v47 = vsel %vm713_vm1, %v720_v32, %v722_v40  ;;  %v718_v48 = vsel %vm713_vm1, %v715_v37, %v717_v41  ;;  %v547_v49 = vrot.slane %v2986_v44, 1  ;;  %v463_v0 = vld [vmem:[%s2940_s8 + $0xe8] sm:$0x3]  ;;  %v3027_v7 = vld [vmem:[%s2940_s8 + $0xf8] sm:$0xff]  ;;  %v466_v14 = vld [vmem:[%s2940_s8 + $0x100] sm:$0x3] }
  0x1b   : > { %2696 = vmatpush3.bf16.msra.mxu0 %v2943_v17  ;;  %2709 = vmatprep.subr.bf16.mxu1 %v2903_v5  ;;  %v551_v50 = vsel %vm536_vm0, %v548_v45, %v550_v46  ;;  %v725_v53 = vrot.slane %v2982_v42, 2  ;;  %v727_v54 = vrot.slane %v442_v43, 2  ;;  %v724_v55 = vrot.slane %v2986_v44, 2  ;;  %v3031_v10 = vld [vmem:[%s2940_s8 + $0x68] sm:$0xff]  ;;  %v3043_v16 = vld [vmem:[%s2940_s8 + $0x70] sm:$0x3] }
  0x1c   : > { %623 = vrot.lane.b32.xlu1 %v546_v34, %s2833_s9  ;;  %v549_v52 = vsel %vm536_vm0, %v547_v49, %v548_v45  ;;  %v553_v61 = vrot.slane %v2998_v51, 1  ;;  %v555_v62 = vrot.slane %v445_v56, 1  ;;  %v3984_v63 = vrot.slane %v3005_v57, 1  ;;  %v3047_v22 = vld [vmem:[%s2940_s8 + $0x110] sm:$0xff]  ;;  %v3052_v26 = vld [vmem:[%s2940_s8 + $0x60] sm:$0xff]  ;;  %s2378_s17 = sshll.u32 %s4013_s21, 8 }
  0x1d   : > { %621 = vrot.lane.b32.xlu0 %v544_v35, %s2833_s9  ;;  %v728_v1 = vsel %vm713_vm1, %v725_v53, %v727_v54  ;;  %v726_v2 = vsel %vm713_vm1, %v724_v55, %v725_v53  ;;  %v552_v3 = vrot.slane %v3008_v58, 1  ;;  %v580_v4 = vrot.slane %v3011_v59, 1  ;;  %v469_v30 = vld [vmem:[%s2940_s8 + $0x118] sm:$0x3]  ;;  %v472_v45 = vld [vmem:[%s2940_s8 + $0x130] sm:$0x3]  ;;  %s3781_s20 = scalar_lea.vmem %s3966_s4, %s2378_s17 }
  0x1e   : > { %v3983_v6 = vrot.slane %v3014_v60, 1  ;;  %v730_v8 = vrot.slane %v2998_v51, 2  ;;  %v732_v9 = vrot.slane %v445_v56, 2  ;;  %v585_v13 = vrot.slane %v463_v0, 1  ;;  %v475_v54 = vld [vmem:[%s2940_s8 + $0x148] sm:$0x3] }
  0x1f   : > { %v3036_v12 = vsel %vm536_vm0, %v3984_v63, %v580_v4  ;;  %v556_v15 = vsel %vm536_vm0, %v553_v61, %v555_v62  ;;  %v3980_v19 = vrot.slane %v3014_v60, 2  ;;  %v762_v21 = vrot.slane %v463_v0, 2  ;;  %v3102_v56 = vld [vmem:[%s2940_s8 + $0x88] sm:$0x3] }
  0x20   : > { %798 = vrot.lane.b32.xlu1 %v721_v38, %s2834_s10  ;;  %v554_v23 = vsel %vm536_vm0, %v552_v3, %v553_v61  ;;  %v729_v25 = vrot.slane %v3008_v58, 2  ;;  %v3057_v27 = vsel %vm536_vm0, %v3983_v6, %v585_v13  ;;  %v3979_v29 = vrot.slane %v3027_v7, 1  ;;  %v3071_v38 = vld [vmem:[%s2940_s8 + $0x128] sm:$0xff]  ;;  %v3116_v3 = vld [vmem:[%s2940_s8 + $0x80] sm:$0xff] }
  0x21   : > { %794 = vrot.lane.b32.xlu0 %v716_v39, %s2834_s10  ;;  %v3064_v31 = vsel %vm713_vm1, %v3980_v19, %v762_v21  ;;  %v590_v32 = vrot.slane %v466_v14, 1  ;;  %v3978_v33 = vrot.slane %v3027_v7, 2  ;;  %v733_v34 = vsel %vm713_vm1, %v730_v8, %v732_v9  ;;  %v3120_v9 = vld [vmem:[%s2940_s8 + $0x158] sm:$0xff] }
  0x22   : > { %v558_v35 = vrot.slane %v3031_v10, 1  ;;  %v767_v36 = vrot.slane %v466_v14, 2  ;;  %v3976_v37 = vrot.slane %v3047_v22, 1  ;;  %v560_v39 = vrot.slane %v3043_v16, 1 }
  0x23   : > { %v557_v40 = vrot.slane %v3052_v26, 1  ;;  %v3080_v41 = vsel %vm536_vm0, %v3979_v29, %v590_v32  ;;  %v595_v43 = vrot.slane %v469_v30, 1  ;;  %v731_v46 = vsel %vm713_vm1, %v729_v25, %v730_v8 }
  0x24   : > { %800 = vrot.lane.b32.xlu1 %v723_v47, %s2834_s10  ;;  %v3087_v47 = vsel %vm713_vm1, %v3978_v33, %v767_v36  ;;  %v772_v49 = vrot.slane %v469_v30, 2  ;;  %v3972_v53 = vrot.slane %v3071_v38, 1  ;;  %v735_v55 = vrot.slane %v3031_v10, 2 }
  0x25   : > { %796 = vrot.lane.b32.xlu0 %v718_v48, %s2834_s10  ;;  %v3974_v48 = vrot.slane %v3047_v22, 2  ;;  %v600_v62 = vrot.slane %v472_v45, 1  ;;  %v3971_v0 = vrot.slane %v3071_v38, 2  ;;  %v777_v4 = vrot.slane %v472_v45, 2 }
  0x26   : > { %v561_v13 = vsel %vm536_vm0, %v558_v35, %v560_v39  ;;  %v559_v14 = vsel %vm536_vm0, %v557_v40, %v558_v35  ;;  %v605_v21 = vrot.slane %v475_v54, 1  ;;  %v782_v32 = vrot.slane %v475_v54, 2 }
  0x27   : > { %v3107_v61 = vsel %vm713_vm1, %v3974_v48, %v772_v49  ;;  %v3136_v25 = vsel %vm713_vm1, %v3971_v0, %v777_v4  ;;  %v563_v35 = vrot.slane %v3116_v3, 1  ;;  %v565_v36 = vrot.slane %v3102_v56, 1 }
  0x28   : > { %627 = vrot.lane.b32.xlu1 %v551_v50, %s2833_s9  ;;  %v3091_v50 = vld [vmem:[%s2940_s8 + $0x140] sm:$0xff]  ;;  %v3973_v40 = vrot.slane %v3120_v9, 1  ;;  %v3975_v54 = vrot.slane %v3120_v9, 2 }
  0x29   : > { %625 = vrot.lane.b32.xlu0 %v549_v52, %s2833_s9  ;;  %v3096_v52 = vsel %vm536_vm0, %v3976_v37, %v595_v43  ;;  %v3969_v8 = vrot.slane %v3091_v50, 1  ;;  %v3970_v30 = vrot.slane %v3091_v50, 2  ;;  %v481_v43 = vld [vmem:[%s2940_s8 + $0x178] sm:$0x3]  ;;  %v454_v37 = vld [vmem:[%s2940_s8 + $0xa0] sm:$0x3] }
  0x2b   : > { %v3153_v39 = vsel %vm536_vm0, %v3969_v8, %v605_v21  ;;  %v3170_v8 = vld [vmem:[%s3145_s14 + $0x8] sm:$0xff] }
  0x2c   : > { %804 = vrot.lane.b32.xlu1 %v728_v1, %s2834_s10  ;;  %v737_v1 = vrot.slane %v3043_v16, 2  ;;  %v3130_v16 = vsel %vm536_vm0, %v3972_v53, %v600_v62  ;;  %v792_v53 = vrot.slane %v481_v43, 2  ;;  %v3982_v48 = vrot.slane %v3170_v8, 1 }
  0x2d   : > { %802 = vrot.lane.b32.xlu0 %v726_v2, %s2834_s10  ;;  %v734_v2 = vrot.slane %v3052_v26, 2 }
  0x2e   : > { %v738_v62 = vsel %vm713_vm1, %v735_v55, %v737_v1 }
  0x2f   : > { %v736_v4 = vsel %vm713_vm1, %v734_v2, %v735_v55  ;;  %v615_v55 = vrot.slane %v481_v43, 1  ;;  %v484_v2 = vld [vmem:[%s3145_s14 + $0x10] sm:$0x3] }
  0x30   : > { %631 = vrot.lane.b32.xlu1 %v556_v15, %s2833_s9  ;;  %v3125_v15 = vld [vmem:[%s2940_s8 + $0x78] sm:$0xff] }
  0x31   : > { %629 = vrot.lane.b32.xlu0 %v554_v23, %s2833_s9  ;;  %3988 = vst [vmem:[#allocation2_spill] sm:$0xff] %v3125_v15  ;;  %v478_v23 = vld [vmem:[%s2940_s8 + $0x160] sm:$0x3]  ;;  %v562_v45 = vrot.slane %v3125_v15, 1  ;;  %v739_v43 = vrot.slane %v3125_v15, 2 }
  0x32   : > { %v610_v49 = vrot.slane %v478_v23, 1  ;;  %v787_v21 = vrot.slane %v478_v23, 2  ;;  %v742_v23 = vrot.slane %v3102_v56, 2 }
  0x34   : > { %808 = vrot.lane.b32.xlu1 %v733_v34, %s2834_s10  ;;  %v3140_v34 = vld [vmem:[%s2940_s8 + $0x170] sm:$0xff]  ;;  %v3181_v1 = vsel %vm536_vm0, %v3973_v40, %v610_v49  ;;  %v566_v49 = vsel %vm536_vm0, %v563_v35, %v565_v36  ;;  %v564_v40 = vsel %vm536_vm0, %v562_v45, %v563_v35  ;;  %v968_v35 = vrot.slane %v484_v2, 1 }
  0x35   : > { %806 = vrot.lane.b32.xlu0 %v731_v46, %s2834_s10  ;;  %v3163_v46 = vsel %vm713_vm1, %v3970_v30, %v782_v32  ;;  %v3186_v32 = vld [vmem:[%s2940_s8 + $0x98] sm:$0xff]  ;;  %v3191_v30 = vsel %vm713_vm1, %v3975_v54, %v787_v21  ;;  %v3981_v0 = vrot.slane %v3140_v34, 2  ;;  %v3205_v21 = vld [vmem:[%s3175_s18 + $0x8] sm:$0xff]  ;;  %v487_v54 = vld [vmem:[%s3175_s18 + $0x10] sm:$0x3]  ;;  %v977_v45 = vrot.slane %v3170_v8, 2 }
  0x36   : > { %v3224_v33 = vsel %vm536_vm0, %v3982_v48, %v968_v35  ;;  %v3987_v29 = vrot.slane %v3205_v21, 1  ;;  %v1557_v19 = vrot.slane %v487_v54, 1  ;;  %v3986_v48 = vrot.slane %v3205_v21, 2 }
  0x37   : > { %v3216_v36 = vsel %vm713_vm1, %v3981_v0, %v792_v53  ;;  %v2334_v53 = vld [vmem:[%s3965_s3 + $0x60] sm:$0xff]  ;;  %v2335_v0 = vld [vmem:[%s3965_s3 + $0x68] sm:$0xff] }
  0x38   : > { %635 = vrot.lane.b32.xlu1 %v561_v13, %s2833_s9  ;;  %v3977_v13 = vrot.slane %v3140_v34, 1  ;;  %v3248_v63 = vpack.c.bf16 %v2335_v0, %v2334_v53  ;;  %v457_v53 = vld [vmem:[%s2940_s8 + $0xb8] sm:$0x3] }
  0x39   : > { %633 = vrot.lane.b32.xlu0 %v559_v14, %s2833_s9  ;;  %v740_v14 = vrot.slane %v3116_v3, 2 }
  0x3a   : > { %v3201_v56 = vsel %vm536_vm0, %v3977_v13, %v615_v55  ;;  %v979_v55 = vrot.slane %v484_v2, 2  ;;  %v570_v2 = vrot.slane %v454_v37, 1  ;;  %2698 = vmatprep.subr.bf16.mxu0 %v3248_v63 }
  0x3b   : > { %v743_v13 = vsel %vm713_vm1, %v740_v14, %v742_v23  ;;  %v741_v6 = vsel %vm713_vm1, %v739_v43, %v740_v14  ;;  %v745_v14 = vrot.slane %v3186_v32, 2 }
  0x3c   : > { %812 = vrot.lane.b32.xlu1 %v738_v62, %s2834_s10  ;;  %v3211_v62 = vld [vmem:[%s2940_s8 + $0x90] sm:$0xff]  ;;  %v3239_v35 = vsel %vm713_vm1, %v977_v45, %v979_v55 }
  0x3d   : > { %810 = vrot.lane.b32.xlu0 %v736_v4, %s2834_s10  ;;  %v568_v4 = vrot.slane %v3186_v32, 1  ;;  %v567_v23 = vrot.slane %v3211_v62, 1  ;;  %v744_v0 = vrot.slane %v3211_v62, 2  ;;  %v3263_v55 = vld [vmem:[%s2940_s8 + $0xb0] sm:$0xff] }
  0x3f   : > { %v571_v43 = vsel %vm536_vm0, %v568_v4, %v570_v2  ;;  %v746_v2 = vsel %vm713_vm1, %v744_v0, %v745_v14 }
  0x40   : > { %639 = vrot.lane.b32.xlu1 %v566_v49, %s2833_s9  ;;  %v3246_v49 = vsel %vm536_vm0, %v3987_v29, %v1557_v19  ;;  %v569_v19 = vsel %vm536_vm0, %v567_v23, %v568_v4  ;;  %v575_v4 = vrot.slane %v457_v53, 1  ;;  %v750_v23 = vrot.slane %v3263_v55, 2 }
  0x41   : > { %637 = vrot.lane.b32.xlu0 %v564_v40, %s2833_s9  ;;  %v1568_v40 = vrot.slane %v487_v54, 2  ;;  %v747_v54 = vrot.slane %v454_v37, 2 }
  0x43   : > { %v3253_v15 = vsel %vm713_vm1, %v3986_v48, %v1568_v40  ;;  %v3267_v40 = vld [vmem:[%s2940_s8 + $0xa8] sm:$0xff] }
  0x44   : > { %816 = vrot.lane.b32.xlu1 %v743_v13, %s2834_s10  ;;  %v748_v13 = vsel %vm713_vm1, %v745_v14, %v747_v54  ;;  %v572_v37 = vrot.slane %v3267_v40, 1  ;;  %v749_v29 = vrot.slane %v3267_v40, 2  ;;  %v3282_v54 = vld [vmem:[%s2940_s8 + $0xc0] sm:$0xff] }
  0x45   : > { %814 = vrot.lane.b32.xlu0 %v741_v6, %s2834_s10  ;;  %v573_v6 = vrot.slane %v3263_v55, 1 }
  0x46   : > { %v751_v0 = vsel %vm713_vm1, %v749_v29, %v750_v23 }
  0x47   : > { %v576_v48 = vsel %vm536_vm0, %v573_v6, %v575_v4  ;;  %v754_v4 = vrot.slane %v3282_v54, 2 }
  0x48   : > { %643 = vrot.lane.b32.xlu1 %v571_v43, %s2833_s9  ;;  %v574_v43 = vsel %vm536_vm0, %v572_v37, %v573_v6  ;;  %v3298_v37 = vld [vmem:[%s2940_s8 + $0xd8] sm:$0xff] }
  0x49   : > { %641 = vrot.lane.b32.xlu0 %v569_v19, %s2833_s9  ;;  %v752_v19 = vrot.slane %v457_v53, 2  ;;  %v3989_v53 = vrot.slane %v3005_v57, 1 }
  0x4b   : > { %v753_v14 = vsel %vm713_vm1, %v750_v23, %v752_v19 }
  0x4c   : > { %820 = vrot.lane.b32.xlu1 %v748_v13, %s2834_s10  ;;  %v577_v13 = vrot.slane %v3282_v54, 1 }
  0x4d   : > { %818 = vrot.lane.b32.xlu0 %v746_v2, %s2834_s10  ;;  %v755_v2 = vrot.slane %v3005_v57, 2 }
  0x4e   : > { %v579_v6 = vsel %vm536_vm0, %v577_v13, %v3989_v53 }
  0x4f   : > { %v756_v23 = vsel %vm713_vm1, %v754_v4, %v755_v2  ;;  %v3993_v4 = vrot.slane %v3027_v7, 2 }
  0x50   : > { %647 = vrot.lane.b32.xlu1 %v576_v48, %s2833_s9  ;;  %v757_v48 = vrot.slane %v3011_v59, 2  ;;  %v3990_v59 = vrot.slane %v3014_v60, 1 }
  0x51   : > { %645 = vrot.lane.b32.xlu0 %v574_v43, %s2833_s9  ;;  %v582_v43 = vrot.slane %v3298_v37, 1 }
  0x52   : > { %v758_v29 = vsel %vm713_vm1, %v755_v2, %v757_v48  ;;  %v3330_v48 = vld [vmem:[%s2940_s8 + $0x108] sm:$0xff] }
  0x53   : > { %v584_v19 = vsel %vm536_vm0, %v582_v43, %v3990_v59  ;;  %v3347_v59 = vld [vmem:[%s2940_s8 + $0x120] sm:$0xff] }
  0x54   : > { %824 = vrot.lane.b32.xlu1 %v753_v14, %s2834_s10  ;;  %v759_v14 = vrot.slane %v3298_v37, 2 }
  0x55   : > { %822 = vrot.lane.b32.xlu0 %v751_v0, %s2834_s10  ;;  %v3991_v0 = vrot.slane %v3014_v60, 2 }
  0x57   : > { %v761_v13 = vsel %vm713_vm1, %v759_v14, %v3991_v0  ;;  %v597_v14 = vrot.slane %v3347_v59, 1  ;;  %v3996_v0 = vrot.slane %v3071_v38, 1 }
  0x58   : > { %651 = vrot.lane.b32.xlu1 %v3036_v12, %s2833_s9  ;;  %v3313_v12 = vld [vmem:[%s2940_s8 + $0xf0] sm:$0xff] }
  0x59   : > { %649 = vrot.lane.b32.xlu0 %v579_v6, %s2833_s9  ;;  %v587_v53 = vrot.slane %v3313_v12, 1  ;;  %v3992_v6 = vrot.slane %v3027_v7, 1 }
  0x5b   : > { %v589_v2 = vsel %vm536_vm0, %v587_v53, %v3992_v6  ;;  %v3364_v53 = vld [vmem:[%s2940_s8 + $0x138] sm:$0xff]  ;;  %v3997_v6 = vrot.slane %v3071_v38, 2 }
  0x5c   : > { %828 = vrot.lane.b32.xlu1 %v758_v29, %s2834_s10  ;;  %v592_v29 = vrot.slane %v3330_v48, 1 }
  0x5d   : > { %826 = vrot.lane.b32.xlu0 %v756_v23, %s2834_s10  ;;  %v3994_v23 = vrot.slane %v3047_v22, 1 }
  0x5f   : > { %v594_v43 = vsel %vm536_vm0, %v592_v29, %v3994_v23  ;;  %v3999_v29 = vrot.slane %v3091_v50, 2 }
  0x60   : > { %655 = vrot.lane.b32.xlu1 %v3057_v27, %s2833_s9  ;;  %v764_v27 = vrot.slane %v3313_v12, 2 }
  0x61   : > { %653 = vrot.lane.b32.xlu0 %v584_v19, %s2833_s9  ;;  %v3995_v19 = vrot.slane %v3047_v22, 2 }
  0x64   : > { %832 = vrot.lane.b32.xlu1 %v3064_v31, %s2834_s10  ;;  %v766_v31 = vsel %vm713_vm1, %v764_v27, %v3993_v4  ;;  %v3998_v27 = vrot.slane %v3091_v50, 1 }
  0x65   : > { %830 = vrot.lane.b32.xlu0 %v761_v13, %s2834_s10  ;;  %v599_v13 = vsel %vm536_vm0, %v597_v14, %v3996_v0 }
  0x68   : > { %659 = vrot.lane.b32.xlu1 %v3080_v41, %s2833_s9  ;;  %v769_v41 = vrot.slane %v3330_v48, 2 }
  0x69   : > { %657 = vrot.lane.b32.xlu0 %v589_v2, %s2833_s9  ;;  %v602_v2 = vrot.slane %v3364_v53, 1 }
  0x6b   : > { %v604_v4 = vsel %vm536_vm0, %v602_v2, %v3998_v27  ;;  %v3415_v27 = vld [vmem:[%s3145_s14] sm:$0xff] }
  0x6c   : > { %836 = vrot.lane.b32.xlu1 %v3087_v47, %s2834_s10  ;;  %v771_v47 = vsel %vm713_vm1, %v769_v41, %v3995_v19  ;;  %v3398_v19 = vld [vmem:[%s2940_s8 + $0x168] sm:$0xff] }
  0x6d   : > { %834 = vrot.lane.b32.xlu0 %v766_v31, %s2834_s10  ;;  %v3381_v31 = vld [vmem:[%s2940_s8 + $0x150] sm:$0xff]  ;;  %v612_v14 = vrot.slane %v3398_v19, 1 }
  0x70   : > { %663 = vrot.lane.b32.xlu1 %v3096_v52, %s2833_s9  ;;  %v774_v52 = vrot.slane %v3347_v59, 2 }
  0x71   : > { %661 = vrot.lane.b32.xlu0 %v594_v43, %s2833_s9  ;;  %v4000_v43 = vrot.slane %v3120_v9, 1 }
  0x74   : > { %840 = vrot.lane.b32.xlu1 %v3107_v61, %s2834_s10  ;;  %v776_v61 = vsel %vm713_vm1, %v774_v52, %v3997_v6  ;;  %v4002_v52 = vrot.slane %v3140_v34, 1 }
  0x75   : > { %838 = vrot.lane.b32.xlu0 %v771_v47, %s2834_s10  ;;  %v4001_v47 = vrot.slane %v3120_v9, 2 }
  0x76   : > { %v614_v6 = vsel %vm536_vm0, %v612_v14, %v4002_v52 }
  0x78   : > { %667 = vrot.lane.b32.xlu1 %v3130_v16, %s2833_s9  ;;  %v779_v16 = vrot.slane %v3364_v53, 2 }
  0x79   : > { %665 = vrot.lane.b32.xlu0 %v599_v13, %s2833_s9 }
  0x7a   : > { %v781_v23 = vsel %vm713_vm1, %v779_v16, %v3999_v29  ;;  %v965_v16 = vrot.slane %v3415_v27, 1 }
  0x7c   : > { %844 = vrot.lane.b32.xlu1 %v3136_v25, %s2834_s10  ;;  %v607_v25 = vrot.slane %v3381_v31, 1 }
  0x7d   : > { %842 = vrot.lane.b32.xlu0 %v776_v61, %s2834_s10 }
  0x7e   : > { %v609_v41 = vsel %vm536_vm0, %v607_v25, %v4000_v43 }
  0x80   : > { %671 = vrot.lane.b32.xlu1 %v3153_v39, %s2833_s9  ;;  %v784_v39 = vrot.slane %v3381_v31, 2 }
  0x81   : > { %669 = vrot.lane.b32.xlu0 %v604_v4, %s2833_s9 }
  0x84   : > { %848 = vrot.lane.b32.xlu1 %v3163_v46, %s2834_s10  ;;  %v786_v46 = vsel %vm713_vm1, %v784_v39, %v4001_v47  ;;  %v4004_v39 = vrot.slane %v3170_v8, 1 }
  0x85   : > { %846 = vrot.lane.b32.xlu0 %v781_v23, %s2834_s10 }
  0x86   : > { %v967_v47 = vsel %vm536_vm0, %v965_v16, %v4004_v39 }
  0x88   : > { %675 = vrot.lane.b32.xlu1 %v3181_v1, %s2833_s9  ;;  %v789_v1 = vrot.slane %v3398_v19, 2 }
  0x89   : > { %673 = vrot.lane.b32.xlu0 %v609_v41, %s2833_s9 }
  0x8a   : > { %v620_v0 = vpop.permute.xlu1 %619 }
  0x8b   : > { %v618_v13 = vpop.permute.xlu0 %617 }
  0x8c   : > { %852 = vrot.lane.b32.xlu1 %v3191_v30, %s2834_s10  ;;  %v4003_v30 = vrot.slane %v3140_v34, 2  ;;  %v891_v29 = vsel %vm890_vm2, %v2950_v20, %v618_v13  ;;  %v2336_v20 = vld [vmem:[%s3965_s3 + $0x70] sm:$0xff] }
  0x8d   : > { %850 = vrot.lane.b32.xlu0 %v786_v46, %s2834_s10  ;;  %v892_v46 = vsel %vm890_vm2, %v2946_v18, %v620_v0  ;;  %v2338_v18 = vld [vmem:[%s3965_s3 + $0x80] sm:$0xff] }
  0x8e   : > { %v624_v61 = vpop.permute.xlu1 %623  ;;  %v791_v4 = vsel %vm713_vm1, %v789_v1, %v4003_v30 }
  0x8f   : > { %v622_v2 = vpop.permute.xlu0 %621  ;;  %v894_v14 = vsel %vm890_vm2, %v2955_v24, %v624_v61  ;;  %v2339_v24 = vld [vmem:[%s3965_s3 + $0x88] sm:$0xff] }
  0x90   : > { %679 = vrot.lane.b32.xlu1 %v3201_v56, %s2833_s9  ;;  %v893_v23 = vsel %vm890_vm2, %v2960_v28, %v622_v2  ;;  %v2337_v28 = vld [vmem:[%s3965_s3 + $0x78] sm:$0xff]  ;;  %v3452_v2 = vld [vmem:[%s3175_s18] sm:$0xff]  ;;  %v2705_v16 = vpack.c.bf16 %v2339_v24, %v2338_v18 }
  0x91   : > { %677 = vrot.lane.b32.xlu0 %v614_v6, %s2833_s9  ;;  %v2701_v30 = vpack.c.bf16 %v2337_v28, %v2336_v20 }
  0x92   : > { %v799_v25 = vpop.permute.xlu1 %798 }
  0x93   : > { %v795_v43 = vpop.permute.xlu0 %794  ;;  %v926_v56 = vsel %vm923_vm3, %v893_v23, %v799_v25  ;;  %v4005_v25 = vrot.slane %v3205_v21, 1 }
  0x94   : > { %v924_v41 = vsel %vm923_vm3, %v891_v29, %v795_v43  ;;  %856 = vrot.lane.b32.xlu1 %v3216_v36, %s2834_s10  ;;  %2505 = vmatprep.mubr.msk.f32.mxu1 %vm998_vm4, %v926_v56  ;;  %v976_v36 = vrot.slane %v3415_v27, 2 }
  0x95   : > { %854 = vrot.lane.b32.xlu0 %v791_v4, %s2834_s10  ;;  %2565 = vmatprep.mubr.msk.f32.mxu0 %vm998_vm4, %v924_v41  ;;  %v1554_v4 = vrot.slane %v3452_v2, 1 }
  0x96   : > { %v801_v13 = vpop.permute.xlu1 %800  ;;  %v978_v0 = vsel %vm713_vm1, %v976_v36, %v977_v45 }
  0x97   : > { %v797_v52 = vpop.permute.xlu0 %796  ;;  %v927_v6 = vsel %vm923_vm3, %v894_v14, %v801_v13  ;;  %v1556_v43 = vsel %vm536_vm0, %v1554_v4, %v4005_v25 }
  0x98   : > { %v925_v1 = vsel %vm923_vm3, %v892_v46, %v797_v52  ;;  %972 = vrot.lane.b32.xlu1 %v3224_v33, %s2833_s9  ;;  %2506 = vmatmul.mubr.msk.f32.vlgmr.msra.gmra.mrb[0].mxu1 %vm998_vm4, %v927_v6 }
  0x99   : > { %970 = vrot.lane.b32.xlu0 %v967_v47, %s2833_s9  ;;  %2566 = vmatmul.mubr.msk.f32.vlgmr.msra.gmra.mrb[0].mxu0 %vm998_vm4, %v925_v1 }
  0x9a   : > { %2568 = vmatprep.mubr.msk.f32.mxu0 %vm998_vm4, %v926_v56  ;;  %v628_v33 = vpop.permute.xlu1 %627  ;;  %2700 = vmatpush3.bf16.msra.mxu0 %v3248_v63  ;;  %v1565_v56 = vrot.slane %v3452_v2, 2 }
  0x9b   : > { %v626_v61 = vpop.permute.xlu0 %625  ;;  %2702 = vmatprep.subr.bf16.mxu0 %v2701_v30  ;;  %2712 = vmatpush3.bf16.msra.mxu1 %v2903_v5  ;;  %v896_v45 = vsel %vm890_vm2, %v2982_v42, %v628_v33 }
  0x9c   : > { %983 = vrot.lane.b32.xlu1 %v3239_v35, %s2834_s10  ;;  %2710 = vmatprep.subr.bf16.mxu1 %v2921_v11  ;;  %v895_v63 = vsel %vm890_vm2, %v2986_v44, %v626_v61 }
  0x9d   : > { %981 = vrot.lane.b32.xlu0 %v978_v0, %s2834_s10  ;;  %2569 = vmatmul.mubr.msk.f32.gmra.mrb[2].mxu0 %vm998_vm4, %v927_v6 }
  0x9e   : > { %v805_v29 = vpop.permute.xlu1 %804  ;;  %2704 = vmatpush3.bf16.msra.mxu0 %v2701_v30 }
  0x9f   : > { %v803_v23 = vpop.permute.xlu0 %802  ;;  %v3482_v5 = vsel %vm923_vm3, %v896_v45, %v805_v29  ;;  %2706 = vmatprep.subr.bf16.mxu0 %v2705_v16  ;;  %2713 = vmatpush3.bf16.msra.mxu1 %v2921_v11  ;;  %v4006_v11 = vrot.slane %v3205_v21, 2 }
  0xa0   : > { %v3485_v35 = vsel %vm923_vm3, %v895_v63, %v803_v23  ;;  %1561 = vrot.lane.b32.xlu1 %v3246_v49, %s2833_s9  ;;  %2711 = vmatprep.subr.bf16.mxu1 %v2943_v17 }
  0xa1   : > { %2508 = vmatprep.mubr.msk.f32.mxu1 %vm998_vm4, %v3485_v35  ;;  %2571 = vmatprep.mubr.msk.f32.mxu0 %vm998_vm4, %v3485_v35  ;;  %v1567_v41 = vsel %vm713_vm1, %v1565_v56, %v4006_v11 }
  0xa2   : > { %2509 = vmatmul.mubr.msk.f32.gmra.mrb[2].mxu1 %vm998_vm4, %v3482_v5  ;;  %2572 = vmatmul.mubr.msk.f32.gmra.mrb[4].mxu0 %vm998_vm4, %v3482_v5  ;;  %v632_v42 = vpop.permute.xlu1 %631 }
  0xa3   : > { %v630_v44 = vpop.permute.xlu0 %629  ;;  %1559 = vrot.lane.b32.xlu0 %v1556_v43, %s2833_s9  ;;  %2708 = vmatpush3.bf16.msra.mxu0 %v2705_v16  ;;  %v898_v20 = vsel %vm890_vm2, %v2998_v51, %v632_v42 }
  0xa4   : > { %2714 = vmatpush3.bf16.msra.mxu1 %v2943_v17  ;;  %v897_v28 = vsel %vm890_vm2, %v3008_v58, %v630_v44  ;;  %1572 = vrot.lane.b32.xlu1 %v3253_v15, %s2834_s10 }
  0xa6   : > { %v809_v39 = vpop.permute.xlu1 %808 }
  0xa7   : > { %v807_v47 = vpop.permute.xlu0 %806  ;;  %1570 = vrot.lane.b32.xlu0 %v1567_v41, %s2834_s10  ;;  %v3516_v49 = vsel %vm923_vm3, %v898_v20, %v809_v39 }
  0xa8   : > { %v930_v36 = vsel %vm923_vm3, %v897_v28, %v807_v47 }
  0xa9   : > { %2511 = vmatprep.mubr.msk.f32.mxu1 %vm998_vm4, %v930_v36  ;;  %2574 = vmatprep.mubr.msk.f32.mxu0 %vm998_vm4, %v930_v36 }
  0xaa   : > { %2512 = vmatmul.mubr.msk.f32.gmra.mrb[4].mxu1 %vm998_vm4, %v3516_v49  ;;  %2575 = vmatmul.mubr.msk.f32.gmra.mrb[6].mxu0 %vm998_vm4, %v3516_v49  ;;  %v636_v17 = vpop.permute.xlu1 %635 }
  0xab   : > { %v634_v51 = vpop.permute.xlu0 %633  ;;  %v900_v58 = vsel %vm890_vm2, %v3031_v10, %v636_v17 }
  0xac   : > { %v899_v15 = vsel %vm890_vm2, %v3052_v26, %v634_v51  ;;  %v4007_v26 = vld [vmem:[#allocation2_spill] sm:$0xff] }
  0xae   : > { %v813_v46 = vpop.permute.xlu1 %812 }
  0xaf   : > { %v811_v14 = vpop.permute.xlu0 %810  ;;  %v933_v13 = vsel %vm923_vm3, %v900_v58, %v813_v46 }
  0xb0   : > { %v932_v52 = vsel %vm923_vm3, %v899_v15, %v811_v14 }
  0xb1   : > { %2514 = vmatprep.mubr.msk.f32.mxu1 %vm998_vm4, %v932_v52  ;;  %2577 = vmatprep.mubr.msk.f32.mxu0 %vm998_vm4, %v932_v52 }
  0xb2   : > { %2515 = vmatmul.mubr.msk.f32.gmra.mrb[6].mxu1 %vm998_vm4, %v933_v13  ;;  %2578 = vmatmul.mubr.msk.f32.gmra.mrb[8].mxu0 %vm998_vm4, %v933_v13  ;;  %v640_v6 = vpop.permute.xlu1 %639 }
  0xb3   : > { %v638_v1 = vpop.permute.xlu0 %637  ;;  %v902_v10 = vsel %vm890_vm2, %v3116_v3, %v640_v6 }
  0xb4   : > { %v901_v30 = vsel %vm890_vm2, %v4007_v26, %v638_v1 }
  0xb6   : > { %v817_v18 = vpop.permute.xlu1 %816 }
  0xb7   : > { %v815_v24 = vpop.permute.xlu0 %814  ;;  %v935_v0 = vsel %vm923_vm3, %v902_v10, %v817_v18 }
  0xb8   : > { %v934_v33 = vsel %vm923_vm3, %v901_v30, %v815_v24 }
  0xb9   : > { %2517 = vmatprep.mubr.msk.f32.mxu1 %vm998_vm4, %v934_v33  ;;  %2580 = vmatprep.mubr.msk.f32.mxu0 %vm998_vm4, %v934_v33 }
  0xba   : > { %2518 = vmatmul.mubr.msk.f32.gmra.mrb[8].mxu1 %vm998_vm4, %v935_v0  ;;  %2581 = vmatmul.mubr.msk.f32.gmra.mrb[10].mxu0 %vm998_vm4, %v935_v0  ;;  %v644_v61 = vpop.permute.xlu1 %643 }
  0xbb   : > { %v642_v4 = vpop.permute.xlu0 %641  ;;  %v904_v3 = vsel %vm890_vm2, %v3186_v32, %v644_v61 }
  0xbc   : > { %v903_v16 = vsel %vm890_vm2, %v3211_v62, %v642_v4 }
  0xbe   : > { %v821_v45 = vpop.permute.xlu1 %820 }
  0xbf   : > { %v819_v63 = vpop.permute.xlu0 %818  ;;  %v937_v29 = vsel %vm923_vm3, %v904_v3, %v821_v45 }
  0xc0   : > { %v936_v23 = vsel %vm923_vm3, %v903_v16, %v819_v63 }
  0xc1   : > { %2520 = vmatprep.mubr.msk.f32.mxu1 %vm998_vm4, %v936_v23  ;;  %2583 = vmatprep.mubr.msk.f32.mxu0 %vm998_vm4, %v936_v23 }
  0xc2   : > { %2521 = vmatmul.mubr.msk.f32.gmra.mrb[10].mxu1 %vm998_vm4, %v937_v29  ;;  %2584 = vmatmul.mubr.msk.f32.gmra.mrb[12].mxu0 %vm998_vm4, %v937_v29  ;;  %v648_v25 = vpop.permute.xlu1 %647 }
  0xc3   : > { %v646_v43 = vpop.permute.xlu0 %645  ;;  %v906_v32 = vsel %vm890_vm2, %v3263_v55, %v648_v25 }
  0xc4   : > { %v905_v62 = vsel %vm890_vm2, %v3267_v40, %v646_v43 }
  0xc6   : > { %v825_v56 = vpop.permute.xlu1 %824 }
  0xc7   : > { %v823_v42 = vpop.permute.xlu0 %822  ;;  %v939_v44 = vsel %vm923_vm3, %v906_v32, %v825_v56 }
  0xc8   : > { %v938_v11 = vsel %vm923_vm3, %v905_v62, %v823_v42 }
  0xc9   : > { %2523 = vmatprep.mubr.msk.f32.mxu1 %vm998_vm4, %v938_v11  ;;  %2586 = vmatprep.mubr.msk.f32.mxu0 %vm998_vm4, %v938_v11 }
  0xca   : > { %2524 = vmatmul.mubr.msk.f32.gmra.mrb[12].mxu1 %vm998_vm4, %v939_v44  ;;  %2587 = vmatmul.mubr.msk.f32.gmra.mrb[14].mxu0 %vm998_vm4, %v939_v44  ;;  %v652_v41 = vpop.permute.xlu1 %651 }
  0xcb   : > { %2625 = vmatprep.mubr.msk.f32.mxu0 %vm998_vm4, %v3485_v35  ;;  %v650_v55 = vpop.permute.xlu0 %649  ;;  %v908_v40 = vsel %vm890_vm2, %v3005_v57, %v652_v41 }
  0xcc   : > { %v907_v20 = vsel %vm890_vm2, %v3282_v54, %v650_v55 }
  0xce   : > { %2626 = vmatmul.mubr.msk.f32.vlgmr.msra.gmra.mrb[0].mxu0 %vm998_vm4, %v3482_v5  ;;  %v829_v28 = vpop.permute.xlu1 %828 }
  0xcf   : > { %2628 = vmatprep.mubr.msk.f32.mxu0 %vm998_vm4, %v930_v36  ;;  %v827_v39 = vpop.permute.xlu0 %826  ;;  %v3575_v47 = vsel %vm923_vm3, %v908_v40, %v829_v28 }
  0xd0   : > { %v3578_v17 = vsel %vm923_vm3, %v907_v20, %v827_v39 }
  0xd1   : > { %2526 = vmatprep.mubr.msk.f32.mxu1 %vm998_vm4, %v3578_v17 }
  0xd2   : > { %2527 = vmatmul.mubr.msk.f32.gmra.mrb[14].mxu1 %vm998_vm4, %v3575_v47  ;;  %2629 = vmatmul.mubr.msk.f32.gmra.mrb[2].mxu0 %vm998_vm4, %v3516_v49  ;;  %v656_v57 = vpop.permute.xlu1 %655 }
  0xd3   : > { %2631 = vmatprep.mubr.msk.f32.mxu0 %vm998_vm4, %v932_v52  ;;  %v654_v54 = vpop.permute.xlu0 %653  ;;  %v910_v5 = vsel %vm890_vm2, %v3014_v60, %v656_v57 }
  0xd4   : > { %v909_v35 = vsel %vm890_vm2, %v3298_v37, %v654_v54 }
  0xd6   : > { %2632 = vmatmul.mubr.msk.f32.gmra.mrb[4].mxu0 %vm998_vm4, %v933_v13  ;;  %v833_v36 = vpop.permute.xlu1 %832 }
  0xd7   : > { %2634 = vmatprep.mubr.msk.f32.mxu0 %vm998_vm4, %v934_v33  ;;  %v831_v51 = vpop.permute.xlu0 %830  ;;  %v3594_v58 = vsel %vm923_vm3, %v910_v5, %v833_v36 }
  0xd8   : > { %v3597_v49 = vsel %vm923_vm3, %v909_v35, %v831_v51 }
  0xd9   : > { %2529 = vmatprep.mubr.msk.f32.mxu1 %vm998_vm4, %v3597_v49 }
  0xda   : > { %2530 = vmatmul.mubr.msk.f32.gmra.mrb[16].mxu1 %vm998_vm4, %v3594_v58  ;;  %2635 = vmatmul.mubr.msk.f32.gmra.mrb[6].mxu0 %vm998_vm4, %v935_v0  ;;  %v660_v60 = vpop.permute.xlu1 %659 }
  0xdb   : > { %2637 = vmatprep.mubr.msk.f32.mxu0 %vm998_vm4, %v936_v23  ;;  %v658_v37 = vpop.permute.xlu0 %657  ;;  %v912_v15 = vsel %vm890_vm2, %v3027_v7, %v660_v60 }
  0xdc   : > { %v911_v46 = vsel %vm890_vm2, %v3313_v12, %v658_v37 }
  0xde   : > { %2638 = vmatmul.mubr.msk.f32.gmra.mrb[8].mxu0 %vm998_vm4, %v937_v29  ;;  %v837_v14 = vpop.permute.xlu1 %836 }
  0xdf   : > { %2640 = vmatprep.mubr.msk.f32.mxu0 %vm998_vm4, %v938_v11  ;;  %v835_v13 = vpop.permute.xlu0 %834  ;;  %v3612_v52 = vsel %vm923_vm3, %v912_v15, %v837_v14 }
  0xe0   : > { %v3615_v6 = vsel %vm923_vm3, %v911_v46, %v835_v13 }
  0xe1   : > { %2532 = vmatprep.mubr.msk.f32.mxu1 %vm998_vm4, %v3615_v6 }
  0xe2   : > { %2533 = vmatmul.mubr.msk.f32.gmra.mrb[18].mxu1 %vm998_vm4, %v3612_v52  ;;  %2641 = vmatmul.mubr.msk.f32.gmra.mrb[10].mxu0 %vm998_vm4, %v939_v44  ;;  %v664_v7 = vpop.permute.xlu1 %663 }
  0xe3   : > { %2643 = vmatprep.mubr.msk.f32.mxu0 %vm998_vm4, %v3578_v17  ;;  %v662_v12 = vpop.permute.xlu0 %661  ;;  %v914_v1 = vsel %vm890_vm2, %v3047_v22, %v664_v7  ;;  %v2835_v7 = vmov 0.0  }
  0xe4   : > { %v913_v10 = vsel %vm890_vm2, %v3330_v48, %v662_v12  ;;  %1887 = vst.msk [vmem:[%s3753_s13] sm:$0x1] %vm1886_vm5, %v2835_v7  ;;  %1888 = vst.msk [vmem:[%s3759_s16] sm:$0x1] %vm1886_vm5, %v2835_v7 }
  0xe6   : > { %2644 = vmatmul.mubr.msk.f32.gmra.mrb[12].mxu0 %vm998_vm4, %v3575_v47  ;;  %v841_v26 = vpop.permute.xlu1 %840 }
  0xe7   : > { %2646 = vmatprep.mubr.msk.f32.mxu0 %vm998_vm4, %v3597_v49  ;;  %v839_v30 = vpop.permute.xlu0 %838  ;;  %v3633_v18 = vsel %vm923_vm3, %v914_v1, %v841_v26 }
  0xe8   : > { %v3636_v24 = vsel %vm923_vm3, %v913_v10, %v839_v30 }
  0xe9   : > { %2535 = vmatprep.mubr.msk.f32.mxu1 %vm998_vm4, %v3636_v24 }
  0xea   : > { %2536 = vmatmul.mubr.msk.f32.gmra.mrb[20].mxu1 %vm998_vm4, %v3633_v18  ;;  %2647 = vmatmul.mubr.msk.f32.gmra.mrb[14].mxu0 %vm998_vm4, %v3594_v58  ;;  %v668_v22 = vpop.permute.xlu1 %667 }
  0xeb   : > { %2649 = vmatprep.mubr.msk.f32.mxu0 %vm998_vm4, %v3615_v6  ;;  %v666_v48 = vpop.permute.xlu0 %665  ;;  %v916_v0 = vsel %vm890_vm2, %v3071_v38, %v668_v22 }
  0xec   : > { %v915_v33 = vsel %vm890_vm2, %v3347_v59, %v666_v48 }
  0xee   : > { %2650 = vmatmul.mubr.msk.f32.gmra.mrb[16].mxu0 %vm998_vm4, %v3612_v52  ;;  %v845_v61 = vpop.permute.xlu1 %844 }
  0xef   : > { %2652 = vmatprep.mubr.msk.f32.mxu0 %vm998_vm4, %v3636_v24  ;;  %v843_v4 = vpop.permute.xlu0 %842  ;;  %v3655_v3 = vsel %vm923_vm3, %v916_v0, %v845_v61 }
  0xf0   : > { %v3658_v16 = vsel %vm923_vm3, %v915_v33, %v843_v4 }
  0xf1   : > { %2538 = vmatprep.mubr.msk.f32.mxu1 %vm998_vm4, %v3658_v16 }
  0xf2   : > { %2539 = vmatmul.mubr.msk.f32.gmra.mrb[22].mxu1 %vm998_vm4, %v3655_v3  ;;  %2653 = vmatmul.mubr.msk.f32.gmra.mrb[18].mxu0 %vm998_vm4, %v3633_v18  ;;  %v672_v38 = vpop.permute.xlu1 %671 }
  0xf3   : > { %2655 = vmatprep.mubr.msk.f32.mxu0 %vm998_vm4, %v3658_v16  ;;  %v670_v59 = vpop.permute.xlu0 %669  ;;  %v918_v45 = vsel %vm890_vm2, %v3091_v50, %v672_v38 }
  0xf4   : > { %v917_v63 = vsel %vm890_vm2, %v3364_v53, %v670_v59 }
  0xf6   : > { %2656 = vmatmul.mubr.msk.f32.gmra.mrb[20].mxu0 %vm998_vm4, %v3655_v3  ;;  %v849_v29 = vpop.permute.xlu1 %848 }
  0xf7   : > { %v847_v23 = vpop.permute.xlu0 %846  ;;  %v3675_v25 = vsel %vm923_vm3, %v918_v45, %v849_v29 }
  0xf8   : > { %v950_v43 = vsel %vm923_vm3, %v917_v63, %v847_v23 }
  0xf9   : > { %2541 = vmatprep.mubr.msk.f32.mxu1 %vm998_vm4, %v950_v43  ;;  %2658 = vmatprep.mubr.msk.f32.mxu0 %vm998_vm4, %v950_v43 }
  0xfa   : > { %2542 = vmatmul.mubr.msk.f32.gmra.mrb[24].mxu1 %vm998_vm4, %v3675_v25  ;;  %2659 = vmatmul.mubr.msk.f32.gmra.mrb[22].mxu0 %vm998_vm4, %v3675_v25  ;;  %v676_v50 = vpop.permute.xlu1 %675 }
  0xfb   : > { %v674_v32 = vpop.permute.xlu0 %673  ;;  %v920_v53 = vsel %vm890_vm2, %v3120_v9, %v676_v50 }
  0xfc   : > { %v919_v62 = vsel %vm890_vm2, %v3381_v31, %v674_v32 }
  0xfe   : > { %v853_v56 = vpop.permute.xlu1 %852 }
  0xff   : > { %v851_v42 = vpop.permute.xlu0 %850  ;;  %v953_v44 = vsel %vm923_vm3, %v920_v53, %v853_v56 }
 0x100   : > { %v952_v11 = vsel %vm923_vm3, %v919_v62, %v851_v42 }
 0x101   : > { %2544 = vmatprep.mubr.msk.f32.mxu1 %vm998_vm4, %v952_v11  ;;  %2661 = vmatprep.mubr.msk.f32.mxu0 %vm998_vm4, %v952_v11 }
 0x102   : > { %2545 = vmatmul.mubr.msk.f32.gmra.mrb[26].mxu1 %vm998_vm4, %v953_v44  ;;  %2662 = vmatmul.mubr.msk.f32.gmra.mrb[24].mxu0 %vm998_vm4, %v953_v44  ;;  %v680_v41 = vpop.permute.xlu1 %679 }
 0x103   : > { %v678_v55 = vpop.permute.xlu0 %677  ;;  %v922_v9 = vsel %vm890_vm2, %v3140_v34, %v680_v41 }
 0x104   : > { %v921_v31 = vsel %vm890_vm2, %v3398_v19, %v678_v55 }
 0x106   : > { %v857_v40 = vpop.permute.xlu1 %856 }
 0x107   : > { %v855_v20 = vpop.permute.xlu0 %854  ;;  %v955_v28 = vsel %vm923_vm3, %v922_v9, %v857_v40 }
 0x108   : > { %v954_v39 = vsel %vm923_vm3, %v921_v31, %v855_v20 }
 0x109   : > { %2547 = vmatprep.mubr.msk.f32.mxu1 %vm998_vm4, %v954_v39  ;;  %2664 = vmatprep.mubr.msk.f32.mxu0 %vm998_vm4, %v954_v39 }
 0x10a   : > { %2548 = vmatmul.mubr.msk.f32.gmra.mrb[28].mxu1 %vm998_vm4, %v955_v28  ;;  %2665 = vmatmul.mubr.msk.f32.gmra.mrb[26].mxu0 %vm998_vm4, %v955_v28  ;;  %v973_v57 = vpop.permute.xlu1 %972 }
 0x10b   : > { %v971_v54 = vpop.permute.xlu0 %970  ;;  %v988_v34 = vsel %vm890_vm2, %v3170_v8, %v973_v57 }
 0x10c   : > { %v987_v19 = vsel %vm890_vm2, %v3415_v27, %v971_v54 }
 0x10e   : > { %v984_v5 = vpop.permute.xlu1 %983 }
 0x10f   : > { %v982_v35 = vpop.permute.xlu0 %981  ;;  %v990_v36 = vsel %vm923_vm3, %v988_v34, %v984_v5 }
 0x110   : > { %v989_v51 = vsel %vm923_vm3, %v987_v19, %v982_v35 }
 0x111   : > { %2550 = vmatprep.mubr.msk.f32.mxu1 %vm998_vm4, %v989_v51  ;;  %2667 = vmatprep.mubr.msk.f32.mxu0 %vm998_vm4, %v989_v51 }
 0x112   : > { %2551 = vmatmul.mubr.msk.f32.gmra.mrb[30].mxu1 %vm998_vm4, %v990_v36  ;;  %2668 = vmatmul.mubr.msk.f32.gmra.mrb[28].mxu0 %vm998_vm4, %v990_v36  ;;  %v1562_v60 = vpop.permute.xlu1 %1561 }
 0x113   : > { %2589 = vmatprep.mubr.msk.f32.mxu1 %vm998_vm4, %v3578_v17  ;;  %v1577_v37 = vsel %vm890_vm2, %v3205_v21, %v1562_v60 }
 0x115   : > { %v1560_v8 = vpop.permute.xlu0 %1559 }
 0x116   : > { %2590 = vmatmul.mubr.msk.f32.vlgmr.msra.gmra.mrb[16].mxu1 %vm998_vm4, %v3575_v47  ;;  %v1576_v27 = vsel %vm890_vm2, %v3452_v2, %v1560_v8  ;;  %v1573_v46 = vpop.permute.xlu1 %1572 }
 0x117   : > { %2592 = vmatprep.mubr.msk.f32.mxu1 %vm998_vm4, %v3597_v49  ;;  %v1579_v14 = vsel %vm923_vm3, %v1577_v37, %v1573_v46 }
 0x119   : > { %v1571_v15 = vpop.permute.xlu0 %1570 }
 0x11a   : > { %2593 = vmatmul.mubr.msk.f32.gmra.mrb[18].mxu1 %vm998_vm4, %v3594_v58  ;;  %v1578_v17 = vsel %vm923_vm3, %v1576_v27, %v1571_v15 }
 0x11b   : > { %2595 = vmatprep.mubr.msk.f32.mxu1 %vm998_vm4, %v3615_v6  ;;  %2670 = vmatprep.mubr.msk.f32.mxu0 %vm998_vm4, %v1578_v17 }
 0x11c   : > { %2671 = vmatmul.mubr.msk.f32.gmra.mrb[30].mxu0 %vm998_vm4, %v1579_v14 }
 0x11e   : > { %2596 = vmatmul.mubr.msk.f32.gmra.mrb[20].mxu1 %vm998_vm4, %v3612_v52 }
 0x11f   : > { %2598 = vmatprep.mubr.msk.f32.mxu1 %vm998_vm4, %v3636_v24 }
 0x122   : > { %2599 = vmatmul.mubr.msk.f32.gmra.mrb[22].mxu1 %vm998_vm4, %v3633_v18 }
 0x123   : > { %2601 = vmatprep.mubr.msk.f32.mxu1 %vm998_vm4, %v3658_v16 }
 0x126   : > { %2602 = vmatmul.mubr.msk.f32.gmra.mrb[24].mxu1 %vm998_vm4, %v3655_v3 }
 0x127   : > { %2604 = vmatprep.mubr.msk.f32.mxu1 %vm998_vm4, %v950_v43 }
 0x12a   : > { %2605 = vmatmul.mubr.msk.f32.gmra.mrb[26].mxu1 %vm998_vm4, %v3675_v25 }
 0x12b   : > { %2607 = vmatprep.mubr.msk.f32.mxu1 %vm998_vm4, %v952_v11 }
 0x12e   : > { %2608 = vmatmul.mubr.msk.f32.gmra.mrb[28].mxu1 %vm998_vm4, %v953_v44 }
 0x12f   : > { %2610 = vmatprep.mubr.msk.f32.mxu1 %vm998_vm4, %v954_v39 }
 0x132   : > { %2611 = vmatmul.mubr.msk.f32.gmra.mrb[30].mxu1 %vm998_vm4, %v955_v28 }
 0x16b   : > { %v2507_v21 = vpop.f32.mrb[0].mxu1 }
 0x16c   : > { %v1161_v2 = vpop.f32.mrb[1].mxu1 }
 0x175   : > { %v2510_v47 = vpop.f32.mrb[2].mxu1 }
 0x176   : > { %v1171_v58 = vpop.f32.mrb[3].mxu1 }
 0x17d   : > { %v2513_v49 = vpop.f32.mrb[4].mxu1 }
 0x17e   : > { %v1181_v13 = vpop.f32.mrb[5].mxu1 }
 0x185   : > { %v2516_v52 = vpop.f32.mrb[6].mxu1 }
 0x186   : > { %v1191_v6 = vpop.f32.mrb[7].mxu1 }
 0x18d   : > { %v3765_v12 = vpop.f32.mrb[8].mxu1 }
 0x18e   : > { %v3767_v1 = vpop.f32.mrb[9].mxu1 }
 0x195   : > { %v3769_v10 = vpop.f32.mrb[10].mxu1 }
 0x196   : > { %v3771_v26 = vpop.f32.mrb[11].mxu1 }
 0x19d   : > { %v3773_v30 = vpop.f32.mrb[12].mxu1 }
 0x19e   : > { %v3775_v18 = vpop.f32.mrb[13].mxu1 }
 0x1a1   : > { %v2627_v24 = vpop.f32.mrb[0].mxu0 }
 0x1a2   : > { %v2715_v22 = vadd.f32 %v2627_v24, %v2507_v21  ;;  %v1659_v48 = vpop.f32.mrb[1].mxu0 }
 0x1a3   : > { %v2716_v0 = vadd.f32 %v1659_v48, %v1161_v2 }
 0x1a4   : > { %1851 = vst.msk [vmem:[%s3781_s20 + $0x8] sm:$0xff] %vm890_vm2, %v2715_v22  ;;  %v1890_v33 = vsel %vm890_vm2, %v2715_v22, 0.0  ;;  %v1959_v61 = vmul.f32 %v2715_v22, %v2715_v22 }
 0x1a5   : > { %1850 = vst.msk [vmem:[%s3781_s20] sm:$0xff] %vm890_vm2, %v2716_v0  ;;  %v1889_v4 = vsel %vm890_vm2, %v2716_v0, 0.0  ;;  %v1958_v3 = vmul.f32 %v2716_v0, %v2716_v0  ;;  %v3789_v16 = vpop.f32.mrb[14].mxu1  ;;  %v2630_v38 = vpop.f32.mrb[2].mxu0 }
 0x1a6   : > { %v1991_v59 = vsel %vm890_vm2, %v1959_v61, 0.0  ;;  %v1891_v45 = vadd.f32 %v1890_v33, %v1889_v4  ;;  %v2717_v63 = vadd.f32 %v2630_v38, %v2510_v47  ;;  %v3792_v29 = vpop.f32.mrb[15].mxu1  ;;  %v1669_v23 = vpop.f32.mrb[3].mxu0 }
 0x1a7   : > { %v1990_v25 = vsel %vm890_vm2, %v1958_v3, 0.0  ;;  %v2718_v43 = vadd.f32 %v1669_v23, %v1171_v58 }
 0x1a8   : > { %v1992_v50 = vadd.f32 %v1991_v59, %v1990_v25  ;;  %1853 = vst.msk [vmem:[%s3781_s20 + $0x18] sm:$0xff] %vm890_vm2, %v2717_v63  ;;  %v1961_v32 = vmul.f32 %v2717_v63, %v2717_v63  ;;  %v1894_v41 = vsel %vm890_vm2, %v2717_v63, 0.0 }
 0x1a9   : > { %1852 = vst.msk [vmem:[%s3781_s20 + $0x10] sm:$0xff] %vm890_vm2, %v2718_v43  ;;  %v1892_v53 = vsel %vm890_vm2, %v2718_v43, 0.0  ;;  %v1960_v62 = vmul.f32 %v2718_v43, %v2718_v43  ;;  %v2633_v56 = vpop.f32.mrb[4].mxu0 }
 0x1aa   : > { %v1893_v42 = vadd.f32 %v1892_v53, %v1891_v45  ;;  %v2719_v44 = vadd.f32 %v2633_v56, %v2513_v49  ;;  %v1679_v11 = vpop.f32.mrb[5].mxu0  ;;  %v1995_v20 = vsel %vm890_vm2, %v1961_v32, 0.0 }
 0x1ab   : > { %v1993_v55 = vsel %vm890_vm2, %v1960_v62, 0.0  ;;  %v2720_v9 = vadd.f32 %v1679_v11, %v1181_v13 }
 0x1ac   : > { %v1994_v31 = vadd.f32 %v1993_v55, %v1992_v50  ;;  %1855 = vst.msk [vmem:[%s3781_s20 + $0x28] sm:$0xff] %vm890_vm2, %v2719_v44  ;;  %v1895_v40 = vadd.f32 %v1894_v41, %v1893_v42  ;;  %v1963_v28 = vmul.f32 %v2719_v44, %v2719_v44  ;;  %v1898_v36 = vsel %vm890_vm2, %v2719_v44, 0.0 }
 0x1ad   : > { %1854 = vst.msk [vmem:[%s3781_s20 + $0x20] sm:$0xff] %vm890_vm2, %v2720_v9  ;;  %v1896_v39 = vsel %vm890_vm2, %v2720_v9, 0.0  ;;  %v1962_v57 = vmul.f32 %v2720_v9, %v2720_v9  ;;  %v2636_v54 = vpop.f32.mrb[6].mxu0 }
 0x1ae   : > { %v1897_v34 = vadd.f32 %v1896_v39, %v1895_v40  ;;  %v1996_v19 = vadd.f32 %v1995_v20, %v1994_v31  ;;  %v2721_v5 = vadd.f32 %v2636_v54, %v2516_v52  ;;  %v1689_v35 = vpop.f32.mrb[7].mxu0  ;;  %v1999_v37 = vsel %vm890_vm2, %v1963_v28, 0.0 }
 0x1af   : > { %v1997_v51 = vsel %vm890_vm2, %v1962_v57, 0.0  ;;  %v2722_v8 = vadd.f32 %v1689_v35, %v1191_v6 }
 0x1b0   : > { %v1998_v60 = vadd.f32 %v1997_v51, %v1996_v19  ;;  %1857 = vst.msk [vmem:[%s3781_s20 + $0x38] sm:$0xff] %vm890_vm2, %v2721_v5  ;;  %v1899_v27 = vadd.f32 %v1898_v36, %v1897_v34  ;;  %v1965_v15 = vmul.f32 %v2721_v5, %v2721_v5  ;;  %v1902_v49 = vsel %vm890_vm2, %v2721_v5, 0.0 }
 0x1b1   : > { %1856 = vst.msk [vmem:[%s3781_s20 + $0x30] sm:$0xff] %vm890_vm2, %v2722_v8  ;;  %v1900_v46 = vsel %vm890_vm2, %v2722_v8, 0.0  ;;  %v1964_v17 = vmul.f32 %v2722_v8, %v2722_v8  ;;  %v2639_v14 = vpop.f32.mrb[8].mxu0 }
 0x1b2   : > { %v1901_v21 = vadd.f32 %v1900_v46, %v1899_v27  ;;  %v2000_v2 = vadd.f32 %v1999_v37, %v1998_v60  ;;  %v2723_v47 = vadd.f32 %v2639_v14, %v3765_v12  ;;  %v1699_v58 = vpop.f32.mrb[9].mxu0  ;;  %v2003_v24 = vsel %vm890_vm2, %v1965_v15, 0.0 }
 0x1b3   : > { %v2001_v13 = vsel %vm890_vm2, %v1964_v17, 0.0  ;;  %v2724_v52 = vadd.f32 %v1699_v58, %v3767_v1 }
 0x1b4   : > { %v2002_v6 = vadd.f32 %v2001_v13, %v2000_v2  ;;  %1859 = vst.msk [vmem:[%s3781_s20 + $0x48] sm:$0xff] %vm890_vm2, %v2723_v47  ;;  %v1903_v7 = vadd.f32 %v1902_v49, %v1901_v21  ;;  %v1967_v22 = vmul.f32 %v2723_v47, %v2723_v47  ;;  %v1906_v3 = vsel %vm890_vm2, %v2723_v47, 0.0 }
 0x1b5   : > { %1858 = vst.msk [vmem:[%s3781_s20 + $0x40] sm:$0xff] %vm890_vm2, %v2724_v52  ;;  %v1904_v12 = vsel %vm890_vm2, %v2724_v52, 0.0  ;;  %v1966_v48 = vmul.f32 %v2724_v52, %v2724_v52  ;;  %v2642_v0 = vpop.f32.mrb[10].mxu0 }
 0x1b6   : > { %v1905_v33 = vadd.f32 %v1904_v12, %v1903_v7  ;;  %v2004_v61 = vadd.f32 %v2003_v24, %v2002_v6  ;;  %v2725_v4 = vadd.f32 %v2642_v0, %v3769_v10  ;;  %v1709_v1 = vpop.f32.mrb[11].mxu0  ;;  %v2007_v23 = vsel %vm890_vm2, %v1967_v22, 0.0 }
 0x1b7   : > { %v2005_v38 = vsel %vm890_vm2, %v1966_v48, 0.0  ;;  %v2726_v59 = vadd.f32 %v1709_v1, %v3771_v26 }
 0x1b8   : > { %v2006_v45 = vadd.f32 %v2005_v38, %v2004_v61  ;;  %1861 = vst.msk [vmem:[%s3781_s20 + $0x58] sm:$0xff] %vm890_vm2, %v2725_v4  ;;  %v1907_v63 = vadd.f32 %v1906_v3, %v1905_v33  ;;  %v1969_v25 = vmul.f32 %v2725_v4, %v2725_v4  ;;  %v1910_v56 = vsel %vm890_vm2, %v2725_v4, 0.0 }
 0x1b9   : > { %1860 = vst.msk [vmem:[%s3781_s20 + $0x50] sm:$0xff] %vm890_vm2, %v2726_v59  ;;  %v1908_v10 = vsel %vm890_vm2, %v2726_v59, 0.0  ;;  %v1968_v43 = vmul.f32 %v2726_v59, %v2726_v59  ;;  %v2645_v50 = vpop.f32.mrb[12].mxu0 }
 0x1ba   : > { %v1909_v32 = vadd.f32 %v1908_v10, %v1907_v63  ;;  %v2008_v53 = vadd.f32 %v2007_v23, %v2006_v45  ;;  %v2727_v62 = vadd.f32 %v2645_v50, %v3773_v30  ;;  %v1719_v26 = vpop.f32.mrb[13].mxu0  ;;  %v2011_v55 = vsel %vm890_vm2, %v1969_v25, 0.0 }
 0x1bb   : > { %v2009_v42 = vsel %vm890_vm2, %v1968_v43, 0.0  ;;  %v2728_v44 = vadd.f32 %v1719_v26, %v3775_v18 }
 0x1bc   : > { %v2010_v11 = vadd.f32 %v2009_v42, %v2008_v53  ;;  %1863 = vst.msk [vmem:[%s3781_s20 + $0x68] sm:$0xff] %vm890_vm2, %v2727_v62  ;;  %v1911_v41 = vadd.f32 %v1910_v56, %v1909_v32  ;;  %v1971_v9 = vmul.f32 %v2727_v62, %v2727_v62  ;;  %v1914_v57 = vsel %vm890_vm2, %v2727_v62, 0.0 }
 0x1bd   : > { %1862 = vst.msk [vmem:[%s3781_s20 + $0x60] sm:$0xff] %vm890_vm2, %v2728_v44  ;;  %v1912_v30 = vsel %vm890_vm2, %v2728_v44, 0.0  ;;  %v1970_v31 = vmul.f32 %v2728_v44, %v2728_v44  ;;  %v2648_v40 = vpop.f32.mrb[14].mxu0 }
 0x1be   : > { %v1913_v20 = vadd.f32 %v1912_v30, %v1911_v41  ;;  %v2012_v28 = vadd.f32 %v2011_v55, %v2010_v11  ;;  %v2729_v39 = vadd.f32 %v2648_v40, %v3789_v16  ;;  %v1729_v18 = vpop.f32.mrb[15].mxu0  ;;  %v2015_v35 = vsel %vm890_vm2, %v1971_v9, 0.0 }
 0x1bf   : > { %v2013_v54 = vsel %vm890_vm2, %v1970_v31, 0.0  ;;  %v2730_v34 = vadd.f32 %v1729_v18, %v3792_v29 }
 0x1c0   : > { %v2014_v19 = vadd.f32 %v2013_v54, %v2012_v28  ;;  %1865 = vst.msk [vmem:[%s3781_s20 + $0x78] sm:$0xff] %vm890_vm2, %v2729_v39  ;;  %v1915_v5 = vadd.f32 %v1914_v57, %v1913_v20  ;;  %v1973_v36 = vmul.f32 %v2729_v39, %v2729_v39  ;;  %v1918_v15 = vsel %vm890_vm2, %v2729_v39, 0.0 }
 0x1c1   : > { %1864 = vst.msk [vmem:[%s3781_s20 + $0x70] sm:$0xff] %vm890_vm2, %v2730_v34  ;;  %v1916_v51 = vsel %vm890_vm2, %v2730_v34, 0.0  ;;  %v1972_v8 = vmul.f32 %v2730_v34, %v2730_v34  ;;  %v2651_v16 = vpop.f32.mrb[16].mxu0 }
 0x1c2   : > { %v1917_v60 = vadd.f32 %v1916_v51, %v1915_v5  ;;  %v2016_v27 = vadd.f32 %v2015_v35, %v2014_v19  ;;  %v1739_v37 = vpop.f32.mrb[17].mxu0  ;;  %v2019_v14 = vsel %vm890_vm2, %v1973_v36, 0.0 }
 0x1c3   : > { %v2017_v29 = vsel %vm890_vm2, %v1972_v8, 0.0 }
 0x1c4   : > { %v2018_v46 = vadd.f32 %v2017_v29, %v2016_v27  ;;  %v1919_v17 = vadd.f32 %v1918_v15, %v1917_v60 }
 0x1c5   : > { %v2654_v21 = vpop.f32.mrb[18].mxu0 }
 0x1c6   : > { %v1749_v2 = vpop.f32.mrb[19].mxu0  ;;  %v2020_v47 = vadd.f32 %v2019_v14, %v2018_v46 }
 0x1c9   : > { %v2657_v58 = vpop.f32.mrb[20].mxu0 }
 0x1ca   : > { %v1759_v49 = vpop.f32.mrb[21].mxu0 }
 0x1cd   : > { %v2660_v13 = vpop.f32.mrb[22].mxu0 }
 0x1ce   : > { %v1769_v52 = vpop.f32.mrb[23].mxu0 }
 0x1d5   : > { %v3859_v6 = vpop.f32.mrb[24].mxu0 }
 0x1d6   : > { %v3861_v7 = vpop.f32.mrb[25].mxu0 }
 0x1dd   : > { %v3863_v24 = vpop.f32.mrb[26].mxu0 }
 0x1de   : > { %v3865_v22 = vpop.f32.mrb[27].mxu0 }
 0x1e5   : > { %v3867_v12 = vpop.f32.mrb[28].mxu0 }
 0x1e6   : > { %v3869_v48 = vpop.f32.mrb[29].mxu0 }
 0x1e9   : > { %v2591_v0 = vpop.f32.mrb[16].mxu1 }
 0x1ea   : > { %v2731_v33 = vadd.f32 %v2651_v16, %v2591_v0  ;;  %v1472_v61 = vpop.f32.mrb[17].mxu1 }
 0x1eb   : > { %v2732_v4 = vadd.f32 %v1739_v37, %v1472_v61 }
 0x1ec   : > { %1867 = vst.msk [vmem:[%s3781_s20 + $0x88] sm:$0xff] %vm890_vm2, %v2731_v33  ;;  %v1975_v1 = vmul.f32 %v2731_v33, %v2731_v33  ;;  %v1922_v25 = vsel %vm890_vm2, %v2731_v33, 0.0 }
 0x1ed   : > { %1866 = vst.msk [vmem:[%s3781_s20 + $0x80] sm:$0xff] %vm890_vm2, %v2732_v4  ;;  %v1920_v3 = vsel %vm890_vm2, %v2732_v4, 0.0  ;;  %v1974_v38 = vmul.f32 %v2732_v4, %v2732_v4  ;;  %v2594_v59 = vpop.f32.mrb[18].mxu1 }
 0x1ee   : > { %v1921_v45 = vadd.f32 %v1920_v3, %v1919_v17  ;;  %v2733_v63 = vadd.f32 %v2654_v21, %v2594_v59  ;;  %v1482_v23 = vpop.f32.mrb[19].mxu1  ;;  %v2023_v26 = vsel %vm890_vm2, %v1975_v1, 0.0 }
 0x1ef   : > { %v2021_v10 = vsel %vm890_vm2, %v1974_v38, 0.0  ;;  %v2734_v43 = vadd.f32 %v1749_v2, %v1482_v23  ;;  %v3878_v50 = vpop.f32.mrb[30].mxu0 }
 0x1f0   : > { %v2022_v32 = vadd.f32 %v2021_v10, %v2020_v47  ;;  %1869 = vst.msk [vmem:[%s3781_s20 + $0x98] sm:$0xff] %vm890_vm2, %v2733_v63  ;;  %v1923_v53 = vadd.f32 %v1922_v25, %v1921_v45  ;;  %v3882_v62 = vpop.f32.mrb[31].mxu0  ;;  %v1977_v56 = vmul.f32 %v2733_v63, %v2733_v63  ;;  %v1926_v31 = vsel %vm890_vm2, %v2733_v63, 0.0 }
 0x1f1   : > { %1868 = vst.msk [vmem:[%s3781_s20 + $0x90] sm:$0xff] %vm890_vm2, %v2734_v43  ;;  %v1924_v42 = vsel %vm890_vm2, %v2734_v43, 0.0  ;;  %v1976_v44 = vmul.f32 %v2734_v43, %v2734_v43  ;;  %v2597_v11 = vpop.f32.mrb[20].mxu1 }
 0x1f2   : > { %v1925_v41 = vadd.f32 %v1924_v42, %v1923_v53  ;;  %v2024_v55 = vadd.f32 %v2023_v26, %v2022_v32  ;;  %v2735_v9 = vadd.f32 %v2657_v58, %v2597_v11  ;;  %v1492_v30 = vpop.f32.mrb[21].mxu1  ;;  %v2027_v18 = vsel %vm890_vm2, %v1977_v56, 0.0 }
 0x1f3   : > { %v2025_v40 = vsel %vm890_vm2, %v1976_v44, 0.0  ;;  %v2736_v20 = vadd.f32 %v1759_v49, %v1492_v30 }
 0x1f4   : > { %v2026_v28 = vadd.f32 %v2025_v40, %v2024_v55  ;;  %1871 = vst.msk [vmem:[%s3781_s20 + $0xa8] sm:$0xff] %vm890_vm2, %v2735_v9  ;;  %v1927_v39 = vadd.f32 %v1926_v31, %v1925_v41  ;;  %v1979_v57 = vmul.f32 %v2735_v9, %v2735_v9  ;;  %v1930_v8 = vsel %vm890_vm2, %v2735_v9, 0.0 }
 0x1f5   : > { %1870 = vst.msk [vmem:[%s3781_s20 + $0xa0] sm:$0xff] %vm890_vm2, %v2736_v20  ;;  %v1928_v54 = vsel %vm890_vm2, %v2736_v20, 0.0  ;;  %v1978_v34 = vmul.f32 %v2736_v20, %v2736_v20  ;;  %v2600_v19 = vpop.f32.mrb[22].mxu1 }
 0x1f6   : > { %v1929_v5 = vadd.f32 %v1928_v54, %v1927_v39  ;;  %v2028_v35 = vadd.f32 %v2027_v18, %v2026_v28  ;;  %v2737_v36 = vadd.f32 %v2660_v13, %v2600_v19  ;;  %v1502_v51 = vpop.f32.mrb[23].mxu1  ;;  %v2031_v15 = vsel %vm890_vm2, %v1979_v57, 0.0 }
 0x1f7   : > { %v2029_v16 = vsel %vm890_vm2, %v1978_v34, 0.0  ;;  %v2738_v60 = vadd.f32 %v1769_v52, %v1502_v51 }
 0x1f8   : > { %v2030_v27 = vadd.f32 %v2029_v16, %v2028_v35  ;;  %1873 = vst.msk [vmem:[%s3781_s20 + $0xb8] sm:$0xff] %vm890_vm2, %v2737_v36  ;;  %v1931_v37 = vadd.f32 %v1930_v8, %v1929_v5  ;;  %v1981_v29 = vmul.f32 %v2737_v36, %v2737_v36  ;;  %v1934_v49 = vsel %vm890_vm2, %v2737_v36, 0.0 }
 0x1f9   : > { %1872 = vst.msk [vmem:[%s3781_s20 + $0xb0] sm:$0xff] %vm890_vm2, %v2738_v60  ;;  %v1932_v46 = vsel %vm890_vm2, %v2738_v60, 0.0  ;;  %v1980_v17 = vmul.f32 %v2738_v60, %v2738_v60  ;;  %v2603_v14 = vpop.f32.mrb[24].mxu1 }
 0x1fa   : > { %v1933_v21 = vadd.f32 %v1932_v46, %v1931_v37  ;;  %v2032_v2 = vadd.f32 %v2031_v15, %v2030_v27  ;;  %v2739_v47 = vadd.f32 %v3859_v6, %v2603_v14  ;;  %v1512_v58 = vpop.f32.mrb[25].mxu1  ;;  %v2035_v61 = vsel %vm890_vm2, %v1981_v29, 0.0 }
 0x1fb   : > { %v2033_v13 = vsel %vm890_vm2, %v1980_v17, 0.0  ;;  %v2740_v52 = vadd.f32 %v3861_v7, %v1512_v58 }
 0x1fc   : > { %v2034_v0 = vadd.f32 %v2033_v13, %v2032_v2  ;;  %1875 = vst.msk [vmem:[%s3781_s20 + $0xc8] sm:$0xff] %vm890_vm2, %v2739_v47  ;;  %v1935_v33 = vadd.f32 %v1934_v49, %v1933_v21  ;;  %v1983_v4 = vmul.f32 %v2739_v47, %v2739_v47  ;;  %v1938_v63 = vsel %vm890_vm2, %v2739_v47, 0.0 }
 0x1fd   : > { %1874 = vst.msk [vmem:[%s3781_s20 + $0xc0] sm:$0xff] %vm890_vm2, %v2740_v52  ;;  %v1936_v6 = vsel %vm890_vm2, %v2740_v52, 0.0  ;;  %v1982_v1 = vmul.f32 %v2740_v52, %v2740_v52  ;;  %v2606_v3 = vpop.f32.mrb[26].mxu1 }
 0x1fe   : > { %v1937_v38 = vadd.f32 %v1936_v6, %v1935_v33  ;;  %v2036_v59 = vadd.f32 %v2035_v61, %v2034_v0  ;;  %v2741_v45 = vadd.f32 %v3863_v24, %v2606_v3  ;;  %v1522_v7 = vpop.f32.mrb[27].mxu1  ;;  %v2039_v32 = vsel %vm890_vm2, %v1983_v4, 0.0  ;;  %v2059_v33 = vld [vmem:[%s3753_s13] sm:$0x1] }
 0x1ff   : > { %v2037_v23 = vsel %vm890_vm2, %v1982_v1, 0.0  ;;  %v2742_v25 = vadd.f32 %v3865_v22, %v1522_v7  ;;  %v2063_v6 = vld [vmem:[%s3759_s16] sm:$0x1] }
 0x200   : > { %v2038_v10 = vadd.f32 %v2037_v23, %v2036_v59  ;;  %1877 = vst.msk [vmem:[%s3781_s20 + $0xd8] sm:$0xff] %vm890_vm2, %v2741_v45  ;;  %v1939_v43 = vadd.f32 %v1938_v63, %v1937_v38  ;;  %v1985_v53 = vmul.f32 %v2741_v45, %v2741_v45  ;;  %v1942_v41 = vsel %vm890_vm2, %v2741_v45, 0.0 }
 0x201   : > { %1876 = vst.msk [vmem:[%s3781_s20 + $0xd0] sm:$0xff] %vm890_vm2, %v2742_v25  ;;  %v1940_v24 = vsel %vm890_vm2, %v2742_v25, 0.0  ;;  %v1984_v26 = vmul.f32 %v2742_v25, %v2742_v25  ;;  %v2609_v56 = vpop.f32.mrb[28].mxu1 }
 0x202   : > { %v1941_v42 = vadd.f32 %v1940_v24, %v1939_v43  ;;  %v2040_v44 = vadd.f32 %v2039_v32, %v2038_v10  ;;  %v2743_v11 = vadd.f32 %v3867_v12, %v2609_v56  ;;  %v1532_v22 = vpop.f32.mrb[29].mxu1  ;;  %v2043_v40 = vsel %vm890_vm2, %v1985_v53, 0.0 }
 0x203   : > { %v2041_v55 = vsel %vm890_vm2, %v1984_v26, 0.0  ;;  %v2744_v9 = vadd.f32 %v3869_v48, %v1532_v22 }
 0x204   : > { %v2042_v30 = vadd.f32 %v2041_v55, %v2040_v44  ;;  %1879 = vst.msk [vmem:[%s3781_s20 + $0xe8] sm:$0xff] %vm890_vm2, %v2743_v11  ;;  %v1943_v31 = vadd.f32 %v1942_v41, %v1941_v42  ;;  %v1987_v20 = vmul.f32 %v2743_v11, %v2743_v11  ;;  %v1946_v34 = vsel %vm890_vm2, %v2743_v11, 0.0 }
 0x205   : > { %1878 = vst.msk [vmem:[%s3781_s20 + $0xe0] sm:$0xff] %vm890_vm2, %v2744_v9  ;;  %v1944_v12 = vsel %vm890_vm2, %v2744_v9, 0.0  ;;  %v1986_v28 = vmul.f32 %v2744_v9, %v2744_v9  ;;  %v2612_v39 = vpop.f32.mrb[30].mxu1 }
 0x206   : > { %v1945_v18 = vadd.f32 %v1944_v12, %v1943_v31  ;;  %v2044_v57 = vadd.f32 %v2043_v40, %v2042_v30  ;;  %v2745_v54 = vadd.f32 %v3878_v50, %v2612_v39  ;;  %v1542_v48 = vpop.f32.mrb[31].mxu1  ;;  %v2047_v51 = vsel %vm890_vm2, %v1987_v20, 0.0 }
 0x207   : > { %v2045_v19 = vsel %vm890_vm2, %v1986_v28, 0.0  ;;  %v2746_v5 = vadd.f32 %v3882_v62, %v1542_v48 }
 0x208   : > { %v2046_v35 = vadd.f32 %v2045_v19, %v2044_v57  ;;  %1881 = vst.msk [vmem:[%s3781_s20 + $0xf8] sm:$0xff] %vm890_vm2, %v2745_v54  ;;  %v1947_v36 = vadd.f32 %v1946_v34, %v1945_v18  ;;  %v1989_v8 = vmul.f32 %v2745_v54, %v2745_v54  ;;  %v1950_v37 = vsel %vm890_vm2, %v2745_v54, 0.0 }
 0x209   : > { %1880 = vst.msk [vmem:[%s3781_s20 + $0xf0] sm:$0xff] %vm890_vm2, %v2746_v5  ;;  %v1948_v16 = vsel %vm890_vm2, %v2746_v5, 0.0  ;;  %v1988_v60 = vmul.f32 %v2746_v5, %v2746_v5 }
 0x20a   : > { %v1949_v50 = vadd.f32 %v1948_v16, %v1947_v36  ;;  %v2048_v27 = vadd.f32 %v2047_v51, %v2046_v35  ;;  %v2051_v46 = vsel %vm890_vm2, %v1989_v8, 0.0 }
 0x20b   : > { %v2049_v15 = vsel %vm890_vm2, %v1988_v60, 0.0 }
 0x20c   : > { %v1951_v62 = vadd.f32 %v1950_v37, %v1949_v50  ;;  %v2050_v29 = vadd.f32 %v2049_v15, %v2048_v27 }
 0x20e   : > { %v1952_v17 = vrot.slane %v1951_v62, 4  ;;  %v2052_v14 = vadd.f32 %v2051_v46, %v2050_v29 }
 0x210   : > { %v1953_v21 = vadd.f32 %v1952_v17, %v1951_v62  ;;  %v2053_v2 = vrot.slane %v2052_v14, 4 }
 0x212   : > { %v1954_v47 = vrot.slane %v1953_v21, 2  ;;  %v2054_v58 = vadd.f32 %v2053_v2, %v2052_v14 }
 0x214   : > { %v1955_v49 = vadd.f32 %v1954_v47, %v1953_v21  ;;  %v2055_v13 = vrot.slane %v2054_v58, 2 }
 0x216   : > { %v1956_v52 = vrot.slane %v1955_v49, 1  ;;  %v2056_v0 = vadd.f32 %v2055_v13, %v2054_v58 }
 0x218   : > { %v1957_v61 = vadd.f32 %v1956_v52, %v1955_v49  ;;  %v2057_v4 = vrot.slane %v2056_v0, 1 }
 0x21a   : > { %v2058_v1 = vadd.f32 %v2057_v4, %v2056_v0  ;;  %v2060_v3 = vadd.f32 %v2059_v33, %v1957_v61 }
 0x21c   : > { %2062 = vst.msk [vmem:[%s3753_s13] sm:$0x1] %vm1886_vm5, %v2060_v3  ;;  %v2064_v38 = vadd.f32 %v2063_v6, %v2058_v1 }
 0x21e   : > { %2065 = vst.msk [vmem:[%s3759_s16] sm:$0x1] %vm1886_vm5, %v2064_v38 }
 0x21f PF: > { %s17_s23 = sadd.s32 1, %s2831_s23   ;;  %s4008_s21 = smov %s2827_s22 }
 0x220   : > { %p14_p5 = scmp.ge.s32.totalorder %s17_s23, 4   ;;  %s4009_s22 = smov %s4011_s24 }
 0x222   :  { %16 = sbr.rel (!%p14_p5) target bundleno = 2 (0x2), region = 102 }

</bundles_post_ra>
